<compile_context>
chip_gen: v5e
topology: v5e:2x2
jax: 0.10.0
libtpu: 0.0.40
codegen_flags: <defaults>
</compile_context>

<pallas_src>
import math

import numpy as np
import jax
import jax.numpy as jnp
from jax.experimental import pallas as pl
from jax.experimental.pallas import tpu as pltpu

_LANE = 128
_WMAT_BUDGET_BYTES = 16 * 1024 * 1024   # max f32 weight matrix kept in VMEM


def _resample_kernel(x_ref, w_ref, o_ref):
    """out_tile = source_window @ interpolation_weights (single MXU op)."""
    o_ref[...] = jnp.dot(x_ref[...], w_ref[...], preferred_element_type=jnp.float32)


def _resample_spill_kernel(x_ref, w_ref, nxt_ref, spill_ref, o_ref):
    """Same, plus a rank-1 'spill' update for lanes whose up-index is the first
    sample of the next window (only happens when upsampling, p <= q)."""
    acc = jnp.dot(x_ref[...], w_ref[...], preferred_element_type=jnp.float32)
    o_ref[...] = acc + nxt_ref[:, 0:1] * spill_ref[...]


def _build_weights(p, q, tn, stride):
    """Tile-invariant lerp weights.  Column l holds (1-frac) at row down(l) and
    frac at row down(l)+1 (if inside the window); spill[l] holds frac for the
    lane (if any) whose up-index equals `stride`."""
    l = np.arange(tn, dtype=np.int64)
    down = (l * p) // q
    frac = ((l * p) % q).astype(np.float32) / np.float32(q)
    wmat = np.zeros((stride, tn), dtype=np.float32)
    wmat[down, l] = 1.0 - frac
    up = down + 1
    inside = up < stride
    wmat[up[inside], l[inside]] += frac[inside]
    spill = np.where(up == stride, frac, 0.0).astype(np.float32).reshape(1, tn)
    return wmat, spill


def _xla_fallback(w, T, N, p, q):
    # TODO(synk): exotic rational ratios (large q, e.g. 44.1k<->48k) would need
    # a >16 MiB weight matrix; they take an exact-integer XLA gather path.
    j = jnp.arange(N, dtype=jnp.int32)
    jh, jl = j // q, j % q
    down = jh * p + (jl * p) // q
    frac = ((jl * p) % q).astype(jnp.float32) * (1.0 / q)
    up = jnp.minimum(down + 1, T - 1)
    return w[:, down] * (1.0 - frac)[None, :] + w[:, up] * frac[None, :]


def change_sample_rate(wav, input_rate, output_rate, *, target_tile=512):
    """JAX/Pallas equivalent of ChangeSampleRate.forward."""
    B = wav.shape[0]
    w = wav.reshape(B, -1).astype(jnp.float32)            # torch: wav.view(B, -1)
    T = w.shape[1]
    N = T * output_rate // input_rate
    if N <= 0:
        return jnp.zeros((B, 0), jnp.float32)

    g = math.gcd(input_rate, output_rate)
    p = input_rate // g                                    # src samples per q outputs
    q = output_rate // g

    # Tile-invariant sizes: tn outputs consume exactly `stride` source samples;
    # both are multiples of 128 so every block is lane-aligned.
    m = max(1, target_tile // (_LANE * q))
    while m > 1 and (_LANE * q * m) * (_LANE * p * m) * 4 > _WMAT_BUDGET_BYTES:
        m -= 1
    tn = _LANE * q * m
    stride = _LANE * p * m
    if stride * tn * 4 > _WMAT_BUDGET_BYTES:
        return _xla_fallback(w, T, N, p, q)

    n_tiles = int(pl.cdiv(N, tn))
    n_pad = n_tiles * tn

    wmat_np, spill_np = _build_weights(p, q, tn, stride)
    has_spill = bool(spill_np.any())                       # only when p <= q
    wmat = jnp.asarray(wmat_np)
    spill = jnp.asarray(spill_np)

    # Edge-mode padding implements torch's `.clamp(max=T-1)` for free and keeps
    # every input block fully in bounds.
    t_need = n_tiles * stride + (_LANE if has_spill else 0)
    pad = max(0, t_need - T)
    w_pad = jnp.pad(w, ((0, 0), (0, pad)), mode="edge") if pad else w

    nxt_blk = stride // _LANE

    wmat_bytes = stride * tn * 4
    vmem_bytes = (2 * wmat_bytes + 2 * B * stride * 4 + 2 * B * tn * 4
                  + (2 * B * _LANE * 4 + 2 * tn * 4 if has_spill else 0))
    vmem_limit = min(max(vmem_bytes + (8 << 20), 16 << 20), 56 << 20)

    cost = pl.CostEstimate(
        flops=2 * B * stride * tn * n_tiles,
        transcendentals=0,
        bytes_accessed=(B * t_need + B * n_pad) * 4 + wmat_bytes,
    )

    def _const_spec(shape, single_buffered):
        idx = lambda *_: (0,) * len(shape)
        if single_buffered:
            return pl.BlockSpec(shape, idx, pipeline_mode=pl.Buffered(1))
        return pl.BlockSpec(shape, idx)

    def _run(single_buffered):
        in_specs = [
            pl.BlockSpec((B, stride), lambda i: (0, i)),      # streamed source window
            _const_spec((stride, tn), single_buffered),       # resident lerp weights
        ]
        args = [w_pad, wmat]
        kernel = _resample_kernel
        if has_spill:
            in_specs += [
                pl.BlockSpec((B, _LANE), lambda i: (0, (i + 1) * nxt_blk)),
                _const_spec((1, tn), single_buffered),
            ]
            args += [w_pad, spill]
            kernel = _resample_spill_kernel
        return pl.pallas_call(
            kernel,
            out_shape=jax.ShapeDtypeStruct((B, n_pad), jnp.float32),
            grid=(n_tiles,),
            in_specs=in_specs,
            out_specs=pl.BlockSpec((B, tn), lambda i: (0, i)),
            compiler_params=pltpu.CompilerParams(
                dimension_semantics=("parallel",),
                vmem_limit_bytes=vmem_limit,
            ),
            cost_estimate=cost,
        )(*args)

    try:
        # Weight block never changes across the grid -> single-buffer it.
        out = _run(True)
    except Exception:  # pragma: no cover - fallback if Buffered(1) is unsupported
        out = _run(False)

    return out[:, :N]


def _reference(wav, input_rate, output_rate):
    """Pure-JAX reference mirroring the PyTorch module (float32 index math)."""
    B = wav.shape[0]
    w = wav.reshape(B, -1).astype(jnp.float32)
    T = w.shape[1]
    N = T * output_rate // input_rate
    pos = jnp.arange(N, dtype=jnp.float32) * (float(input_rate) / float(output_rate))
    idx_down = pos.astype(jnp.int32)
    idx_up = jnp.minimum(idx_down + 1, T - 1)
    frac = jnp.mod(pos, 1.0)
    return w[:, idx_down] * (1.0 - frac)[None, :] + w[:, idx_up] * frac[None, :]


if __name__ == "__main__":
    key = jax.random.PRNGKey(0)
    # Small audio-like input: (batch=2, channels=1, time=256); forward flattens to (2, 256).
    x = jax.random.normal(key, (2, 1, 256), dtype=jnp.float32)

    # Integer-ratio downsample, fractional downsample, and upsample (spill path).
    for in_rate, out_rate in ((48000, 16000), (24000, 16000), (16000, 24000)):
        out = jax.block_until_ready(change_sample_rate(x, in_rate, out_rate))
        ref = _reference(x, in_rate, out_rate)
        assert out.shape == ref.shape, (in_rate, out_rate, out.shape, ref.shape)
        # atol covers the torch-style float32 `indices` rounding vs the kernel's
        # exact integer frac (identical floor indices at these sizes).
        assert jnp.allclose(out, ref, atol=2e-4, rtol=1e-4), (in_rate, out_rate)

    print("KERNEL_OK")
</pallas_src>

<mosaic_0001>
module attributes {stable_mosaic.version = 11 : i64} {
  func.func @_resample_kernel(%arg0: i32, %arg1: memref<2x1536xf32, #tpu.memory_space<vmem>>, %arg2: memref<1536x512xf32, #tpu.memory_space<vmem>>, %arg3: memref<2x512xf32, #tpu.memory_space<vmem>>) attributes {dimension_semantics = [#tpu.dimension_semantics<parallel>], iteration_bounds = array<i64: 1>, scalar_prefetch = 0 : i64, scratch_operands = 0 : i64, tpu.core_type = #tpu.core_type<tc>, window_params = [{transform_indices = @transform_0, window_bounds = array<i64: 2, 1536>}, {pipeline_mode = #tpu.pipeline_mode<synchronous>, transform_indices = @transform_1, window_bounds = array<i64: 1536, 512>}, {transform_indices = @transform_2, window_bounds = array<i64: 2, 512>}]} {
    %c0 = arith.constant 0 : index
    %c0_0 = arith.constant 0 : index
    %0 = vector.load %arg1[%c0, %c0_0] : memref<2x1536xf32, #tpu.memory_space<vmem>>, vector<2x1536xf32>
    %c0_1 = arith.constant 0 : index
    %c0_2 = arith.constant 0 : index
    %1 = vector.load %arg2[%c0_1, %c0_2] : memref<1536x512xf32, #tpu.memory_space<vmem>>, vector<1536x512xf32>
    %cst = arith.constant dense<0.000000e+00> : vector<2x512xf32>
    %2 = tpu.matmul %0, %1, %cst {dimension_numbers = #tpu.dot_dimension_numbers<[1], [0], [0], [1], [0, 0, 1, 1], [], []>} : vector<2x1536xf32>, vector<1536x512xf32>, vector<2x512xf32> -> vector<2x512xf32>
    %c0_3 = arith.constant 0 : index
    %c0_4 = arith.constant 0 : index
    %3 = vector.load %arg3[%c0_3, %c0_4] : memref<2x512xf32, #tpu.memory_space<vmem>>, vector<2x512xf32>
    tpu.vector_store %arg3[%c0_3, %c0_4], %2 {strides = array<i32>} : memref<2x512xf32, #tpu.memory_space<vmem>>, vector<2x512xf32>,
    return
  }
  func.func @transform_0(%arg0: i32) -> (i32, i32) {
    %c0_i32 = arith.constant 0 : i32
    %c0_i32_0 = arith.constant 0 : i32
    return %c0_i32, %arg0 : i32, i32
  }
  func.func @transform_1(%arg0: i32) -> (i32, i32) {
    %c0_i32 = arith.constant 0 : i32
    %c0_i32_0 = arith.constant 0 : i32
    %c0_i32_1 = arith.constant 0 : i32
    return %c0_i32, %c0_i32_0 : i32, i32
  }
  func.func @transform_2(%arg0: i32) -> (i32, i32) {
    %c0_i32 = arith.constant 0 : i32
    %c0_i32_0 = arith.constant 0 : i32
    return %c0_i32, %arg0 : i32, i32
  }
}

module attributes {stable_mosaic.version = 11 : i64} {
  func.func @_resample_kernel(%arg0: i32, %arg1: memref<2x1536xf32, #tpu.memory_space<vmem>>, %arg2: memref<1536x512xf32, #tpu.memory_space<vmem>>, %arg3: memref<2x512xf32, #tpu.memory_space<vmem>>) attributes {dimension_semantics = [#tpu.dimension_semantics<parallel>], iteration_bounds = array<i64: 1>, scalar_prefetch = 0 : i64, scratch_operands = 0 : i64, tpu.core_type = #tpu.core_type<tc>, window_params = [{transform_indices = @transform_0, window_bounds = array<i64: 2, 1536>}, {pipeline_mode = #tpu.pipeline_mode<synchronous>, transform_indices = @transform_1, window_bounds = array<i64: 1536, 512>}, {transform_indices = @transform_2, window_bounds = array<i64: 2, 512>}]} {
    %c0 = arith.constant 0 : index
    %c0_0 = arith.constant 0 : index
    %0 = vector.load %arg1[%c0, %c0_0] : memref<2x1536xf32, #tpu.memory_space<vmem>>, vector<2x1536xf32>
    %c0_1 = arith.constant 0 : index
    %c0_2 = arith.constant 0 : index
    %1 = vector.load %arg2[%c0_1, %c0_2] : memref<1536x512xf32, #tpu.memory_space<vmem>>, vector<1536x512xf32>
    %cst = arith.constant dense<0.000000e+00> : vector<2x512xf32>
    %2 = tpu.matmul %0, %1, %cst {dimension_numbers = #tpu.dot_dimension_numbers<[1], [0], [0], [1], [0, 0, 1, 1], [], []>} : vector<2x1536xf32>, vector<1536x512xf32>, vector<2x512xf32> -> vector<2x512xf32>
    %c0_3 = arith.constant 0 : index
    %c0_4 = arith.constant 0 : index
    %3 = vector.load %arg3[%c0_3, %c0_4] : memref<2x512xf32, #tpu.memory_space<vmem>>, vector<2x512xf32>
    tpu.vector_store %arg3[%c0_3, %c0_4], %2 {strides = array<i32>} : memref<2x512xf32, #tpu.memory_space<vmem>>, vector<2x512xf32>,
    return
  }
  func.func @transform_0(%arg0: i32) -> (i32, i32) {
    %c0_i32 = arith.constant 0 : i32
    %c0_i32_0 = arith.constant 0 : i32
    return %c0_i32, %arg0 : i32, i32
  }
  func.func @transform_1(%arg0: i32) -> (i32, i32) {
    %c0_i32 = arith.constant 0 : i32
    %c0_i32_0 = arith.constant 0 : i32
    %c0_i32_1 = arith.constant 0 : i32
    return %c0_i32, %c0_i32_0 : i32, i32
  }
  func.func @transform_2(%arg0: i32) -> (i32, i32) {
    %c0_i32 = arith.constant 0 : i32
    %c0_i32_0 = arith.constant 0 : i32
    return %c0_i32, %arg0 : i32, i32
  }
}

</mosaic_0001>

<bundles_post_ra>
// kernel: tpu_custom_call.1
= control target key start
LH: loop header
LB: loop body
LE: loop exit
PB: predicated region body
PF: predicated region fallthrough
CT: control target
= control target key end

     0   :  { %7 = vsyncpa [#allocation3], 0  ;;  %s2051_s0 = inlined_call_operand.hbm [shape: f32[2,1536], index: 0, kind: input, shape index: {}]   ;;  %s2052_s1 = inlined_call_operand.hbm [shape: f32[1536,512], index: 1, kind: input, shape index: {}]   ;;  %s2053_s2 = inlined_call_operand.hbm [shape: f32[2,512], index: 2, kind: output, shape index: {}]  }
   0x1   :  { %8 = vsyncpa [#allocation6], 0 }
   0x2   :  { %9 = vsyncpa [#allocation4], 0  ;;  %s15_s11 = sshll.u32 %s2051_s0, 4  ;;  %s1928_s12 = smov [#allocation2]   ;;  %s16_s11 = int_to_ptr.hbm [resolvable:$true] %s15_s11 }
   0x3   :  { %s17_s13 = sshll.u32 %s1928_s12, 4  ;;  %s25_s16 = sshll.u32 %s2052_s1, 4  ;;  %s18_s13 = int_to_ptr.vmem [resolvable:$true] %s17_s13  ;;  %s26_s16 = int_to_ptr.hbm [resolvable:$true] %s25_s16 }
   0x4   :  { %20 = dma.hbm_to_vmem [thread:$0]  %s16_s11, 384, %s18_s13, [#allocation3]  }
   0x5   :  { %s1929_s17 = smov [#allocation5]   ;;  %s1930_s19 = smov 512  }
   0x6   :  { %s27_s18 = sshll.u32 %s1929_s17, 4  ;;  %s1931_s20 = smov 32   ;;  %s28_s18 = int_to_ptr.vmem [resolvable:$true] %s27_s18 }
   0x7   :  { %33 = dma.hbm_to_vmem [thread:$0]  %s26_s16, 98304, %s28_s18, [#allocation6], %s1930_s19, %s1930_s19, %s1931_s20  }
   0x8   :  { %1922 = dma.done.wait [#allocation3], 384  }
   0x9   :  { %1923 = vsyncadd [#allocation3], 4294966912 }
   0xa   :  { %1924 = dma.done.wait [#allocation6], 98304  }
   0xb   :  { %1925 = vsyncadd [#allocation6], 4294868992  ;;  %v105_v0 = vld [vmem:[#allocation5 + $0x1e0] sm:$0xff]  ;;  %vm1811_vm0 = vcmask 1041408   ;;  %vm1813_vm1 = vcmask 1045508   ;;  %s1932_s0 = smov [#allocation7]  }
   0xc   :  { %v233_v1 = vld [vmem:[#allocation5 + $0x5e0] sm:$0xff]  ;;  %844 = vmatpush.msra.mxu0 %v105_v0  ;;  %s1824_s1 = sshll.u32 %s1932_s0, 4  ;;  %s1826_s23 = sshll.u32 %s2053_s2, 4  ;;  %vm1815_vm2 = vcmask 1043456   ;;  %s1825_s1 = int_to_ptr.vmem [resolvable:$true] %s1824_s1  ;;  %s1827_s23 = int_to_ptr.hbm [resolvable:$true] %s1826_s23 }
   0xd   :  { %v101_v2 = vld [vmem:[#allocation5 + $0x1c0] sm:$0xff]  ;;  %884 = vmatpush.msra.mxu2 %v233_v1 }
   0xe   :  { %v169_v3 = vld [vmem:[#allocation5 + $0x3e0] sm:$0xff]  ;;  %845 = vmatpush.msra.mxu0 %v101_v2 }
   0xf   :  { %v229_v4 = vld [vmem:[#allocation5 + $0x5c0] sm:$0xff]  ;;  %864 = vmatpush.msra.mxu1 %v169_v3 }
  0x10   :  { %v297_v5 = vld [vmem:[#allocation5 + $0x7e0] sm:$0xff]  ;;  %885 = vmatpush.msra.mxu2 %v229_v4 }
  0x11   :  { %904 = vmatpush.msra.mxu3 %v297_v5  ;;  %v97_v6 = vld [vmem:[#allocation5 + $0x1a0] sm:$0xff] }
  0x12   :  { %v165_v7 = vld [vmem:[#allocation5 + $0x3c0] sm:$0xff]  ;;  %846 = vmatpush.msra.mxu0 %v97_v6 }
  0x13   :  { %v225_v8 = vld [vmem:[#allocation5 + $0x5a0] sm:$0xff]  ;;  %865 = vmatpush.msra.mxu1 %v165_v7 }
  0x14   :  { %v293_v9 = vld [vmem:[#allocation5 + $0x7c0] sm:$0xff]  ;;  %886 = vmatpush.msra.mxu2 %v225_v8 }
  0x15   :  { %v161_v10 = vld [vmem:[#allocation5 + $0x3a0] sm:$0xff]  ;;  %905 = vmatpush.msra.mxu3 %v293_v9 }
  0x16   :  { %v93_v11 = vld [vmem:[#allocation5 + $0x180] sm:$0xff]  ;;  %866 = vmatpush.msra.mxu1 %v161_v10 }
  0x17   :  { %v221_v12 = vld [vmem:[#allocation5 + $0x580] sm:$0xff]  ;;  %847 = vmatpush.msra.mxu0 %v93_v11 }
  0x18   :  { %v289_v13 = vld [vmem:[#allocation5 + $0x7a0] sm:$0xff]  ;;  %887 = vmatpush.msra.mxu2 %v221_v12 }
  0x19   :  { %v157_v14 = vld [vmem:[#allocation5 + $0x380] sm:$0xff]  ;;  %906 = vmatpush.msra.mxu3 %v289_v13 }
  0x1a   :  { %v285_v15 = vld [vmem:[#allocation5 + $0x780] sm:$0xff]  ;;  %867 = vmatpush.msra.mxu1 %v157_v14 }
  0x1b   :  { %v89_v16 = vld [vmem:[#allocation5 + $0x160] sm:$0xff]  ;;  %907 = vmatpush.msra.mxu3 %v285_v15 }
  0x1c   :  { %v217_v17 = vld [vmem:[#allocation5 + $0x560] sm:$0xff]  ;;  %848 = vmatpush.msra.mxu0 %v89_v16 }
  0x1d   :  { %v153_v18 = vld [vmem:[#allocation5 + $0x360] sm:$0xff]  ;;  %888 = vmatpush.msra.mxu2 %v217_v17 }
  0x1e   :  { %v281_v19 = vld [vmem:[#allocation5 + $0x760] sm:$0xff]  ;;  %868 = vmatpush.msra.mxu1 %v153_v18 }
  0x1f   :  { %v85_v20 = vld [vmem:[#allocation5 + $0x140] sm:$0xff]  ;;  %908 = vmatpush.msra.mxu3 %v281_v19 }
  0x20   :  { %v213_v21 = vld [vmem:[#allocation5 + $0x540] sm:$0xff]  ;;  %849 = vmatpush.msra.mxu0 %v85_v20 }
  0x21   :  { %v149_v22 = vld [vmem:[#allocation5 + $0x340] sm:$0xff]  ;;  %889 = vmatpush.msra.mxu2 %v213_v21 }
  0x22   :  { %v277_v23 = vld [vmem:[#allocation5 + $0x740] sm:$0xff]  ;;  %869 = vmatpush.msra.mxu1 %v149_v22  ;;  %v42_v22 = vld [vmem:[#allocation2] sm:$0xff] }
  0x23   :  { %v81_v24 = vld [vmem:[#allocation5 + $0x120] sm:$0xff]  ;;  %909 = vmatpush.msra.mxu3 %v277_v23  ;;  %816 = vst [vmem:[#allocation1] ss:$4 sm:$0xff] %v42_v22 }
  0x24   :  { %v209_v25 = vld [vmem:[#allocation5 + $0x520] sm:$0xff]  ;;  %850 = vmatpush.msra.mxu0 %v81_v24 }
  0x25   :  { %v145_v26 = vld [vmem:[#allocation5 + $0x320] sm:$0xff]  ;;  %890 = vmatpush.msra.mxu2 %v209_v25 }
  0x26   :  { %v273_v27 = vld [vmem:[#allocation5 + $0x720] sm:$0xff]  ;;  %870 = vmatpush.msra.mxu1 %v145_v26 }
  0x27   :  { %v77_v28 = vld [vmem:[#allocation5 + $0x100] sm:$0xff]  ;;  %910 = vmatpush.msra.mxu3 %v273_v27 }
  0x28   :  { %v205_v29 = vld [vmem:[#allocation5 + $0x500] sm:$0xff]  ;;  %851 = vmatpush.msra.mxu0 %v77_v28 }
  0x29   :  { %v141_v30 = vld [vmem:[#allocation5 + $0x300] sm:$0xff]  ;;  %891 = vmatpush.msra.mxu2 %v205_v29 }
  0x2a   :  { %v269_v31 = vld [vmem:[#allocation5 + $0x700] sm:$0xff]  ;;  %871 = vmatpush.msra.mxu1 %v141_v30 }
  0x2b   :  { %v73_v32 = vld [vmem:[#allocation5 + $0xe0] sm:$0xff]  ;;  %911 = vmatpush.msra.mxu3 %v269_v31 }
  0x2c   :  { %v201_v33 = vld [vmem:[#allocation5 + $0x4e0] sm:$0xff]  ;;  %852 = vmatpush.msra.mxu0 %v73_v32 }
  0x2d   :  { %v137_v34 = vld [vmem:[#allocation5 + $0x2e0] sm:$0xff]  ;;  %892 = vmatpush.msra.mxu2 %v201_v33 }
  0x2e   :  { %v265_v35 = vld [vmem:[#allocation5 + $0x6e0] sm:$0xff]  ;;  %872 = vmatpush.msra.mxu1 %v137_v34 }
  0x2f   :  { %v69_v36 = vld [vmem:[#allocation5 + $0xc0] sm:$0xff]  ;;  %912 = vmatpush.msra.mxu3 %v265_v35 }
  0x30   :  { %v197_v37 = vld [vmem:[#allocation5 + $0x4c0] sm:$0xff]  ;;  %853 = vmatpush.msra.mxu0 %v69_v36 }
  0x31   :  { %v133_v38 = vld [vmem:[#allocation5 + $0x2c0] sm:$0xff]  ;;  %893 = vmatpush.msra.mxu2 %v197_v37 }
  0x32   :  { %v261_v39 = vld [vmem:[#allocation5 + $0x6c0] sm:$0xff]  ;;  %873 = vmatpush.msra.mxu1 %v133_v38 }
  0x33   :  { %v65_v40 = vld [vmem:[#allocation5 + $0xa0] sm:$0xff]  ;;  %913 = vmatpush.msra.mxu3 %v261_v39  ;;  %v43_v39 = vld [vmem:[#allocation2 + $0x8] sm:$0xff] }
  0x34   :  { %v193_v41 = vld [vmem:[#allocation5 + $0x4a0] sm:$0xff]  ;;  %854 = vmatpush.msra.mxu0 %v65_v40  ;;  %818 = vst [vmem:[#allocation1 + $0x20] ss:$4 sm:$0xff] %v43_v39 }
  0x35   :  { %v129_v42 = vld [vmem:[#allocation5 + $0x2a0] sm:$0xff]  ;;  %894 = vmatpush.msra.mxu2 %v193_v41 }
  0x36   :  { %v257_v43 = vld [vmem:[#allocation5 + $0x6a0] sm:$0xff]  ;;  %874 = vmatpush.msra.mxu1 %v129_v42  ;;  %v44_v42 = vld [vmem:[#allocation2 + $0x10] sm:$0xff] }
  0x37   :  { %v61_v44 = vld [vmem:[#allocation5 + $0x80] sm:$0xff]  ;;  %914 = vmatpush.msra.mxu3 %v257_v43  ;;  %v1954_v43 = vld.sshfl [vmem:[#allocation1 + $0x10] sm:$0xff pattern:$0x73625140] }
  0x38   :  { %v189_v45 = vld [vmem:[#allocation5 + $0x480] sm:$0xff]  ;;  %855 = vmatpush.msra.mxu0 %v61_v44 }
  0x39   :  { %v125_v46 = vld [vmem:[#allocation5 + $0x280] sm:$0xff]  ;;  %895 = vmatpush.msra.mxu2 %v189_v45  ;;  %v1958_v45 = vld.sshfl [vmem:[#allocation1 + $0x18] sm:$0xff pattern:$0x73625140] }
  0x3a   :  { %v253_v47 = vld [vmem:[#allocation5 + $0x680] sm:$0xff]  ;;  %875 = vmatpush.msra.mxu1 %v125_v46  ;;  %v1960_v46 = vld.sshfl [vmem:[#allocation1 + $0x8] sm:$0xff pattern:$0x73625140] }
  0x3b   :  { %v57_v48 = vld [vmem:[#allocation5 + $0x60] sm:$0xff]  ;;  %915 = vmatpush.msra.mxu3 %v253_v47 }
  0x3c   :  { %v185_v49 = vld [vmem:[#allocation5 + $0x460] sm:$0xff]  ;;  %856 = vmatpush.msra.mxu0 %v57_v48 }
  0x3d   :  { %v121_v50 = vld [vmem:[#allocation5 + $0x260] sm:$0xff]  ;;  %896 = vmatpush.msra.mxu2 %v185_v49 }
  0x3e   :  { %v249_v51 = vld [vmem:[#allocation5 + $0x660] sm:$0xff]  ;;  %876 = vmatpush.msra.mxu1 %v121_v50 }
  0x3f   :  { %v53_v52 = vld [vmem:[#allocation5 + $0x40] sm:$0xff]  ;;  %916 = vmatpush.msra.mxu3 %v249_v51 }
  0x40   :  { %v181_v53 = vld [vmem:[#allocation5 + $0x440] sm:$0xff]  ;;  %857 = vmatpush.msra.mxu0 %v53_v52 }
  0x41   :  { %v117_v54 = vld [vmem:[#allocation5 + $0x240] sm:$0xff]  ;;  %897 = vmatpush.msra.mxu2 %v181_v53 }
  0x42   :  { %v245_v55 = vld [vmem:[#allocation5 + $0x640] sm:$0xff]  ;;  %877 = vmatpush.msra.mxu1 %v117_v54 }
  0x43   :  { %v49_v56 = vld [vmem:[#allocation5 + $0x20] sm:$0xff]  ;;  %917 = vmatpush.msra.mxu3 %v245_v55 }
  0x44   :  { %v177_v57 = vld [vmem:[#allocation5 + $0x420] sm:$0xff]  ;;  %858 = vmatpush.msra.mxu0 %v49_v56 }
  0x45   :  { %v113_v58 = vld [vmem:[#allocation5 + $0x220] sm:$0xff]  ;;  %898 = vmatpush.msra.mxu2 %v177_v57 }
  0x46   :  { %v241_v59 = vld [vmem:[#allocation5 + $0x620] sm:$0xff]  ;;  %878 = vmatpush.msra.mxu1 %v113_v58 }
  0x47   :  { %v45_v60 = vld [vmem:[#allocation5] sm:$0xff]  ;;  %918 = vmatpush.msra.mxu3 %v241_v59 }
  0x48   :  { %v173_v61 = vld [vmem:[#allocation5 + $0x400] sm:$0xff]  ;;  %859 = vmatpush.msra.mxu0 %v45_v60 }
  0x49   :  { %v361_v62 = vld [vmem:[#allocation5 + $0x9e0] sm:$0xff]  ;;  %899 = vmatpush.msra.mxu2 %v173_v61 }
  0x4a   :  { %v489_v63 = vld [vmem:[#allocation5 + $0xde0] sm:$0xff]  ;;  %924 = vmatpush.msrb.mxu0 %v361_v62  ;;  %900 = vmatmul.f32.vlgmr.msra.gmra.mxu2 %v1954_v43 }
  0x4b   :  { %v109_v0 = vld [vmem:[#allocation5 + $0x200] sm:$0xff]  ;;  %964 = vmatpush.msrb.mxu2 %v489_v63 }
  0x4c   :  { %v237_v1 = vld [vmem:[#allocation5 + $0x600] sm:$0xff]  ;;  %879 = vmatpush.msra.mxu1 %v109_v0 }
  0x4d   :  { %v357_v2 = vld [vmem:[#allocation5 + $0x9c0] sm:$0xff]  ;;  %919 = vmatpush.msra.mxu3 %v237_v1  ;;  %880 = vmatmul.f32.vlgmr.msra.gmra.mxu1 %v1960_v46 }
  0x4e   :  { %v425_v3 = vld [vmem:[#allocation5 + $0xbe0] sm:$0xff]  ;;  %925 = vmatpush.msrb.mxu0 %v357_v2  ;;  %920 = vmatmul.f32.vlgmr.msra.gmra.mxu3 %v1958_v45 }
  0x4f   :  { %v485_v4 = vld [vmem:[#allocation5 + $0xdc0] sm:$0xff]  ;;  %944 = vmatpush.msrb.mxu1 %v425_v3 }
  0x50   :  { %v553_v5 = vld [vmem:[#allocation5 + $0xfe0] sm:$0xff]  ;;  %965 = vmatpush.msrb.mxu2 %v485_v4 }
  0x51   :  { %v353_v6 = vld [vmem:[#allocation5 + $0x9a0] sm:$0xff]  ;;  %984 = vmatpush.msrb.mxu3 %v553_v5 }
  0x52   :  { %v421_v7 = vld [vmem:[#allocation5 + $0xbc0] sm:$0xff]  ;;  %926 = vmatpush.msrb.mxu0 %v353_v6 }
  0x53   :  { %v481_v8 = vld [vmem:[#allocation5 + $0xda0] sm:$0xff]  ;;  %945 = vmatpush.msrb.mxu1 %v421_v7 }
  0x54   :  { %v549_v9 = vld [vmem:[#allocation5 + $0xfc0] sm:$0xff]  ;;  %966 = vmatpush.msrb.mxu2 %v481_v8 }
  0x55   :  { %v349_v10 = vld [vmem:[#allocation5 + $0x980] sm:$0xff]  ;;  %985 = vmatpush.msrb.mxu3 %v549_v9 }
  0x56   :  { %v417_v11 = vld [vmem:[#allocation5 + $0xba0] sm:$0xff]  ;;  %927 = vmatpush.msrb.mxu0 %v349_v10 }
  0x57   :  { %v477_v12 = vld [vmem:[#allocation5 + $0xd80] sm:$0xff]  ;;  %946 = vmatpush.msrb.mxu1 %v417_v11 }
  0x58   :  { %v545_v13 = vld [vmem:[#allocation5 + $0xfa0] sm:$0xff]  ;;  %967 = vmatpush.msrb.mxu2 %v477_v12 }
  0x59   :  { %v345_v14 = vld [vmem:[#allocation5 + $0x960] sm:$0xff]  ;;  %986 = vmatpush.msrb.mxu3 %v545_v13 }
  0x5a   :  { %v413_v15 = vld [vmem:[#allocation5 + $0xb80] sm:$0xff]  ;;  %928 = vmatpush.msrb.mxu0 %v345_v14 }
  0x5b   :  { %v473_v16 = vld [vmem:[#allocation5 + $0xd60] sm:$0xff]  ;;  %947 = vmatpush.msrb.mxu1 %v413_v15 }
  0x5c   :  { %v541_v17 = vld [vmem:[#allocation5 + $0xf80] sm:$0xff]  ;;  %968 = vmatpush.msrb.mxu2 %v473_v16 }
  0x5d   :  { %v341_v18 = vld [vmem:[#allocation5 + $0x940] sm:$0xff]  ;;  %987 = vmatpush.msrb.mxu3 %v541_v17  ;;  %v1966_v17 = vld.sshfl [vmem:[#allocation1 + $0x30] sm:$0xff pattern:$0x73625140] }
  0x5e   :  { %v409_v19 = vld [vmem:[#allocation5 + $0xb60] sm:$0xff]  ;;  %929 = vmatpush.msrb.mxu0 %v341_v18 }
  0x5f   :  { %v469_v20 = vld [vmem:[#allocation5 + $0xd40] sm:$0xff]  ;;  %948 = vmatpush.msrb.mxu1 %v409_v19 }
  0x60   :  { %v537_v21 = vld [vmem:[#allocation5 + $0xf60] sm:$0xff]  ;;  %969 = vmatpush.msrb.mxu2 %v469_v20 }
  0x61   :  { %v337_v23 = vld [vmem:[#allocation5 + $0x920] sm:$0xff]  ;;  %988 = vmatpush.msrb.mxu3 %v537_v21 }
  0x62   :  { %v405_v24 = vld [vmem:[#allocation5 + $0xb40] sm:$0xff]  ;;  %930 = vmatpush.msrb.mxu0 %v337_v23  ;;  %v1971_v23 = vld.sshfl [vmem:[#allocation1 + $0x38] sm:$0xff pattern:$0x73625140] }
  0x63   :  { %v465_v25 = vld [vmem:[#allocation5 + $0xd20] sm:$0xff]  ;;  %949 = vmatpush.msrb.mxu1 %v405_v24 }
  0x64   :  { %v533_v26 = vld [vmem:[#allocation5 + $0xf40] sm:$0xff]  ;;  %970 = vmatpush.msrb.mxu2 %v465_v25 }
  0x65   :  { %v333_v27 = vld [vmem:[#allocation5 + $0x900] sm:$0xff]  ;;  %989 = vmatpush.msrb.mxu3 %v533_v26 }
  0x66   :  { %v401_v28 = vld [vmem:[#allocation5 + $0xb20] sm:$0xff]  ;;  %931 = vmatpush.msrb.mxu0 %v333_v27 }
  0x67   :  { %v461_v29 = vld [vmem:[#allocation5 + $0xd00] sm:$0xff]  ;;  %950 = vmatpush.msrb.mxu1 %v401_v28  ;;  %v1974_v28 = vld.sshfl [vmem:[#allocation1 + $0x28] sm:$0xff pattern:$0x73625140] }
  0x68   :  { %v529_v30 = vld [vmem:[#allocation5 + $0xf20] sm:$0xff]  ;;  %971 = vmatpush.msrb.mxu2 %v461_v29 }
  0x69   :  { %v329_v31 = vld [vmem:[#allocation5 + $0x8e0] sm:$0xff]  ;;  %990 = vmatpush.msrb.mxu3 %v529_v30 }
  0x6a   :  { %v397_v32 = vld [vmem:[#allocation5 + $0xb00] sm:$0xff]  ;;  %932 = vmatpush.msrb.mxu0 %v329_v31 }
  0x6b   :  { %v457_v33 = vld [vmem:[#allocation5 + $0xce0] sm:$0xff]  ;;  %951 = vmatpush.msrb.mxu1 %v397_v32 }
  0x6c   :  { %v525_v34 = vld [vmem:[#allocation5 + $0xf00] sm:$0xff]  ;;  %972 = vmatpush.msrb.mxu2 %v457_v33 }
  0x6d   :  { %v325_v35 = vld [vmem:[#allocation5 + $0x8c0] sm:$0xff]  ;;  %991 = vmatpush.msrb.mxu3 %v525_v34 }
  0x6e   :  { %v393_v36 = vld [vmem:[#allocation5 + $0xae0] sm:$0xff]  ;;  %933 = vmatpush.msrb.mxu0 %v325_v35 }
  0x6f   :  { %v453_v37 = vld [vmem:[#allocation5 + $0xcc0] sm:$0xff]  ;;  %952 = vmatpush.msrb.mxu1 %v393_v36 }
  0x70   :  { %v521_v38 = vld [vmem:[#allocation5 + $0xee0] sm:$0xff]  ;;  %973 = vmatpush.msrb.mxu2 %v453_v37 }
  0x71   :  { %v321_v40 = vld [vmem:[#allocation5 + $0x8a0] sm:$0xff]  ;;  %992 = vmatpush.msrb.mxu3 %v521_v38 }
  0x72   :  { %v389_v41 = vld [vmem:[#allocation5 + $0xac0] sm:$0xff]  ;;  %934 = vmatpush.msrb.mxu0 %v321_v40 }
  0x73   :  { %v1956_v44 = vld.sshfl [vmem:[#allocation1] sm:$0xff pattern:$0x73625140]  ;;  %953 = vmatpush.msrb.mxu1 %v389_v41 }
  0x74   :  { %v449_v47 = vld [vmem:[#allocation5 + $0xca0] sm:$0xff]  ;;  %827 = vst [vmem:[#allocation1] ss:$4 sm:$0xff] %v44_v42  ;;  %860 = vmatmul.f32.vlgmr.msra.gmra.mxu0 %v1956_v44 }
  0x75   :  { %v517_v48 = vld [vmem:[#allocation5 + $0xec0] sm:$0xff]  ;;  %974 = vmatpush.msrb.mxu2 %v449_v47 }
  0x76   :  { %v317_v49 = vld [vmem:[#allocation5 + $0x880] sm:$0xff]  ;;  %993 = vmatpush.msrb.mxu3 %v517_v48 }
  0x77   :  { %v385_v50 = vld [vmem:[#allocation5 + $0xaa0] sm:$0xff]  ;;  %935 = vmatpush.msrb.mxu0 %v317_v49 }
  0x78   :  { %v445_v51 = vld [vmem:[#allocation5 + $0xc80] sm:$0xff]  ;;  %954 = vmatpush.msrb.mxu1 %v385_v50 }
  0x79   :  { %v513_v52 = vld [vmem:[#allocation5 + $0xea0] sm:$0xff]  ;;  %975 = vmatpush.msrb.mxu2 %v445_v51 }
  0x7a   :  { %v313_v53 = vld [vmem:[#allocation5 + $0x860] sm:$0xff]  ;;  %994 = vmatpush.msrb.mxu3 %v513_v52 }
  0x7b   :  { %v381_v54 = vld [vmem:[#allocation5 + $0xa80] sm:$0xff]  ;;  %936 = vmatpush.msrb.mxu0 %v313_v53 }
  0x7c   :  { %v441_v55 = vld [vmem:[#allocation5 + $0xc60] sm:$0xff]  ;;  %955 = vmatpush.msrb.mxu1 %v381_v54 }
  0x7d   :  { %v509_v56 = vld [vmem:[#allocation5 + $0xe80] sm:$0xff]  ;;  %976 = vmatpush.msrb.mxu2 %v441_v55 }
  0x7e   :  { %v309_v57 = vld [vmem:[#allocation5 + $0x840] sm:$0xff]  ;;  %995 = vmatpush.msrb.mxu3 %v509_v56 }
  0x7f   :  { %v377_v58 = vld [vmem:[#allocation5 + $0xa60] sm:$0xff]  ;;  %937 = vmatpush.msrb.mxu0 %v309_v57 }
  0x80   :  { %v437_v59 = vld [vmem:[#allocation5 + $0xc40] sm:$0xff]  ;;  %956 = vmatpush.msrb.mxu1 %v377_v58 }
  0x81   :  { %v505_v60 = vld [vmem:[#allocation5 + $0xe60] sm:$0xff]  ;;  %977 = vmatpush.msrb.mxu2 %v437_v59 }
  0x82   :  { %v305_v61 = vld [vmem:[#allocation5 + $0x820] sm:$0xff]  ;;  %996 = vmatpush.msrb.mxu3 %v505_v60 }
  0x83   :  { %v373_v62 = vld [vmem:[#allocation5 + $0xa40] sm:$0xff]  ;;  %938 = vmatpush.msrb.mxu0 %v305_v61 }
  0x84   :  { %v433_v63 = vld [vmem:[#allocation5 + $0xc20] sm:$0xff]  ;;  %957 = vmatpush.msrb.mxu1 %v373_v62 }
  0x85   :  { %v501_v0 = vld [vmem:[#allocation5 + $0xe40] sm:$0xff]  ;;  %978 = vmatpush.msrb.mxu2 %v433_v63 }
  0x86   :  { %v301_v1 = vld [vmem:[#allocation5 + $0x800] sm:$0xff]  ;;  %997 = vmatpush.msrb.mxu3 %v501_v0 }
  0x87   :  { %v369_v2 = vld [vmem:[#allocation5 + $0xa20] sm:$0xff]  ;;  %939 = vmatpush.msrb.mxu0 %v301_v1 }
  0x88   :  { %v429_v3 = vld [vmem:[#allocation5 + $0xc00] sm:$0xff]  ;;  %958 = vmatpush.msrb.mxu1 %v369_v2 }
  0x89   :  { %v497_v4 = vld [vmem:[#allocation5 + $0xe20] sm:$0xff]  ;;  %979 = vmatpush.msrb.mxu2 %v429_v3 }
  0x8a   :  { %v617_v5 = vld [vmem:[#allocation5 + $0x11e0] sm:$0xff]  ;;  %998 = vmatpush.msrb.mxu3 %v497_v4  ;;  %980 = vmatmul.f32.vlgmr.msrb.gmra.mxu2 %v1966_v17 }
  0x8b   :  { %v745_v6 = vld [vmem:[#allocation5 + $0x15e0] sm:$0xff]  ;;  %1004 = vmatpush.msra.mxu0 %v617_v5 }
  0x8c   :  { %v365_v7 = vld [vmem:[#allocation5 + $0xa00] sm:$0xff]  ;;  %1044 = vmatpush.msra.mxu2 %v745_v6 }
  0x8d   :  { %v493_v8 = vld [vmem:[#allocation5 + $0xe00] sm:$0xff]  ;;  %959 = vmatpush.msrb.mxu1 %v365_v7 }
  0x8e   :  { %v613_v9 = vld [vmem:[#allocation5 + $0x11c0] sm:$0xff]  ;;  %999 = vmatpush.msrb.mxu3 %v493_v8  ;;  %960 = vmatmul.f32.vlgmr.msrb.gmra.mxu1 %v1974_v28 }
  0x8f   :  { %v681_v10 = vld [vmem:[#allocation5 + $0x13e0] sm:$0xff]  ;;  %1005 = vmatpush.msra.mxu0 %v613_v9  ;;  %1000 = vmatmul.f32.vlgmr.msrb.gmra.mxu3 %v1971_v23 }
  0x90   :  { %v741_v11 = vld [vmem:[#allocation5 + $0x15c0] sm:$0xff]  ;;  %1024 = vmatpush.msra.mxu1 %v681_v10 }
  0x91   :  { %v809_v12 = vld [vmem:[#allocation5 + $0x17e0] sm:$0xff]  ;;  %1045 = vmatpush.msra.mxu2 %v741_v11 }
  0x92   :  { %v609_v13 = vld [vmem:[#allocation5 + $0x11a0] sm:$0xff]  ;;  %1064 = vmatpush.msra.mxu3 %v809_v12 }
  0x93   :  { %v677_v14 = vld [vmem:[#allocation5 + $0x13c0] sm:$0xff]  ;;  %1006 = vmatpush.msra.mxu0 %v609_v13 }
  0x94   :  { %v737_v15 = vld [vmem:[#allocation5 + $0x15a0] sm:$0xff]  ;;  %1025 = vmatpush.msra.mxu1 %v677_v14  ;;  %v1980_v14 = vld.sshfl [vmem:[#allocation1 + $0x10] sm:$0xff pattern:$0x73625140] }
  0x95   :  { %v805_v16 = vld [vmem:[#allocation5 + $0x17c0] sm:$0xff]  ;;  %1046 = vmatpush.msra.mxu2 %v737_v15  ;;  %v106_v15 = vld [vmem:[#allocation5 + $0x1e8] sm:$0xff] }
  0x96   :  { %v605_v18 = vld [vmem:[#allocation5 + $0x1180] sm:$0xff]  ;;  %1065 = vmatpush.msra.mxu3 %v805_v16  ;;  %v234_v16 = vld [vmem:[#allocation5 + $0x5e8] sm:$0xff] }
  0x97   :  { %v673_v19 = vld [vmem:[#allocation5 + $0x13a0] sm:$0xff]  ;;  %1007 = vmatpush.msra.mxu0 %v605_v18 }
  0x98   :  { %v733_v20 = vld [vmem:[#allocation5 + $0x1580] sm:$0xff]  ;;  %1026 = vmatpush.msra.mxu1 %v673_v19 }
  0x99   :  { %v801_v21 = vld [vmem:[#allocation5 + $0x17a0] sm:$0xff]  ;;  %1047 = vmatpush.msra.mxu2 %v733_v20  ;;  %v1984_v20 = vld.sshfl [vmem:[#allocation1 + $0x8] sm:$0xff pattern:$0x73625140] }
  0x9a   :  { %v1968_v22 = vld.sshfl [vmem:[#allocation1 + $0x20] sm:$0xff pattern:$0x73625140]  ;;  %1066 = vmatpush.msra.mxu3 %v801_v21  ;;  %v1986_v21 = vld.sshfl [vmem:[#allocation1 + $0x18] sm:$0xff pattern:$0x73625140] }
  0x9b   :  { %v601_v24 = vld [vmem:[#allocation5 + $0x1160] sm:$0xff]  ;;  %940 = vmatmul.f32.vlgmr.msrb.gmra.mxu0 %v1968_v22 }
  0x9c   :  { %v669_v25 = vld [vmem:[#allocation5 + $0x1380] sm:$0xff]  ;;  %1008 = vmatpush.msra.mxu0 %v601_v24  ;;  %v102_v24 = vld [vmem:[#allocation5 + $0x1c8] sm:$0xff] }
  0x9d   :  { %v729_v26 = vld [vmem:[#allocation5 + $0x1560] sm:$0xff]  ;;  %1027 = vmatpush.msra.mxu1 %v669_v25  ;;  %v170_v25 = vld [vmem:[#allocation5 + $0x3e8] sm:$0xff] }
  0x9e   :  { %v797_v27 = vld [vmem:[#allocation5 + $0x1780] sm:$0xff]  ;;  %1048 = vmatpush.msra.mxu2 %v729_v26  ;;  %v230_v26 = vld [vmem:[#allocation5 + $0x5c8] sm:$0xff] }
  0x9f   :  { %v597_v29 = vld [vmem:[#allocation5 + $0x1140] sm:$0xff]  ;;  %1067 = vmatpush.msra.mxu3 %v797_v27  ;;  %v298_v27 = vld [vmem:[#allocation5 + $0x7e8] sm:$0xff] }
  0xa0   :  { %v665_v30 = vld [vmem:[#allocation5 + $0x1360] sm:$0xff]  ;;  %1009 = vmatpush.msra.mxu0 %v597_v29  ;;  %v98_v29 = vld [vmem:[#allocation5 + $0x1a8] sm:$0xff] }
  0xa1   :  { %v725_v31 = vld [vmem:[#allocation5 + $0x1540] sm:$0xff]  ;;  %1028 = vmatpush.msra.mxu1 %v665_v30  ;;  %v166_v30 = vld [vmem:[#allocation5 + $0x3c8] sm:$0xff] }
  0xa2   :  { %v793_v32 = vld [vmem:[#allocation5 + $0x1760] sm:$0xff]  ;;  %1049 = vmatpush.msra.mxu2 %v725_v31  ;;  %v226_v31 = vld [vmem:[#allocation5 + $0x5a8] sm:$0xff] }
  0xa3   :  { %v593_v33 = vld [vmem:[#allocation5 + $0x1120] sm:$0xff]  ;;  %1068 = vmatpush.msra.mxu3 %v793_v32  ;;  %v294_v32 = vld [vmem:[#allocation5 + $0x7c8] sm:$0xff] }
  0xa4   :  { %v661_v34 = vld [vmem:[#allocation5 + $0x1340] sm:$0xff]  ;;  %1010 = vmatpush.msra.mxu0 %v593_v33  ;;  %v94_v33 = vld [vmem:[#allocation5 + $0x188] sm:$0xff] }
  0xa5   :  { %v721_v35 = vld [vmem:[#allocation5 + $0x1520] sm:$0xff]  ;;  %1029 = vmatpush.msra.mxu1 %v661_v34  ;;  %v162_v34 = vld [vmem:[#allocation5 + $0x3a8] sm:$0xff] }
  0xa6   :  { %v789_v36 = vld [vmem:[#allocation5 + $0x1740] sm:$0xff]  ;;  %1050 = vmatpush.msra.mxu2 %v721_v35  ;;  %v222_v35 = vld [vmem:[#allocation5 + $0x588] sm:$0xff] }
  0xa7   :  { %v589_v37 = vld [vmem:[#allocation5 + $0x1100] sm:$0xff]  ;;  %1069 = vmatpush.msra.mxu3 %v789_v36  ;;  %v290_v36 = vld [vmem:[#allocation5 + $0x7a8] sm:$0xff] }
  0xa8   :  { %v657_v38 = vld [vmem:[#allocation5 + $0x1320] sm:$0xff]  ;;  %1011 = vmatpush.msra.mxu0 %v589_v37  ;;  %v90_v37 = vld [vmem:[#allocation5 + $0x168] sm:$0xff] }
  0xa9   :  { %v717_v39 = vld [vmem:[#allocation5 + $0x1500] sm:$0xff]  ;;  %1030 = vmatpush.msra.mxu1 %v657_v38  ;;  %v158_v38 = vld [vmem:[#allocation5 + $0x388] sm:$0xff] }
  0xaa   :  { %v785_v40 = vld [vmem:[#allocation5 + $0x1720] sm:$0xff]  ;;  %1051 = vmatpush.msra.mxu2 %v717_v39  ;;  %v218_v39 = vld [vmem:[#allocation5 + $0x568] sm:$0xff] }
  0xab   :  { %v585_v41 = vld [vmem:[#allocation5 + $0x10e0] sm:$0xff]  ;;  %1070 = vmatpush.msra.mxu3 %v785_v40  ;;  %v286_v40 = vld [vmem:[#allocation5 + $0x788] sm:$0xff] }
  0xac   :  { %v653_v42 = vld [vmem:[#allocation5 + $0x1300] sm:$0xff]  ;;  %1012 = vmatpush.msra.mxu0 %v585_v41  ;;  %v86_v41 = vld [vmem:[#allocation5 + $0x148] sm:$0xff] }
  0xad   :  { %v713_v47 = vld [vmem:[#allocation5 + $0x14e0] sm:$0xff]  ;;  %1031 = vmatpush.msra.mxu1 %v653_v42  ;;  %v154_v42 = vld [vmem:[#allocation5 + $0x368] sm:$0xff] }
  0xae   :  { %v781_v48 = vld [vmem:[#allocation5 + $0x1700] sm:$0xff]  ;;  %1052 = vmatpush.msra.mxu2 %v713_v47  ;;  %v214_v47 = vld [vmem:[#allocation5 + $0x548] sm:$0xff] }
  0xaf   :  { %v581_v49 = vld [vmem:[#allocation5 + $0x10c0] sm:$0xff]  ;;  %1071 = vmatpush.msra.mxu3 %v781_v48  ;;  %v282_v48 = vld [vmem:[#allocation5 + $0x768] sm:$0xff] }
  0xb0   :  { %v649_v50 = vld [vmem:[#allocation5 + $0x12e0] sm:$0xff]  ;;  %1013 = vmatpush.msra.mxu0 %v581_v49  ;;  %v82_v49 = vld [vmem:[#allocation5 + $0x128] sm:$0xff] }
  0xb1   :  { %v709_v51 = vld [vmem:[#allocation5 + $0x14c0] sm:$0xff]  ;;  %1032 = vmatpush.msra.mxu1 %v649_v50  ;;  %v150_v50 = vld [vmem:[#allocation5 + $0x348] sm:$0xff] }
  0xb2   :  { %v777_v52 = vld [vmem:[#allocation5 + $0x16e0] sm:$0xff]  ;;  %1053 = vmatpush.msra.mxu2 %v709_v51  ;;  %v210_v51 = vld [vmem:[#allocation5 + $0x528] sm:$0xff] }
  0xb3   :  { %v577_v53 = vld [vmem:[#allocation5 + $0x10a0] sm:$0xff]  ;;  %1072 = vmatpush.msra.mxu3 %v777_v52  ;;  %v278_v52 = vld [vmem:[#allocation5 + $0x748] sm:$0xff] }
  0xb4   :  { %v645_v54 = vld [vmem:[#allocation5 + $0x12c0] sm:$0xff]  ;;  %1014 = vmatpush.msra.mxu0 %v577_v53  ;;  %v78_v53 = vld [vmem:[#allocation5 + $0x108] sm:$0xff] }
  0xb5   :  { %v705_v55 = vld [vmem:[#allocation5 + $0x14a0] sm:$0xff]  ;;  %1033 = vmatpush.msra.mxu1 %v645_v54  ;;  %v146_v54 = vld [vmem:[#allocation5 + $0x328] sm:$0xff] }
  0xb6   :  { %v773_v56 = vld [vmem:[#allocation5 + $0x16c0] sm:$0xff]  ;;  %1054 = vmatpush.msra.mxu2 %v705_v55  ;;  %v206_v55 = vld [vmem:[#allocation5 + $0x508] sm:$0xff] }
  0xb7   :  { %v573_v57 = vld [vmem:[#allocation5 + $0x1080] sm:$0xff]  ;;  %1073 = vmatpush.msra.mxu3 %v773_v56  ;;  %v274_v56 = vld [vmem:[#allocation5 + $0x728] sm:$0xff] }
  0xb8   :  { %v641_v58 = vld [vmem:[#allocation5 + $0x12a0] sm:$0xff]  ;;  %1015 = vmatpush.msra.mxu0 %v573_v57  ;;  %v74_v57 = vld [vmem:[#allocation5 + $0xe8] sm:$0xff] }
  0xb9   :  { %v701_v59 = vld [vmem:[#allocation5 + $0x1480] sm:$0xff]  ;;  %1034 = vmatpush.msra.mxu1 %v641_v58  ;;  %v142_v58 = vld [vmem:[#allocation5 + $0x308] sm:$0xff] }
  0xba   :  { %v769_v60 = vld [vmem:[#allocation5 + $0x16a0] sm:$0xff]  ;;  %1055 = vmatpush.msra.mxu2 %v701_v59  ;;  %v202_v59 = vld [vmem:[#allocation5 + $0x4e8] sm:$0xff] }
  0xbb   :  { %v569_v61 = vld [vmem:[#allocation5 + $0x1060] sm:$0xff]  ;;  %1074 = vmatpush.msra.mxu3 %v769_v60  ;;  %v270_v60 = vld [vmem:[#allocation5 + $0x708] sm:$0xff] }
  0xbc   :  { %v637_v62 = vld [vmem:[#allocation5 + $0x1280] sm:$0xff]  ;;  %1016 = vmatpush.msra.mxu0 %v569_v61  ;;  %v70_v61 = vld [vmem:[#allocation5 + $0xc8] sm:$0xff] }
  0xbd   :  { %v697_v63 = vld [vmem:[#allocation5 + $0x1460] sm:$0xff]  ;;  %1035 = vmatpush.msra.mxu1 %v637_v62  ;;  %v138_v62 = vld [vmem:[#allocation5 + $0x2e8] sm:$0xff] }
  0xbe   :  { %v765_v0 = vld [vmem:[#allocation5 + $0x1680] sm:$0xff]  ;;  %1056 = vmatpush.msra.mxu2 %v697_v63  ;;  %v198_v63 = vld [vmem:[#allocation5 + $0x4c8] sm:$0xff] }
  0xbf   :  { %v565_v1 = vld [vmem:[#allocation5 + $0x1040] sm:$0xff]  ;;  %1075 = vmatpush.msra.mxu3 %v765_v0  ;;  %v266_v0 = vld [vmem:[#allocation5 + $0x6e8] sm:$0xff] }
  0xc0   :  { %v633_v2 = vld [vmem:[#allocation5 + $0x1260] sm:$0xff]  ;;  %1017 = vmatpush.msra.mxu0 %v565_v1  ;;  %v66_v1 = vld [vmem:[#allocation5 + $0xa8] sm:$0xff] }
  0xc1   :  { %v693_v3 = vld [vmem:[#allocation5 + $0x1440] sm:$0xff]  ;;  %1036 = vmatpush.msra.mxu1 %v633_v2  ;;  %v134_v2 = vld [vmem:[#allocation5 + $0x2c8] sm:$0xff] }
  0xc2   :  { %v761_v4 = vld [vmem:[#allocation5 + $0x1660] sm:$0xff]  ;;  %1057 = vmatpush.msra.mxu2 %v693_v3  ;;  %v194_v3 = vld [vmem:[#allocation5 + $0x4a8] sm:$0xff] }
  0xc3   :  { %v561_v5 = vld [vmem:[#allocation5 + $0x1020] sm:$0xff]  ;;  %1076 = vmatpush.msra.mxu3 %v761_v4  ;;  %v262_v4 = vld [vmem:[#allocation5 + $0x6c8] sm:$0xff] }
  0xc4   :  { %v629_v6 = vld [vmem:[#allocation5 + $0x1240] sm:$0xff]  ;;  %1018 = vmatpush.msra.mxu0 %v561_v5  ;;  %v62_v5 = vld [vmem:[#allocation5 + $0x88] sm:$0xff] }
  0xc5   :  { %v689_v7 = vld [vmem:[#allocation5 + $0x1420] sm:$0xff]  ;;  %1037 = vmatpush.msra.mxu1 %v629_v6  ;;  %v130_v6 = vld [vmem:[#allocation5 + $0x2a8] sm:$0xff] }
  0xc6   :  { %v757_v8 = vld [vmem:[#allocation5 + $0x1640] sm:$0xff]  ;;  %1058 = vmatpush.msra.mxu2 %v689_v7  ;;  %v190_v7 = vld [vmem:[#allocation5 + $0x488] sm:$0xff] }
  0xc7   :  { %v557_v9 = vld [vmem:[#allocation5 + $0x1000] sm:$0xff]  ;;  %1077 = vmatpush.msra.mxu3 %v757_v8  ;;  %v258_v8 = vld [vmem:[#allocation5 + $0x6a8] sm:$0xff] }
  0xc8   :  { %v625_v10 = vld [vmem:[#allocation5 + $0x1220] sm:$0xff]  ;;  %1019 = vmatpush.msra.mxu0 %v557_v9  ;;  %v58_v9 = vld [vmem:[#allocation5 + $0x68] sm:$0xff] }
  0xc9   :  { %v685_v11 = vld [vmem:[#allocation5 + $0x1400] sm:$0xff]  ;;  %1038 = vmatpush.msra.mxu1 %v625_v10  ;;  %v126_v10 = vld [vmem:[#allocation5 + $0x288] sm:$0xff] }
  0xca   :  { %v753_v12 = vld [vmem:[#allocation5 + $0x1620] sm:$0xff]  ;;  %1059 = vmatpush.msra.mxu2 %v685_v11  ;;  %1084 = vmatpush.msrb.mxu0 %v106_v15  ;;  %v186_v11 = vld [vmem:[#allocation5 + $0x468] sm:$0xff] }
  0xcb   :  { %v1978_v13 = vld.sshfl [vmem:[#allocation1] sm:$0xff pattern:$0x73625140]  ;;  %1078 = vmatpush.msra.mxu3 %v753_v12  ;;  %1060 = vmatmul.f32.vlgmr.msra.gmra.mxu2 %v1980_v14  ;;  %v254_v12 = vld [vmem:[#allocation5 + $0x688] sm:$0xff] }
  0xcc   :  { %v621_v18 = vld [vmem:[#allocation5 + $0x1200] sm:$0xff]  ;;  %1020 = vmatmul.f32.vlgmr.msra.gmra.mxu0 %v1978_v13  ;;  %1124 = vmatpush.msrb.mxu2 %v234_v16  ;;  %v54_v15 = vld [vmem:[#allocation5 + $0x48] sm:$0xff] }
  0xcd   :  { %v749_v19 = vld [vmem:[#allocation5 + $0x1600] sm:$0xff]  ;;  %1039 = vmatpush.msra.mxu1 %v621_v18  ;;  %1085 = vmatpush.msrb.mxu0 %v102_v24  ;;  %v122_v16 = vld [vmem:[#allocation5 + $0x268] sm:$0xff] }
  0xce   :  { %1079 = vmatpush.msra.mxu3 %v749_v19  ;;  %1040 = vmatmul.f32.vlgmr.msra.gmra.mxu1 %v1984_v20  ;;  %v182_v18 = vld [vmem:[#allocation5 + $0x448] sm:$0xff] }
  0xcf   :  { %1080 = vmatmul.f32.vlgmr.msra.gmra.mxu3 %v1986_v21  ;;  %1104 = vmatpush.msrb.mxu1 %v170_v25  ;;  %v250_v19 = vld [vmem:[#allocation5 + $0x668] sm:$0xff] }
  0xd0   :  { %1125 = vmatpush.msrb.mxu2 %v230_v26  ;;  %1144 = vmatpush.msrb.mxu3 %v298_v27  ;;  %v50_v24 = vld [vmem:[#allocation5 + $0x28] sm:$0xff] }
  0xd1   :  { %1086 = vmatpush.msrb.mxu0 %v98_v29  ;;  %1105 = vmatpush.msrb.mxu1 %v166_v30  ;;  %v118_v25 = vld [vmem:[#allocation5 + $0x248] sm:$0xff] }
  0xd2   :  { %1126 = vmatpush.msrb.mxu2 %v226_v31  ;;  %1145 = vmatpush.msrb.mxu3 %v294_v32  ;;  %v178_v26 = vld [vmem:[#allocation5 + $0x428] sm:$0xff] }
  0xd3   :  { %1087 = vmatpush.msrb.mxu0 %v94_v33  ;;  %1106 = vmatpush.msrb.mxu1 %v162_v34  ;;  %v246_v27 = vld [vmem:[#allocation5 + $0x648] sm:$0xff] }
  0xd4   :  { %1127 = vmatpush.msrb.mxu2 %v222_v35  ;;  %1146 = vmatpush.msrb.mxu3 %v290_v36  ;;  %v46_v29 = vld [vmem:[#allocation5 + $0x8] sm:$0xff] }
  0xd5   :  { %1088 = vmatpush.msrb.mxu0 %v90_v37  ;;  %1107 = vmatpush.msrb.mxu1 %v158_v38  ;;  %v114_v30 = vld [vmem:[#allocation5 + $0x228] sm:$0xff] }
  0xd6   :  { %1128 = vmatpush.msrb.mxu2 %v218_v39  ;;  %1147 = vmatpush.msrb.mxu3 %v286_v40  ;;  %v174_v31 = vld [vmem:[#allocation5 + $0x408] sm:$0xff] }
  0xd7   :  { %1089 = vmatpush.msrb.mxu0 %v86_v41  ;;  %1108 = vmatpush.msrb.mxu1 %v154_v42  ;;  %v242_v32 = vld [vmem:[#allocation5 + $0x628] sm:$0xff] }
  0xd8   :  { %1129 = vmatpush.msrb.mxu2 %v214_v47  ;;  %1148 = vmatpush.msrb.mxu3 %v282_v48  ;;  %v362_v33 = vld [vmem:[#allocation5 + $0x9e8] sm:$0xff] }
  0xd9   :  { %1090 = vmatpush.msrb.mxu0 %v82_v49  ;;  %1109 = vmatpush.msrb.mxu1 %v150_v50  ;;  %v490_v34 = vld [vmem:[#allocation5 + $0xde8] sm:$0xff] }
  0xda   :  { %1130 = vmatpush.msrb.mxu2 %v210_v51  ;;  %1149 = vmatpush.msrb.mxu3 %v278_v52  ;;  %v110_v35 = vld [vmem:[#allocation5 + $0x208] sm:$0xff] }
  0xdb   :  { %1091 = vmatpush.msrb.mxu0 %v78_v53  ;;  %1110 = vmatpush.msrb.mxu1 %v146_v54  ;;  %v238_v36 = vld [vmem:[#allocation5 + $0x608] sm:$0xff] }
  0xdc   :  { %1131 = vmatpush.msrb.mxu2 %v206_v55  ;;  %1150 = vmatpush.msrb.mxu3 %v274_v56  ;;  %v358_v37 = vld [vmem:[#allocation5 + $0x9c8] sm:$0xff] }
  0xdd   :  { %1092 = vmatpush.msrb.mxu0 %v74_v57  ;;  %1111 = vmatpush.msrb.mxu1 %v142_v58  ;;  %v426_v38 = vld [vmem:[#allocation5 + $0xbe8] sm:$0xff] }
  0xde   :  { %1132 = vmatpush.msrb.mxu2 %v202_v59  ;;  %1151 = vmatpush.msrb.mxu3 %v270_v60  ;;  %v486_v39 = vld [vmem:[#allocation5 + $0xdc8] sm:$0xff] }
  0xdf   :  { %1093 = vmatpush.msrb.mxu0 %v70_v61  ;;  %1112 = vmatpush.msrb.mxu1 %v138_v62  ;;  %v554_v40 = vld [vmem:[#allocation5 + $0xfe8] sm:$0xff] }
  0xe0   :  { %1133 = vmatpush.msrb.mxu2 %v198_v63  ;;  %1152 = vmatpush.msrb.mxu3 %v266_v0  ;;  %v354_v41 = vld [vmem:[#allocation5 + $0x9a8] sm:$0xff] }
  0xe1   :  { %1094 = vmatpush.msrb.mxu0 %v66_v1  ;;  %1113 = vmatpush.msrb.mxu1 %v134_v2  ;;  %v422_v42 = vld [vmem:[#allocation5 + $0xbc8] sm:$0xff] }
  0xe2   :  { %1134 = vmatpush.msrb.mxu2 %v194_v3  ;;  %1153 = vmatpush.msrb.mxu3 %v262_v4  ;;  %v482_v47 = vld [vmem:[#allocation5 + $0xda8] sm:$0xff] }
  0xe3   :  { %1095 = vmatpush.msrb.mxu0 %v62_v5  ;;  %1114 = vmatpush.msrb.mxu1 %v130_v6  ;;  %v550_v48 = vld [vmem:[#allocation5 + $0xfc8] sm:$0xff] }
  0xe4   :  { %1135 = vmatpush.msrb.mxu2 %v190_v7  ;;  %1154 = vmatpush.msrb.mxu3 %v258_v8  ;;  %v350_v49 = vld [vmem:[#allocation5 + $0x988] sm:$0xff] }
  0xe5   :  { %1096 = vmatpush.msrb.mxu0 %v58_v9  ;;  %1115 = vmatpush.msrb.mxu1 %v126_v10  ;;  %v418_v50 = vld [vmem:[#allocation5 + $0xba8] sm:$0xff] }
  0xe6   :  { %1136 = vmatpush.msrb.mxu2 %v186_v11  ;;  %1155 = vmatpush.msrb.mxu3 %v254_v12  ;;  %v478_v51 = vld [vmem:[#allocation5 + $0xd88] sm:$0xff] }
  0xe7   :  { %1097 = vmatpush.msrb.mxu0 %v54_v15  ;;  %1116 = vmatpush.msrb.mxu1 %v122_v16  ;;  %v546_v52 = vld [vmem:[#allocation5 + $0xfa8] sm:$0xff] }
  0xe8   :  { %1137 = vmatpush.msrb.mxu2 %v182_v18  ;;  %1156 = vmatpush.msrb.mxu3 %v250_v19  ;;  %v346_v53 = vld [vmem:[#allocation5 + $0x968] sm:$0xff] }
  0xe9   :  { %1098 = vmatpush.msrb.mxu0 %v50_v24  ;;  %1117 = vmatpush.msrb.mxu1 %v118_v25  ;;  %v414_v54 = vld [vmem:[#allocation5 + $0xb88] sm:$0xff] }
  0xea   :  { %1138 = vmatpush.msrb.mxu2 %v178_v26  ;;  %1157 = vmatpush.msrb.mxu3 %v246_v27  ;;  %v474_v55 = vld [vmem:[#allocation5 + $0xd68] sm:$0xff] }
  0xeb   :  { %1099 = vmatpush.msrb.mxu0 %v46_v29  ;;  %1118 = vmatpush.msrb.mxu1 %v114_v30  ;;  %v542_v56 = vld [vmem:[#allocation5 + $0xf88] sm:$0xff] }
  0xec   :  { %1139 = vmatpush.msrb.mxu2 %v174_v31  ;;  %1158 = vmatpush.msrb.mxu3 %v242_v32  ;;  %v342_v57 = vld [vmem:[#allocation5 + $0x948] sm:$0xff] }
  0xed   :  { %1164 = vmatpush.msra.mxu0 %v362_v33  ;;  %1119 = vmatpush.msrb.mxu1 %v110_v35  ;;  %v410_v58 = vld [vmem:[#allocation5 + $0xb68] sm:$0xff] }
  0xee   :  { %1204 = vmatpush.msra.mxu2 %v490_v34  ;;  %1159 = vmatpush.msrb.mxu3 %v238_v36  ;;  %v470_v59 = vld [vmem:[#allocation5 + $0xd48] sm:$0xff] }
  0xef   :  { %1165 = vmatpush.msra.mxu0 %v358_v37  ;;  %1184 = vmatpush.msra.mxu1 %v426_v38  ;;  %v538_v60 = vld [vmem:[#allocation5 + $0xf68] sm:$0xff] }
  0xf0   :  { %1205 = vmatpush.msra.mxu2 %v486_v39  ;;  %1224 = vmatpush.msra.mxu3 %v554_v40  ;;  %v338_v61 = vld [vmem:[#allocation5 + $0x928] sm:$0xff] }
  0xf1   :  { %1166 = vmatpush.msra.mxu0 %v354_v41  ;;  %1185 = vmatpush.msra.mxu1 %v422_v42  ;;  %v406_v62 = vld [vmem:[#allocation5 + $0xb48] sm:$0xff] }
  0xf2   :  { %1206 = vmatpush.msra.mxu2 %v482_v47  ;;  %1225 = vmatpush.msra.mxu3 %v550_v48  ;;  %v466_v63 = vld [vmem:[#allocation5 + $0xd28] sm:$0xff] }
  0xf3   :  { %1167 = vmatpush.msra.mxu0 %v350_v49  ;;  %1186 = vmatpush.msra.mxu1 %v418_v50  ;;  %v534_v0 = vld [vmem:[#allocation5 + $0xf48] sm:$0xff] }
  0xf4   :  { %1207 = vmatpush.msra.mxu2 %v478_v51  ;;  %1226 = vmatpush.msra.mxu3 %v546_v52  ;;  %v334_v1 = vld [vmem:[#allocation5 + $0x908] sm:$0xff] }
  0xf5   :  { %1168 = vmatpush.msra.mxu0 %v346_v53  ;;  %1187 = vmatpush.msra.mxu1 %v414_v54  ;;  %v402_v2 = vld [vmem:[#allocation5 + $0xb28] sm:$0xff] }
  0xf6   :  { %1208 = vmatpush.msra.mxu2 %v474_v55  ;;  %1227 = vmatpush.msra.mxu3 %v542_v56  ;;  %v462_v3 = vld [vmem:[#allocation5 + $0xd08] sm:$0xff] }
  0xf7   :  { %1169 = vmatpush.msra.mxu0 %v342_v57  ;;  %1188 = vmatpush.msra.mxu1 %v410_v58  ;;  %v530_v4 = vld [vmem:[#allocation5 + $0xf28] sm:$0xff] }
  0xf8   :  { %1209 = vmatpush.msra.mxu2 %v470_v59  ;;  %1228 = vmatpush.msra.mxu3 %v538_v60  ;;  %v330_v5 = vld [vmem:[#allocation5 + $0x8e8] sm:$0xff] }
  0xf9   :  { %1170 = vmatpush.msra.mxu0 %v338_v61  ;;  %1189 = vmatpush.msra.mxu1 %v406_v62  ;;  %v398_v6 = vld [vmem:[#allocation5 + $0xb08] sm:$0xff] }
  0xfa   :  { %1210 = vmatpush.msra.mxu2 %v466_v63  ;;  %1229 = vmatpush.msra.mxu3 %v534_v0  ;;  %v458_v7 = vld [vmem:[#allocation5 + $0xce8] sm:$0xff] }
  0xfb   :  { %1171 = vmatpush.msra.mxu0 %v334_v1  ;;  %1190 = vmatpush.msra.mxu1 %v402_v2  ;;  %v526_v8 = vld [vmem:[#allocation5 + $0xf08] sm:$0xff] }
  0xfc   :  { %1211 = vmatpush.msra.mxu2 %v462_v3  ;;  %1230 = vmatpush.msra.mxu3 %v530_v4  ;;  %v326_v9 = vld [vmem:[#allocation5 + $0x8c8] sm:$0xff] }
  0xfd   :  { %v394_v10 = vld [vmem:[#allocation5 + $0xae8] sm:$0xff]  ;;  %1172 = vmatpush.msra.mxu0 %v330_v5  ;;  %1191 = vmatpush.msra.mxu1 %v398_v6 }
  0xfe   :  { %v454_v11 = vld [vmem:[#allocation5 + $0xcc8] sm:$0xff]  ;;  %1212 = vmatpush.msra.mxu2 %v458_v7  ;;  %1231 = vmatpush.msra.mxu3 %v526_v8 }
  0xff   :  { %v522_v12 = vld [vmem:[#allocation5 + $0xee8] sm:$0xff]  ;;  %1173 = vmatpush.msra.mxu0 %v326_v9  ;;  %1192 = vmatpush.msra.mxu1 %v394_v10 }
 0x100   :  { %v322_v15 = vld [vmem:[#allocation5 + $0x8a8] sm:$0xff]  ;;  %1213 = vmatpush.msra.mxu2 %v454_v11  ;;  %1232 = vmatpush.msra.mxu3 %v522_v12 }
 0x101   :  { %v390_v16 = vld [vmem:[#allocation5 + $0xac8] sm:$0xff]  ;;  %1174 = vmatpush.msra.mxu0 %v322_v15  ;;  %1140 = vmatmul.f32.vlgmr.msrb.gmra.mxu2 %v1954_v43 }
 0x102   :  { %v450_v18 = vld [vmem:[#allocation5 + $0xca8] sm:$0xff]  ;;  %1193 = vmatpush.msra.mxu1 %v390_v16  ;;  %1100 = vmatmul.f32.vlgmr.msrb.gmra.mxu0 %v1956_v44 }
 0x103   :  { %v518_v19 = vld [vmem:[#allocation5 + $0xec8] sm:$0xff]  ;;  %1214 = vmatpush.msra.mxu2 %v450_v18  ;;  %1160 = vmatmul.f32.vlgmr.msrb.gmra.mxu3 %v1958_v45 }
 0x104   :  { %v318_v24 = vld [vmem:[#allocation5 + $0x888] sm:$0xff]  ;;  %1233 = vmatpush.msra.mxu3 %v518_v19  ;;  %1120 = vmatmul.f32.vlgmr.msrb.gmra.mxu1 %v1960_v46 }
 0x105   :  { %v386_v25 = vld [vmem:[#allocation5 + $0xaa8] sm:$0xff]  ;;  %1175 = vmatpush.msra.mxu0 %v318_v24 }
 0x106   :  { %v446_v26 = vld [vmem:[#allocation5 + $0xc88] sm:$0xff]  ;;  %1194 = vmatpush.msra.mxu1 %v386_v25 }
 0x107   :  { %v514_v27 = vld [vmem:[#allocation5 + $0xea8] sm:$0xff]  ;;  %1215 = vmatpush.msra.mxu2 %v446_v26 }
 0x108   :  { %v314_v29 = vld [vmem:[#allocation5 + $0x868] sm:$0xff]  ;;  %1234 = vmatpush.msra.mxu3 %v514_v27 }
 0x109   :  { %v382_v30 = vld [vmem:[#allocation5 + $0xa88] sm:$0xff]  ;;  %1176 = vmatpush.msra.mxu0 %v314_v29 }
 0x10a   :  { %v442_v31 = vld [vmem:[#allocation5 + $0xc68] sm:$0xff]  ;;  %1195 = vmatpush.msra.mxu1 %v382_v30 }
 0x10b   :  { %v510_v32 = vld [vmem:[#allocation5 + $0xe88] sm:$0xff]  ;;  %1216 = vmatpush.msra.mxu2 %v442_v31 }
 0x10c   :  { %v310_v33 = vld [vmem:[#allocation5 + $0x848] sm:$0xff]  ;;  %1235 = vmatpush.msra.mxu3 %v510_v32 }
 0x10d   :  { %v378_v34 = vld [vmem:[#allocation5 + $0xa68] sm:$0xff]  ;;  %1177 = vmatpush.msra.mxu0 %v310_v33 }
 0x10e   :  { %v438_v35 = vld [vmem:[#allocation5 + $0xc48] sm:$0xff]  ;;  %1196 = vmatpush.msra.mxu1 %v378_v34 }
 0x10f   :  { %v506_v36 = vld [vmem:[#allocation5 + $0xe68] sm:$0xff]  ;;  %1217 = vmatpush.msra.mxu2 %v438_v35  ;;  %v861_v35 = vpop.f32.mrf.mxu0 }
 0x110   :  { %v306_v37 = vld [vmem:[#allocation5 + $0x828] sm:$0xff]  ;;  %1236 = vmatpush.msra.mxu3 %v506_v36 }
 0x111   :  { %v374_v38 = vld [vmem:[#allocation5 + $0xa48] sm:$0xff]  ;;  %1178 = vmatpush.msra.mxu0 %v306_v37 }
 0x112   :  { %v434_v39 = vld [vmem:[#allocation5 + $0xc28] sm:$0xff]  ;;  %1197 = vmatpush.msra.mxu1 %v374_v38 }
 0x113   :  { %v502_v40 = vld [vmem:[#allocation5 + $0xe48] sm:$0xff]  ;;  %1218 = vmatpush.msra.mxu2 %v434_v39 }
 0x114   :  { %v302_v41 = vld [vmem:[#allocation5 + $0x808] sm:$0xff]  ;;  %1237 = vmatpush.msra.mxu3 %v502_v40 }
 0x115   :  { %v370_v42 = vld [vmem:[#allocation5 + $0xa28] sm:$0xff]  ;;  %1179 = vmatpush.msra.mxu0 %v302_v41 }
 0x116   :  { %v430_v47 = vld [vmem:[#allocation5 + $0xc08] sm:$0xff]  ;;  %1198 = vmatpush.msra.mxu1 %v370_v42  ;;  %1180 = vmatmul.f32.vlgmr.msra.gmra.mxu0 %v1968_v22  ;;  %v881_v42 = vpop.f32.mrf.mxu1 }
 0x117   :  { %v498_v48 = vld [vmem:[#allocation5 + $0xe28] sm:$0xff]  ;;  %1219 = vmatpush.msra.mxu2 %v430_v47 }
 0x118   :  { %v618_v49 = vld [vmem:[#allocation5 + $0x11e8] sm:$0xff]  ;;  %1238 = vmatpush.msra.mxu3 %v498_v48  ;;  %1220 = vmatmul.f32.vlgmr.msra.gmra.mxu2 %v1966_v17 }
 0x119   :  { %v746_v50 = vld [vmem:[#allocation5 + $0x15e8] sm:$0xff]  ;;  %1244 = vmatpush.msrb.mxu0 %v618_v49  ;;  %v882_v49 = vadd.f32 %v881_v42, %v861_v35  ;;  %v279_v35 = vld [vmem:[#allocation5 + $0x750] sm:$0xff] }
 0x11a   :  { %v366_v51 = vld [vmem:[#allocation5 + $0xa08] sm:$0xff]  ;;  %1284 = vmatpush.msrb.mxu2 %v746_v50  ;;  %v901_v50 = vpop.f32.mrf.mxu2  ;;  %v203_v42 = vld [vmem:[#allocation5 + $0x4f0] sm:$0xff] }
 0x11b   :  { %v494_v52 = vld [vmem:[#allocation5 + $0xe08] sm:$0xff]  ;;  %1199 = vmatpush.msra.mxu1 %v366_v51 }
 0x11c   :  { %v614_v53 = vld [vmem:[#allocation5 + $0x11c8] sm:$0xff]  ;;  %1239 = vmatpush.msra.mxu3 %v494_v52  ;;  %1200 = vmatmul.f32.vlgmr.msra.gmra.mxu1 %v1974_v28 }
 0x11d   :  { %v682_v54 = vld [vmem:[#allocation5 + $0x13e8] sm:$0xff]  ;;  %1245 = vmatpush.msrb.mxu0 %v614_v53  ;;  %1240 = vmatmul.f32.vlgmr.msra.gmra.mxu3 %v1971_v23 }
 0x11e   :  { %v742_v55 = vld [vmem:[#allocation5 + $0x15c8] sm:$0xff]  ;;  %1264 = vmatpush.msrb.mxu1 %v682_v54 }
 0x11f   :  { %v810_v56 = vld [vmem:[#allocation5 + $0x17e8] sm:$0xff]  ;;  %1285 = vmatpush.msrb.mxu2 %v742_v55  ;;  %v902_v55 = vadd.f32 %v901_v50, %v882_v49  ;;  %v139_v49 = vld [vmem:[#allocation5 + $0x2f0] sm:$0xff] }
 0x120   :  { %v610_v57 = vld [vmem:[#allocation5 + $0x11a8] sm:$0xff]  ;;  %1304 = vmatpush.msrb.mxu3 %v810_v56  ;;  %v199_v50 = vld [vmem:[#allocation5 + $0x4d0] sm:$0xff] }
 0x121   :  { %v678_v58 = vld [vmem:[#allocation5 + $0x13c8] sm:$0xff]  ;;  %1246 = vmatpush.msrb.mxu0 %v610_v57 }
 0x122   :  { %v738_v59 = vld [vmem:[#allocation5 + $0x15a8] sm:$0xff]  ;;  %1265 = vmatpush.msrb.mxu1 %v678_v58  ;;  %v921_v58 = vpop.f32.mrf.mxu3 }
 0x123   :  { %v806_v60 = vld [vmem:[#allocation5 + $0x17c8] sm:$0xff]  ;;  %1286 = vmatpush.msrb.mxu2 %v738_v59 }
 0x124   :  { %v606_v61 = vld [vmem:[#allocation5 + $0x1188] sm:$0xff]  ;;  %1305 = vmatpush.msrb.mxu3 %v806_v60 }
 0x125   :  { %v674_v62 = vld [vmem:[#allocation5 + $0x13a8] sm:$0xff]  ;;  %1247 = vmatpush.msrb.mxu0 %v606_v61  ;;  %v922_v61 = vadd.f32 %v921_v58, %v902_v55  ;;  %v263_v55 = vld [vmem:[#allocation5 + $0x6d0] sm:$0xff] }
 0x126   :  { %v734_v63 = vld [vmem:[#allocation5 + $0x1588] sm:$0xff]  ;;  %1266 = vmatpush.msrb.mxu1 %v674_v62  ;;  %v191_v58 = vld [vmem:[#allocation5 + $0x490] sm:$0xff] }
 0x127   :  { %v802_v0 = vld [vmem:[#allocation5 + $0x17a8] sm:$0xff]  ;;  %1287 = vmatpush.msrb.mxu2 %v734_v63 }
 0x128   :  { %v602_v1 = vld [vmem:[#allocation5 + $0x1168] sm:$0xff]  ;;  %1306 = vmatpush.msrb.mxu3 %v802_v0  ;;  %v941_v0 = vpop.f32.mrf.mxu0 }
 0x129   :  { %v670_v2 = vld [vmem:[#allocation5 + $0x1388] sm:$0xff]  ;;  %1248 = vmatpush.msrb.mxu0 %v602_v1  ;;  %v107_v1 = vld [vmem:[#allocation5 + $0x1f0] sm:$0xff] }
 0x12a   :  { %v730_v3 = vld [vmem:[#allocation5 + $0x1568] sm:$0xff]  ;;  %1267 = vmatpush.msrb.mxu1 %v670_v2  ;;  %v235_v2 = vld [vmem:[#allocation5 + $0x5f0] sm:$0xff] }
 0x12b   :  { %v798_v4 = vld [vmem:[#allocation5 + $0x1788] sm:$0xff]  ;;  %1288 = vmatpush.msrb.mxu2 %v730_v3  ;;  %v942_v3 = vadd.f32 %v941_v0, %v922_v61  ;;  %v127_v61 = vld [vmem:[#allocation5 + $0x290] sm:$0xff] }
 0x12c   :  { %v598_v5 = vld [vmem:[#allocation5 + $0x1148] sm:$0xff]  ;;  %1307 = vmatpush.msrb.mxu3 %v798_v4  ;;  %v255_v0 = vld [vmem:[#allocation5 + $0x690] sm:$0xff] }
 0x12d   :  { %v666_v6 = vld [vmem:[#allocation5 + $0x1368] sm:$0xff]  ;;  %1249 = vmatpush.msrb.mxu0 %v598_v5 }
 0x12e   :  { %v726_v7 = vld [vmem:[#allocation5 + $0x1548] sm:$0xff]  ;;  %1268 = vmatpush.msrb.mxu1 %v666_v6  ;;  %v961_v6 = vpop.f32.mrf.mxu1 }
 0x12f   :  { %v794_v8 = vld [vmem:[#allocation5 + $0x1768] sm:$0xff]  ;;  %1289 = vmatpush.msrb.mxu2 %v726_v7  ;;  %v103_v7 = vld [vmem:[#allocation5 + $0x1d0] sm:$0xff] }
 0x130   :  { %v594_v17 = vld [vmem:[#allocation5 + $0x1128] sm:$0xff]  ;;  %1308 = vmatpush.msrb.mxu3 %v794_v8  ;;  %v171_v8 = vld [vmem:[#allocation5 + $0x3f0] sm:$0xff] }
 0x131   :  { %v662_v9 = vld [vmem:[#allocation5 + $0x1348] sm:$0xff]  ;;  %1250 = vmatpush.msrb.mxu0 %v594_v17  ;;  %v962_v17 = vadd.f32 %v961_v6, %v942_v3  ;;  %v123_v3 = vld [vmem:[#allocation5 + $0x270] sm:$0xff] }
 0x132   :  { %v722_v10 = vld [vmem:[#allocation5 + $0x1528] sm:$0xff]  ;;  %1269 = vmatpush.msrb.mxu1 %v662_v9  ;;  %v981_v9 = vpop.f32.mrf.mxu2 }
 0x133   :  { %v790_v11 = vld [vmem:[#allocation5 + $0x1748] sm:$0xff]  ;;  %1290 = vmatpush.msrb.mxu2 %v722_v10  ;;  %v231_v10 = vld [vmem:[#allocation5 + $0x5d0] sm:$0xff] }
 0x134   :  { %v590_v22 = vld [vmem:[#allocation5 + $0x1108] sm:$0xff]  ;;  %1309 = vmatpush.msrb.mxu3 %v790_v11  ;;  %v299_v11 = vld [vmem:[#allocation5 + $0x7f0] sm:$0xff] }
 0x135   :  { %v658_v23 = vld [vmem:[#allocation5 + $0x1328] sm:$0xff]  ;;  %1251 = vmatpush.msrb.mxu0 %v590_v22  ;;  %v99_v22 = vld [vmem:[#allocation5 + $0x1b0] sm:$0xff] }
 0x136   :  { %v718_v12 = vld [vmem:[#allocation5 + $0x1508] sm:$0xff]  ;;  %1270 = vmatpush.msrb.mxu1 %v658_v23  ;;  %v167_v23 = vld [vmem:[#allocation5 + $0x3d0] sm:$0xff] }
 0x137   :  { %v786_v15 = vld [vmem:[#allocation5 + $0x1728] sm:$0xff]  ;;  %1291 = vmatpush.msrb.mxu2 %v718_v12  ;;  %v295_v12 = vld [vmem:[#allocation5 + $0x7d0] sm:$0xff] }
 0x138   :  { %v586_v16 = vld [vmem:[#allocation5 + $0x10e8] sm:$0xff]  ;;  %1310 = vmatpush.msrb.mxu3 %v786_v15  ;;  %v1001_v15 = vpop.f32.mrf.mxu3 }
 0x139   :  { %v654_v18 = vld [vmem:[#allocation5 + $0x1308] sm:$0xff]  ;;  %1252 = vmatpush.msrb.mxu0 %v586_v16  ;;  %v95_v16 = vld [vmem:[#allocation5 + $0x190] sm:$0xff] }
 0x13a   :  { %v714_v28 = vld [vmem:[#allocation5 + $0x14e8] sm:$0xff]  ;;  %1271 = vmatpush.msrb.mxu1 %v654_v18  ;;  %v163_v18 = vld [vmem:[#allocation5 + $0x3b0] sm:$0xff] }
 0x13b   :  { %v782_v19 = vld [vmem:[#allocation5 + $0x1708] sm:$0xff]  ;;  %1292 = vmatpush.msrb.mxu2 %v714_v28 }
 0x13c   :  { %v582_v24 = vld [vmem:[#allocation5 + $0x10c8] sm:$0xff]  ;;  %1311 = vmatpush.msrb.mxu3 %v782_v19  ;;  %v223_v19 = vld [vmem:[#allocation5 + $0x590] sm:$0xff] }
 0x13d   :  { %v650_v25 = vld [vmem:[#allocation5 + $0x12e8] sm:$0xff]  ;;  %1253 = vmatpush.msrb.mxu0 %v582_v24  ;;  %v159_v24 = vld [vmem:[#allocation5 + $0x390] sm:$0xff] }
 0x13e   :  { %v710_v26 = vld [vmem:[#allocation5 + $0x14c8] sm:$0xff]  ;;  %1272 = vmatpush.msrb.mxu1 %v650_v25  ;;  %v219_v25 = vld [vmem:[#allocation5 + $0x570] sm:$0xff] }
 0x13f   :  { %v778_v27 = vld [vmem:[#allocation5 + $0x16e8] sm:$0xff]  ;;  %1293 = vmatpush.msrb.mxu2 %v710_v26  ;;  %v287_v26 = vld [vmem:[#allocation5 + $0x790] sm:$0xff] }
 0x140   :  { %v578_v29 = vld [vmem:[#allocation5 + $0x10a8] sm:$0xff]  ;;  %1312 = vmatpush.msrb.mxu3 %v778_v27  ;;  %v87_v27 = vld [vmem:[#allocation5 + $0x150] sm:$0xff] }
 0x141   :  { %v646_v30 = vld [vmem:[#allocation5 + $0x12c8] sm:$0xff]  ;;  %1254 = vmatpush.msrb.mxu0 %v578_v29  ;;  %v155_v29 = vld [vmem:[#allocation5 + $0x370] sm:$0xff] }
 0x142   :  { %v706_v31 = vld [vmem:[#allocation5 + $0x14a8] sm:$0xff]  ;;  %1273 = vmatpush.msrb.mxu1 %v646_v30  ;;  %v215_v30 = vld [vmem:[#allocation5 + $0x550] sm:$0xff] }
 0x143   :  { %v774_v32 = vld [vmem:[#allocation5 + $0x16c8] sm:$0xff]  ;;  %1294 = vmatpush.msrb.mxu2 %v706_v31  ;;  %v283_v31 = vld [vmem:[#allocation5 + $0x770] sm:$0xff] }
 0x144   :  { %v574_v33 = vld [vmem:[#allocation5 + $0x1088] sm:$0xff]  ;;  %1313 = vmatpush.msrb.mxu3 %v774_v32  ;;  %v83_v32 = vld [vmem:[#allocation5 + $0x130] sm:$0xff] }
 0x145   :  { %v642_v34 = vld [vmem:[#allocation5 + $0x12a8] sm:$0xff]  ;;  %1255 = vmatpush.msrb.mxu0 %v574_v33  ;;  %v151_v33 = vld [vmem:[#allocation5 + $0x350] sm:$0xff] }
 0x146   :  { %v702_v36 = vld [vmem:[#allocation5 + $0x1488] sm:$0xff]  ;;  %1274 = vmatpush.msrb.mxu1 %v642_v34  ;;  %v211_v34 = vld [vmem:[#allocation5 + $0x530] sm:$0xff] }
 0x147   :  { %v770_v37 = vld [vmem:[#allocation5 + $0x16a8] sm:$0xff]  ;;  %1295 = vmatpush.msrb.mxu2 %v702_v36  ;;  %v79_v36 = vld [vmem:[#allocation5 + $0x110] sm:$0xff] }
 0x148   :  { %v570_v38 = vld [vmem:[#allocation5 + $0x1068] sm:$0xff]  ;;  %1314 = vmatpush.msrb.mxu3 %v770_v37  ;;  %v147_v37 = vld [vmem:[#allocation5 + $0x330] sm:$0xff] }
 0x149   :  { %v638_v39 = vld [vmem:[#allocation5 + $0x1288] sm:$0xff]  ;;  %1256 = vmatpush.msrb.mxu0 %v570_v38  ;;  %v207_v38 = vld [vmem:[#allocation5 + $0x510] sm:$0xff] }
 0x14a   :  { %v698_v40 = vld [vmem:[#allocation5 + $0x1468] sm:$0xff]  ;;  %1275 = vmatpush.msrb.mxu1 %v638_v39  ;;  %v275_v39 = vld [vmem:[#allocation5 + $0x730] sm:$0xff] }
 0x14b   :  { %v766_v41 = vld [vmem:[#allocation5 + $0x1688] sm:$0xff]  ;;  %1296 = vmatpush.msrb.mxu2 %v698_v40  ;;  %v75_v40 = vld [vmem:[#allocation5 + $0xf0] sm:$0xff]  ;;  %v1041_v6 = vpop.f32.mrf.mxu1 }
 0x14c   :  { %v566_v47 = vld [vmem:[#allocation5 + $0x1048] sm:$0xff]  ;;  %1315 = vmatpush.msrb.mxu3 %v766_v41  ;;  %v143_v41 = vld [vmem:[#allocation5 + $0x310] sm:$0xff] }
 0x14d   :  { %v634_v48 = vld [vmem:[#allocation5 + $0x1268] sm:$0xff]  ;;  %1257 = vmatpush.msrb.mxu0 %v566_v47  ;;  %v271_v47 = vld [vmem:[#allocation5 + $0x710] sm:$0xff] }
 0x14e   :  { %v694_v51 = vld [vmem:[#allocation5 + $0x1448] sm:$0xff]  ;;  %1276 = vmatpush.msrb.mxu1 %v634_v48  ;;  %v71_v48 = vld [vmem:[#allocation5 + $0xd0] sm:$0xff] }
 0x14f   :  { %v762_v52 = vld [vmem:[#allocation5 + $0x1668] sm:$0xff]  ;;  %1297 = vmatpush.msrb.mxu2 %v694_v51  ;;  %v267_v51 = vld [vmem:[#allocation5 + $0x6f0] sm:$0xff] }
 0x150   :  { %v562_v53 = vld [vmem:[#allocation5 + $0x1028] sm:$0xff]  ;;  %1316 = vmatpush.msrb.mxu3 %v762_v52  ;;  %v67_v52 = vld [vmem:[#allocation5 + $0xb0] sm:$0xff] }
 0x151   :  { %v630_v54 = vld [vmem:[#allocation5 + $0x1248] sm:$0xff]  ;;  %1258 = vmatpush.msrb.mxu0 %v562_v53  ;;  %v135_v53 = vld [vmem:[#allocation5 + $0x2d0] sm:$0xff] }
 0x152   :  { %v690_v56 = vld [vmem:[#allocation5 + $0x1428] sm:$0xff]  ;;  %1277 = vmatpush.msrb.mxu1 %v630_v54  ;;  %v195_v54 = vld [vmem:[#allocation5 + $0x4b0] sm:$0xff] }
 0x153   :  { %v758_v57 = vld [vmem:[#allocation5 + $0x1648] sm:$0xff]  ;;  %1298 = vmatpush.msrb.mxu2 %v690_v56  ;;  %v63_v56 = vld [vmem:[#allocation5 + $0x90] sm:$0xff] }
 0x154   :  { %v558_v59 = vld [vmem:[#allocation5 + $0x1008] sm:$0xff]  ;;  %1317 = vmatpush.msrb.mxu3 %v758_v57  ;;  %v131_v57 = vld [vmem:[#allocation5 + $0x2b0] sm:$0xff] }
 0x155   :  { %v626_v60 = vld [vmem:[#allocation5 + $0x1228] sm:$0xff]  ;;  %1259 = vmatpush.msrb.mxu0 %v558_v59  ;;  %v259_v59 = vld [vmem:[#allocation5 + $0x6b0] sm:$0xff] }
 0x156   :  { %v686_v62 = vld [vmem:[#allocation5 + $0x1408] sm:$0xff]  ;;  %1278 = vmatpush.msrb.mxu1 %v626_v60  ;;  %1260 = vmatmul.f32.vlgmr.msrb.gmra.mxu0 %v1978_v13  ;;  %v982_v13 = vadd.f32 %v981_v9, %v962_v17  ;;  %v59_v60 = vld [vmem:[#allocation5 + $0x70] sm:$0xff] }
 0x157   :  { %v754_v63 = vld [vmem:[#allocation5 + $0x1628] sm:$0xff]  ;;  %1299 = vmatpush.msrb.mxu2 %v686_v62  ;;  %1324 = vmatpush.msra.mxu0 %v107_v1  ;;  %v1021_v62 = vpop.f32.mrf.mxu0  ;;  %v179_v17 = vld [vmem:[#allocation5 + $0x430] sm:$0xff] }
 0x158   :  { %1318 = vmatpush.msrb.mxu3 %v754_v63  ;;  %v622_v4 = vld [vmem:[#allocation5 + $0x1208] sm:$0xff]  ;;  %1300 = vmatmul.f32.vlgmr.msrb.gmra.mxu2 %v1980_v14  ;;  %v227_v14 = vld [vmem:[#allocation5 + $0x5b0] sm:$0xff]  ;;  %v2002_v28 = vadd.f32 %v1001_v15, %v982_v13 }
 0x159   :  { %v750_v5 = vld [vmem:[#allocation5 + $0x1608] sm:$0xff]  ;;  %1364 = vmatpush.msra.mxu2 %v235_v2  ;;  %1279 = vmatpush.msrb.mxu1 %v622_v4  ;;  %v187_v63 = vld [vmem:[#allocation5 + $0x470] sm:$0xff] }
 0x15a   :  { %1319 = vmatpush.msrb.mxu3 %v750_v5  ;;  %1280 = vmatmul.f32.vlgmr.msrb.gmra.mxu1 %v1984_v20  ;;  %v291_v20 = vld [vmem:[#allocation5 + $0x7b0] sm:$0xff]  ;;  %v1022_v1 = vadd.f32 %v1021_v62, %v2002_v28 }
 0x15b   :  { %1320 = vmatmul.f32.vlgmr.msrb.gmra.mxu3 %v1986_v21  ;;  %1325 = vmatpush.msra.mxu0 %v103_v7  ;;  %v91_v21 = vld [vmem:[#allocation5 + $0x170] sm:$0xff] }
 0x15c   :  { %1344 = vmatpush.msra.mxu1 %v171_v8  ;;  %1365 = vmatpush.msra.mxu2 %v231_v10  ;;  %v55_v2 = vld [vmem:[#allocation5 + $0x50] sm:$0xff]  ;;  %v1042_v10 = vadd.f32 %v1041_v6, %v1022_v1 }
 0x15d   :  { %1384 = vmatpush.msra.mxu3 %v299_v11  ;;  %1326 = vmatpush.msra.mxu0 %v99_v22  ;;  %v183_v4 = vld [vmem:[#allocation5 + $0x450] sm:$0xff] }
 0x15e   :  { %1345 = vmatpush.msra.mxu1 %v167_v23  ;;  %1366 = vmatpush.msra.mxu2 %v227_v14  ;;  %v251_v5 = vld [vmem:[#allocation5 + $0x670] sm:$0xff]  ;;  %v1061_v23 = vpop.f32.mrf.mxu2 }
 0x15f   :  { %1385 = vmatpush.msra.mxu3 %v295_v12  ;;  %1327 = vmatpush.msra.mxu0 %v95_v16  ;;  %v51_v7 = vld [vmem:[#allocation5 + $0x30] sm:$0xff]  ;;  %v1062_v12 = vadd.f32 %v1061_v23, %v1042_v10 }
 0x160   :  { %1346 = vmatpush.msra.mxu1 %v163_v18  ;;  %1367 = vmatpush.msra.mxu2 %v223_v19  ;;  %v119_v8 = vld [vmem:[#allocation5 + $0x250] sm:$0xff]  ;;  %v1081_v19 = vpop.f32.mrf.mxu3 }
 0x161   :  { %1386 = vmatpush.msra.mxu3 %v291_v20  ;;  %1328 = vmatpush.msra.mxu0 %v91_v21  ;;  %v247_v9 = vld [vmem:[#allocation5 + $0x650] sm:$0xff] }
 0x162   :  { %1347 = vmatpush.msra.mxu1 %v159_v24  ;;  %1368 = vmatpush.msra.mxu2 %v219_v25  ;;  %v47_v11 = vld [vmem:[#allocation5 + $0x10] sm:$0xff]  ;;  %v2005_v24 = vadd.f32 %v1081_v19, %v1062_v12 }
 0x163   :  { %1387 = vmatpush.msra.mxu3 %v287_v26  ;;  %1329 = vmatpush.msra.mxu0 %v87_v27  ;;  %v115_v22 = vld [vmem:[#allocation5 + $0x230] sm:$0xff] }
 0x164   :  { %1348 = vmatpush.msra.mxu1 %v155_v29  ;;  %1369 = vmatpush.msra.mxu2 %v215_v30  ;;  %v175_v13 = vld [vmem:[#allocation5 + $0x410] sm:$0xff] }
 0x165   :  { %1388 = vmatpush.msra.mxu3 %v283_v31  ;;  %1330 = vmatpush.msra.mxu0 %v83_v32  ;;  %v243_v14 = vld [vmem:[#allocation5 + $0x630] sm:$0xff] }
 0x166   :  { %1349 = vmatpush.msra.mxu1 %v151_v33  ;;  %1370 = vmatpush.msra.mxu2 %v211_v34  ;;  %v363_v15 = vld [vmem:[#allocation5 + $0x9f0] sm:$0xff] }
 0x167   :  { %1389 = vmatpush.msra.mxu3 %v279_v35  ;;  %1331 = vmatpush.msra.mxu0 %v79_v36  ;;  %v491_v16 = vld [vmem:[#allocation5 + $0xdf0] sm:$0xff] }
 0x168   :  { %1350 = vmatpush.msra.mxu1 %v147_v37  ;;  %1371 = vmatpush.msra.mxu2 %v207_v38  ;;  %v111_v18 = vld [vmem:[#allocation5 + $0x210] sm:$0xff] }
 0x169   :  { %1390 = vmatpush.msra.mxu3 %v275_v39  ;;  %1332 = vmatpush.msra.mxu0 %v75_v40  ;;  %v239_v28 = vld [vmem:[#allocation5 + $0x610] sm:$0xff] }
 0x16a   :  { %1351 = vmatpush.msra.mxu1 %v143_v41  ;;  %1372 = vmatpush.msra.mxu2 %v203_v42  ;;  %v359_v20 = vld [vmem:[#allocation5 + $0x9d0] sm:$0xff] }
 0x16b   :  { %1391 = vmatpush.msra.mxu3 %v271_v47  ;;  %1333 = vmatpush.msra.mxu0 %v71_v48  ;;  %v427_v21 = vld [vmem:[#allocation5 + $0xbf0] sm:$0xff] }
 0x16c   :  { %1352 = vmatpush.msra.mxu1 %v139_v49  ;;  %1373 = vmatpush.msra.mxu2 %v199_v50  ;;  %v487_v25 = vld [vmem:[#allocation5 + $0xdd0] sm:$0xff] }
 0x16d   :  { %1392 = vmatpush.msra.mxu3 %v267_v51  ;;  %1334 = vmatpush.msra.mxu0 %v67_v52  ;;  %v555_v26 = vld [vmem:[#allocation5 + $0xff0] sm:$0xff] }
 0x16e   :  { %1353 = vmatpush.msra.mxu1 %v135_v53  ;;  %1374 = vmatpush.msra.mxu2 %v195_v54  ;;  %v355_v27 = vld [vmem:[#allocation5 + $0x9b0] sm:$0xff] }
 0x16f   :  { %1393 = vmatpush.msra.mxu3 %v263_v55  ;;  %1335 = vmatpush.msra.mxu0 %v63_v56  ;;  %v423_v29 = vld [vmem:[#allocation5 + $0xbd0] sm:$0xff] }
 0x170   :  { %1354 = vmatpush.msra.mxu1 %v131_v57  ;;  %1375 = vmatpush.msra.mxu2 %v191_v58  ;;  %v483_v30 = vld [vmem:[#allocation5 + $0xdb0] sm:$0xff] }
 0x171   :  { %1394 = vmatpush.msra.mxu3 %v259_v59  ;;  %1336 = vmatpush.msra.mxu0 %v59_v60  ;;  %v551_v31 = vld [vmem:[#allocation5 + $0xfd0] sm:$0xff] }
 0x172   :  { %1355 = vmatpush.msra.mxu1 %v127_v61  ;;  %1376 = vmatpush.msra.mxu2 %v187_v63  ;;  %v351_v32 = vld [vmem:[#allocation5 + $0x990] sm:$0xff] }
 0x173   :  { %1395 = vmatpush.msra.mxu3 %v255_v0  ;;  %1337 = vmatpush.msra.mxu0 %v55_v2  ;;  %v419_v33 = vld [vmem:[#allocation5 + $0xbb0] sm:$0xff] }
 0x174   :  { %1356 = vmatpush.msra.mxu1 %v123_v3  ;;  %1377 = vmatpush.msra.mxu2 %v183_v4  ;;  %v479_v34 = vld [vmem:[#allocation5 + $0xd90] sm:$0xff] }
 0x175   :  { %1396 = vmatpush.msra.mxu3 %v251_v5  ;;  %1338 = vmatpush.msra.mxu0 %v51_v7  ;;  %v547_v35 = vld [vmem:[#allocation5 + $0xfb0] sm:$0xff] }
 0x176   :  { %1357 = vmatpush.msra.mxu1 %v119_v8  ;;  %1378 = vmatpush.msra.mxu2 %v179_v17  ;;  %v347_v36 = vld [vmem:[#allocation5 + $0x970] sm:$0xff] }
 0x177   :  { %1397 = vmatpush.msra.mxu3 %v247_v9  ;;  %1339 = vmatpush.msra.mxu0 %v47_v11  ;;  %v415_v37 = vld [vmem:[#allocation5 + $0xb90] sm:$0xff] }
 0x178   :  { %1358 = vmatpush.msra.mxu1 %v115_v22  ;;  %1379 = vmatpush.msra.mxu2 %v175_v13  ;;  %v475_v38 = vld [vmem:[#allocation5 + $0xd70] sm:$0xff] }
 0x179   :  { %1398 = vmatpush.msra.mxu3 %v243_v14  ;;  %1404 = vmatpush.msrb.mxu0 %v363_v15  ;;  %v543_v39 = vld [vmem:[#allocation5 + $0xf90] sm:$0xff] }
 0x17a   :  { %1444 = vmatpush.msrb.mxu2 %v491_v16  ;;  %1359 = vmatpush.msra.mxu1 %v111_v18  ;;  %v343_v40 = vld [vmem:[#allocation5 + $0x950] sm:$0xff] }
 0x17b   :  { %1399 = vmatpush.msra.mxu3 %v239_v28  ;;  %1405 = vmatpush.msrb.mxu0 %v359_v20  ;;  %v411_v41 = vld [vmem:[#allocation5 + $0xb70] sm:$0xff] }
 0x17c   :  { %1424 = vmatpush.msrb.mxu1 %v427_v21  ;;  %1445 = vmatpush.msrb.mxu2 %v487_v25  ;;  %v471_v42 = vld [vmem:[#allocation5 + $0xd50] sm:$0xff] }
 0x17d   :  { %1464 = vmatpush.msrb.mxu3 %v555_v26  ;;  %1406 = vmatpush.msrb.mxu0 %v355_v27  ;;  %v539_v47 = vld [vmem:[#allocation5 + $0xf70] sm:$0xff] }
 0x17e   :  { %1425 = vmatpush.msrb.mxu1 %v423_v29  ;;  %1446 = vmatpush.msrb.mxu2 %v483_v30  ;;  %v339_v48 = vld [vmem:[#allocation5 + $0x930] sm:$0xff] }
 0x17f   :  { %1465 = vmatpush.msrb.mxu3 %v551_v31  ;;  %1407 = vmatpush.msrb.mxu0 %v351_v32  ;;  %v407_v49 = vld [vmem:[#allocation5 + $0xb50] sm:$0xff] }
 0x180   :  { %1426 = vmatpush.msrb.mxu1 %v419_v33  ;;  %1447 = vmatpush.msrb.mxu2 %v479_v34  ;;  %v467_v50 = vld [vmem:[#allocation5 + $0xd30] sm:$0xff] }
 0x181   :  { %1466 = vmatpush.msrb.mxu3 %v547_v35  ;;  %1408 = vmatpush.msrb.mxu0 %v347_v36  ;;  %v535_v51 = vld [vmem:[#allocation5 + $0xf50] sm:$0xff] }
 0x182   :  { %1427 = vmatpush.msrb.mxu1 %v415_v37  ;;  %1448 = vmatpush.msrb.mxu2 %v475_v38  ;;  %v335_v52 = vld [vmem:[#allocation5 + $0x910] sm:$0xff] }
 0x183   :  { %1467 = vmatpush.msrb.mxu3 %v543_v39  ;;  %1409 = vmatpush.msrb.mxu0 %v343_v40  ;;  %v403_v53 = vld [vmem:[#allocation5 + $0xb30] sm:$0xff] }
 0x184   :  { %1428 = vmatpush.msrb.mxu1 %v411_v41  ;;  %1449 = vmatpush.msrb.mxu2 %v471_v42  ;;  %v463_v54 = vld [vmem:[#allocation5 + $0xd10] sm:$0xff] }
 0x185   :  { %1468 = vmatpush.msrb.mxu3 %v539_v47  ;;  %1410 = vmatpush.msrb.mxu0 %v339_v48  ;;  %v531_v55 = vld [vmem:[#allocation5 + $0xf30] sm:$0xff] }
 0x186   :  { %1429 = vmatpush.msrb.mxu1 %v407_v49  ;;  %1450 = vmatpush.msrb.mxu2 %v467_v50  ;;  %v331_v56 = vld [vmem:[#allocation5 + $0x8f0] sm:$0xff]  ;;  %v2014_v49 = vld.sshfl [vmem:[#allocation1 + $0x20] sm:$0xff pattern:$0x73625140] }
 0x187   :  { %1469 = vmatpush.msrb.mxu3 %v535_v51  ;;  %v399_v57 = vld [vmem:[#allocation5 + $0xb10] sm:$0xff]  ;;  %1411 = vmatpush.msrb.mxu0 %v335_v52  ;;  %v2017_v51 = vld.sshfl [vmem:[#allocation1 + $0x38] sm:$0xff pattern:$0x73625140] }
 0x188   :  { %1430 = vmatpush.msrb.mxu1 %v403_v53  ;;  %v459_v58 = vld [vmem:[#allocation5 + $0xcf0] sm:$0xff]  ;;  %1451 = vmatpush.msrb.mxu2 %v463_v54 }
 0x189   :  { %v527_v59 = vld [vmem:[#allocation5 + $0xf10] sm:$0xff]  ;;  %1470 = vmatpush.msrb.mxu3 %v531_v55  ;;  %1412 = vmatpush.msrb.mxu0 %v331_v56  ;;  %v2020_v56 = vld.sshfl [vmem:[#allocation1 + $0x28] sm:$0xff pattern:$0x73625140] }
 0x18a   :  { %v327_v60 = vld [vmem:[#allocation5 + $0x8d0] sm:$0xff]  ;;  %1431 = vmatpush.msrb.mxu1 %v399_v57  ;;  %1452 = vmatpush.msrb.mxu2 %v459_v58 }
 0x18b   :  { %v395_v61 = vld [vmem:[#allocation5 + $0xaf0] sm:$0xff]  ;;  %1471 = vmatpush.msrb.mxu3 %v527_v59  ;;  %1413 = vmatpush.msrb.mxu0 %v327_v60 }
 0x18c   :  { %v455_v62 = vld [vmem:[#allocation5 + $0xcd0] sm:$0xff]  ;;  %1432 = vmatpush.msrb.mxu1 %v395_v61  ;;  %1380 = vmatmul.f32.vlgmr.msra.gmra.mxu2 %v1954_v43 }
 0x18d   :  { %v523_v63 = vld [vmem:[#allocation5 + $0xef0] sm:$0xff]  ;;  %1453 = vmatpush.msrb.mxu2 %v455_v62  ;;  %1340 = vmatmul.f32.vlgmr.msra.gmra.mxu0 %v1956_v44 }
 0x18e   :  { %v323_v0 = vld [vmem:[#allocation5 + $0x8b0] sm:$0xff]  ;;  %1472 = vmatpush.msrb.mxu3 %v523_v63  ;;  %1360 = vmatmul.f32.vlgmr.msra.gmra.mxu1 %v1960_v46 }
 0x18f   :  { %v391_v1 = vld [vmem:[#allocation5 + $0xad0] sm:$0xff]  ;;  %1414 = vmatpush.msrb.mxu0 %v323_v0  ;;  %1400 = vmatmul.f32.vlgmr.msra.gmra.mxu3 %v1958_v45 }
 0x190   :  { %v451_v2 = vld [vmem:[#allocation5 + $0xcb0] sm:$0xff]  ;;  %1433 = vmatpush.msrb.mxu1 %v391_v1 }
 0x191   :  { %v519_v3 = vld [vmem:[#allocation5 + $0xed0] sm:$0xff]  ;;  %1454 = vmatpush.msrb.mxu2 %v451_v2 }
 0x192   :  { %v319_v4 = vld [vmem:[#allocation5 + $0x890] sm:$0xff]  ;;  %1473 = vmatpush.msrb.mxu3 %v519_v3 }
 0x193   :  { %v387_v5 = vld [vmem:[#allocation5 + $0xab0] sm:$0xff]  ;;  %1415 = vmatpush.msrb.mxu0 %v319_v4 }
 0x194   :  { %v447_v6 = vld [vmem:[#allocation5 + $0xc90] sm:$0xff]  ;;  %1434 = vmatpush.msrb.mxu1 %v387_v5 }
 0x195   :  { %v515_v7 = vld [vmem:[#allocation5 + $0xeb0] sm:$0xff]  ;;  %1455 = vmatpush.msrb.mxu2 %v447_v6 }
 0x196   :  { %v315_v8 = vld [vmem:[#allocation5 + $0x870] sm:$0xff]  ;;  %1474 = vmatpush.msrb.mxu3 %v515_v7 }
 0x197   :  { %v383_v17 = vld [vmem:[#allocation5 + $0xa90] sm:$0xff]  ;;  %1416 = vmatpush.msrb.mxu0 %v315_v8 }
 0x198   :  { %v443_v9 = vld [vmem:[#allocation5 + $0xc70] sm:$0xff]  ;;  %1435 = vmatpush.msrb.mxu1 %v383_v17 }
 0x199   :  { %v511_v10 = vld [vmem:[#allocation5 + $0xe90] sm:$0xff]  ;;  %1456 = vmatpush.msrb.mxu2 %v443_v9 }
 0x19a   :  { %v311_v11 = vld [vmem:[#allocation5 + $0x850] sm:$0xff]  ;;  %1475 = vmatpush.msrb.mxu3 %v511_v10 }
 0x19b   :  { %v379_v22 = vld [vmem:[#allocation5 + $0xa70] sm:$0xff]  ;;  %1417 = vmatpush.msrb.mxu0 %v311_v11 }
 0x19c   :  { %v439_v23 = vld [vmem:[#allocation5 + $0xc50] sm:$0xff]  ;;  %1436 = vmatpush.msrb.mxu1 %v379_v22 }
 0x19d   :  { %v507_v13 = vld [vmem:[#allocation5 + $0xe70] sm:$0xff]  ;;  %1457 = vmatpush.msrb.mxu2 %v439_v23 }
 0x19e   :  { %v307_v14 = vld [vmem:[#allocation5 + $0x830] sm:$0xff]  ;;  %1476 = vmatpush.msrb.mxu3 %v507_v13 }
 0x19f   :  { %v375_v12 = vld [vmem:[#allocation5 + $0xa50] sm:$0xff]  ;;  %1418 = vmatpush.msrb.mxu0 %v307_v14 }
 0x1a0   :  { %v435_v15 = vld [vmem:[#allocation5 + $0xc30] sm:$0xff]  ;;  %1437 = vmatpush.msrb.mxu1 %v375_v12 }
 0x1a1   :  { %v503_v16 = vld [vmem:[#allocation5 + $0xe50] sm:$0xff]  ;;  %1458 = vmatpush.msrb.mxu2 %v435_v15 }
 0x1a2   :  { %v303_v18 = vld [vmem:[#allocation5 + $0x810] sm:$0xff]  ;;  %1477 = vmatpush.msrb.mxu3 %v503_v16 }
 0x1a3   :  { %v371_v28 = vld [vmem:[#allocation5 + $0xa30] sm:$0xff]  ;;  %1419 = vmatpush.msrb.mxu0 %v303_v18 }
 0x1a4   :  { %v431_v19 = vld [vmem:[#allocation5 + $0xc10] sm:$0xff]  ;;  %1438 = vmatpush.msrb.mxu1 %v371_v28  ;;  %1420 = vmatmul.f32.vlgmr.msrb.gmra.mxu0 %v2014_v49 }
 0x1a5   :  { %v499_v20 = vld [vmem:[#allocation5 + $0xe30] sm:$0xff]  ;;  %1459 = vmatpush.msrb.mxu2 %v431_v19 }
 0x1a6   :  { %v619_v21 = vld [vmem:[#allocation5 + $0x11f0] sm:$0xff]  ;;  %1478 = vmatpush.msrb.mxu3 %v499_v20 }
 0x1a7   :  { %v747_v25 = vld [vmem:[#allocation5 + $0x15f0] sm:$0xff]  ;;  %1484 = vmatpush.msra.mxu0 %v619_v21 }
 0x1a8   :  { %v367_v26 = vld [vmem:[#allocation5 + $0xa10] sm:$0xff]  ;;  %1524 = vmatpush.msra.mxu2 %v747_v25 }
 0x1a9   :  { %v495_v27 = vld [vmem:[#allocation5 + $0xe10] sm:$0xff]  ;;  %1439 = vmatpush.msrb.mxu1 %v367_v26 }
 0x1aa   :  { %v615_v29 = vld [vmem:[#allocation5 + $0x11d0] sm:$0xff]  ;;  %1479 = vmatpush.msrb.mxu3 %v495_v27  ;;  %1440 = vmatmul.f32.vlgmr.msrb.gmra.mxu1 %v2020_v56 }
 0x1ab   :  { %v683_v30 = vld [vmem:[#allocation5 + $0x13f0] sm:$0xff]  ;;  %1485 = vmatpush.msra.mxu0 %v615_v29  ;;  %1480 = vmatmul.f32.vlgmr.msrb.gmra.mxu3 %v2017_v51 }
 0x1ac   :  { %v743_v31 = vld [vmem:[#allocation5 + $0x15d0] sm:$0xff]  ;;  %1504 = vmatpush.msra.mxu1 %v683_v30 }
 0x1ad   :  { %v811_v32 = vld [vmem:[#allocation5 + $0x17f0] sm:$0xff]  ;;  %1525 = vmatpush.msra.mxu2 %v743_v31 }
 0x1ae   :  { %v611_v33 = vld [vmem:[#allocation5 + $0x11b0] sm:$0xff]  ;;  %1544 = vmatpush.msra.mxu3 %v811_v32 }
 0x1af   :  { %v679_v34 = vld [vmem:[#allocation5 + $0x13d0] sm:$0xff]  ;;  %1486 = vmatpush.msra.mxu0 %v611_v33 }
 0x1b0   :  { %v739_v35 = vld [vmem:[#allocation5 + $0x15b0] sm:$0xff]  ;;  %1505 = vmatpush.msra.mxu1 %v679_v34  ;;  %v108_v34 = vld [vmem:[#allocation5 + $0x1f8] sm:$0xff] }
 0x1b1   :  { %v807_v36 = vld [vmem:[#allocation5 + $0x17d0] sm:$0xff]  ;;  %1526 = vmatpush.msra.mxu2 %v739_v35  ;;  %v236_v35 = vld [vmem:[#allocation5 + $0x5f8] sm:$0xff] }
 0x1b2   :  { %v607_v37 = vld [vmem:[#allocation5 + $0x1190] sm:$0xff]  ;;  %1545 = vmatpush.msra.mxu3 %v807_v36 }
 0x1b3   :  { %v675_v38 = vld [vmem:[#allocation5 + $0x13b0] sm:$0xff]  ;;  %1487 = vmatpush.msra.mxu0 %v607_v37 }
 0x1b4   :  { %v735_v39 = vld [vmem:[#allocation5 + $0x1590] sm:$0xff]  ;;  %1506 = vmatpush.msra.mxu1 %v675_v38  ;;  %v2023_v38 = vld.sshfl [vmem:[#allocation1] sm:$0xff pattern:$0x73625140] }
 0x1b5   :  { %v803_v40 = vld [vmem:[#allocation5 + $0x17b0] sm:$0xff]  ;;  %1527 = vmatpush.msra.mxu2 %v735_v39 }
 0x1b6   :  { %v2011_v41 = vld.sshfl [vmem:[#allocation1 + $0x30] sm:$0xff pattern:$0x73625140]  ;;  %1546 = vmatpush.msra.mxu3 %v803_v40  ;;  %v104_v40 = vld [vmem:[#allocation5 + $0x1d8] sm:$0xff] }
 0x1b7   :  { %1460 = vmatmul.f32.vlgmr.msrb.gmra.mxu2 %v2011_v41  ;;  %v603_v42 = vld [vmem:[#allocation5 + $0x1170] sm:$0xff] }
 0x1b8   :  { %v671_v47 = vld [vmem:[#allocation5 + $0x1390] sm:$0xff]  ;;  %1488 = vmatpush.msra.mxu0 %v603_v42  ;;  %v172_v42 = vld [vmem:[#allocation5 + $0x3f8] sm:$0xff] }
 0x1b9   :  { %v731_v48 = vld [vmem:[#allocation5 + $0x1570] sm:$0xff]  ;;  %1507 = vmatpush.msra.mxu1 %v671_v47  ;;  %v232_v47 = vld [vmem:[#allocation5 + $0x5d8] sm:$0xff] }
 0x1ba   :  { %v799_v50 = vld [vmem:[#allocation5 + $0x1790] sm:$0xff]  ;;  %1528 = vmatpush.msra.mxu2 %v731_v48  ;;  %v300_v48 = vld [vmem:[#allocation5 + $0x7f8] sm:$0xff] }
 0x1bb   :  { %v599_v52 = vld [vmem:[#allocation5 + $0x1150] sm:$0xff]  ;;  %1547 = vmatpush.msra.mxu3 %v799_v50  ;;  %v2029_v50 = vld.sshfl [vmem:[#allocation1 + $0x8] sm:$0xff pattern:$0x73625140] }
 0x1bc   :  { %v667_v53 = vld [vmem:[#allocation5 + $0x1370] sm:$0xff]  ;;  %1489 = vmatpush.msra.mxu0 %v599_v52  ;;  %v2032_v52 = vld.sshfl [vmem:[#allocation1 + $0x18] sm:$0xff pattern:$0x73625140] }
 0x1bd   :  { %v727_v54 = vld [vmem:[#allocation5 + $0x1550] sm:$0xff]  ;;  %1508 = vmatpush.msra.mxu1 %v667_v53  ;;  %v100_v53 = vld [vmem:[#allocation5 + $0x1b8] sm:$0xff] }
 0x1be   :  { %v795_v55 = vld [vmem:[#allocation5 + $0x1770] sm:$0xff]  ;;  %1529 = vmatpush.msra.mxu2 %v727_v54  ;;  %v168_v54 = vld [vmem:[#allocation5 + $0x3d8] sm:$0xff] }
 0x1bf   :  { %v595_v57 = vld [vmem:[#allocation5 + $0x1130] sm:$0xff]  ;;  %1548 = vmatpush.msra.mxu3 %v795_v55  ;;  %v228_v55 = vld [vmem:[#allocation5 + $0x5b8] sm:$0xff] }
 0x1c0   :  { %v663_v58 = vld [vmem:[#allocation5 + $0x1350] sm:$0xff]  ;;  %1490 = vmatpush.msra.mxu0 %v595_v57  ;;  %v296_v57 = vld [vmem:[#allocation5 + $0x7d8] sm:$0xff] }
 0x1c1   :  { %v723_v59 = vld [vmem:[#allocation5 + $0x1530] sm:$0xff]  ;;  %1509 = vmatpush.msra.mxu1 %v663_v58  ;;  %v96_v58 = vld [vmem:[#allocation5 + $0x198] sm:$0xff] }
 0x1c2   :  { %v791_v60 = vld [vmem:[#allocation5 + $0x1750] sm:$0xff]  ;;  %1530 = vmatpush.msra.mxu2 %v723_v59  ;;  %v164_v59 = vld [vmem:[#allocation5 + $0x3b8] sm:$0xff] }
 0x1c3   :  { %v591_v61 = vld [vmem:[#allocation5 + $0x1110] sm:$0xff]  ;;  %1549 = vmatpush.msra.mxu3 %v791_v60  ;;  %v224_v60 = vld [vmem:[#allocation5 + $0x598] sm:$0xff] }
 0x1c4   :  { %v659_v62 = vld [vmem:[#allocation5 + $0x1330] sm:$0xff]  ;;  %1491 = vmatpush.msra.mxu0 %v591_v61  ;;  %v292_v61 = vld [vmem:[#allocation5 + $0x7b8] sm:$0xff] }
 0x1c5   :  { %v719_v63 = vld [vmem:[#allocation5 + $0x1510] sm:$0xff]  ;;  %1510 = vmatpush.msra.mxu1 %v659_v62  ;;  %v92_v62 = vld [vmem:[#allocation5 + $0x178] sm:$0xff] }
 0x1c6   :  { %v787_v0 = vld [vmem:[#allocation5 + $0x1730] sm:$0xff]  ;;  %1531 = vmatpush.msra.mxu2 %v719_v63  ;;  %v160_v63 = vld [vmem:[#allocation5 + $0x398] sm:$0xff] }
 0x1c7   :  { %v587_v1 = vld [vmem:[#allocation5 + $0x10f0] sm:$0xff]  ;;  %1550 = vmatpush.msra.mxu3 %v787_v0  ;;  %v220_v0 = vld [vmem:[#allocation5 + $0x578] sm:$0xff] }
 0x1c8   :  { %v655_v2 = vld [vmem:[#allocation5 + $0x1310] sm:$0xff]  ;;  %1492 = vmatpush.msra.mxu0 %v587_v1  ;;  %v288_v1 = vld [vmem:[#allocation5 + $0x798] sm:$0xff] }
 0x1c9   :  { %v715_v3 = vld [vmem:[#allocation5 + $0x14f0] sm:$0xff]  ;;  %1511 = vmatpush.msra.mxu1 %v655_v2  ;;  %v88_v2 = vld [vmem:[#allocation5 + $0x158] sm:$0xff] }
 0x1ca   :  { %v783_v4 = vld [vmem:[#allocation5 + $0x1710] sm:$0xff]  ;;  %1532 = vmatpush.msra.mxu2 %v715_v3  ;;  %v156_v3 = vld [vmem:[#allocation5 + $0x378] sm:$0xff] }
 0x1cb   :  { %v583_v5 = vld [vmem:[#allocation5 + $0x10d0] sm:$0xff]  ;;  %1551 = vmatpush.msra.mxu3 %v783_v4  ;;  %v216_v4 = vld [vmem:[#allocation5 + $0x558] sm:$0xff] }
 0x1cc   :  { %v651_v6 = vld [vmem:[#allocation5 + $0x12f0] sm:$0xff]  ;;  %1493 = vmatpush.msra.mxu0 %v583_v5  ;;  %v284_v5 = vld [vmem:[#allocation5 + $0x778] sm:$0xff] }
 0x1cd   :  { %v711_v7 = vld [vmem:[#allocation5 + $0x14d0] sm:$0xff]  ;;  %1512 = vmatpush.msra.mxu1 %v651_v6  ;;  %v84_v6 = vld [vmem:[#allocation5 + $0x138] sm:$0xff] }
 0x1ce   :  { %v779_v8 = vld [vmem:[#allocation5 + $0x16f0] sm:$0xff]  ;;  %1533 = vmatpush.msra.mxu2 %v711_v7  ;;  %v152_v7 = vld [vmem:[#allocation5 + $0x358] sm:$0xff] }
 0x1cf   :  { %v579_v17 = vld [vmem:[#allocation5 + $0x10b0] sm:$0xff]  ;;  %1552 = vmatpush.msra.mxu3 %v779_v8  ;;  %v212_v8 = vld [vmem:[#allocation5 + $0x538] sm:$0xff] }
 0x1d0   :  { %v647_v9 = vld [vmem:[#allocation5 + $0x12d0] sm:$0xff]  ;;  %1494 = vmatpush.msra.mxu0 %v579_v17  ;;  %v280_v17 = vld [vmem:[#allocation5 + $0x758] sm:$0xff] }
 0x1d1   :  { %v707_v10 = vld [vmem:[#allocation5 + $0x14b0] sm:$0xff]  ;;  %1513 = vmatpush.msra.mxu1 %v647_v9  ;;  %v80_v9 = vld [vmem:[#allocation5 + $0x118] sm:$0xff] }
 0x1d2   :  { %v775_v11 = vld [vmem:[#allocation5 + $0x16d0] sm:$0xff]  ;;  %1534 = vmatpush.msra.mxu2 %v707_v10  ;;  %v148_v10 = vld [vmem:[#allocation5 + $0x338] sm:$0xff] }
 0x1d3   :  { %v575_v22 = vld [vmem:[#allocation5 + $0x1090] sm:$0xff]  ;;  %1553 = vmatpush.msra.mxu3 %v775_v11  ;;  %v208_v11 = vld [vmem:[#allocation5 + $0x518] sm:$0xff] }
 0x1d4   :  { %v643_v23 = vld [vmem:[#allocation5 + $0x12b0] sm:$0xff]  ;;  %1495 = vmatpush.msra.mxu0 %v575_v22  ;;  %v276_v22 = vld [vmem:[#allocation5 + $0x738] sm:$0xff] }
 0x1d5   :  { %v703_v13 = vld [vmem:[#allocation5 + $0x1490] sm:$0xff]  ;;  %1514 = vmatpush.msra.mxu1 %v643_v23  ;;  %v76_v23 = vld [vmem:[#allocation5 + $0xf8] sm:$0xff] }
 0x1d6   :  { %v771_v14 = vld [vmem:[#allocation5 + $0x16b0] sm:$0xff]  ;;  %1535 = vmatpush.msra.mxu2 %v703_v13  ;;  %v144_v13 = vld [vmem:[#allocation5 + $0x318] sm:$0xff] }
 0x1d7   :  { %v571_v12 = vld [vmem:[#allocation5 + $0x1070] sm:$0xff]  ;;  %1554 = vmatpush.msra.mxu3 %v771_v14  ;;  %v204_v14 = vld [vmem:[#allocation5 + $0x4f8] sm:$0xff] }
 0x1d8   :  { %v639_v15 = vld [vmem:[#allocation5 + $0x1290] sm:$0xff]  ;;  %1496 = vmatpush.msra.mxu0 %v571_v12  ;;  %v272_v12 = vld [vmem:[#allocation5 + $0x718] sm:$0xff] }
 0x1d9   :  { %v699_v16 = vld [vmem:[#allocation5 + $0x1470] sm:$0xff]  ;;  %1515 = vmatpush.msra.mxu1 %v639_v15  ;;  %v72_v15 = vld [vmem:[#allocation5 + $0xd8] sm:$0xff] }
 0x1da   :  { %v767_v18 = vld [vmem:[#allocation5 + $0x1690] sm:$0xff]  ;;  %1536 = vmatpush.msra.mxu2 %v699_v16  ;;  %v140_v16 = vld [vmem:[#allocation5 + $0x2f8] sm:$0xff] }
 0x1db   :  { %v567_v28 = vld [vmem:[#allocation5 + $0x1050] sm:$0xff]  ;;  %1555 = vmatpush.msra.mxu3 %v767_v18  ;;  %v200_v18 = vld [vmem:[#allocation5 + $0x4d8] sm:$0xff] }
 0x1dc   :  { %v635_v19 = vld [vmem:[#allocation5 + $0x1270] sm:$0xff]  ;;  %1497 = vmatpush.msra.mxu0 %v567_v28  ;;  %v268_v28 = vld [vmem:[#allocation5 + $0x6f8] sm:$0xff] }
 0x1dd   :  { %v695_v20 = vld [vmem:[#allocation5 + $0x1450] sm:$0xff]  ;;  %1516 = vmatpush.msra.mxu1 %v635_v19  ;;  %v68_v19 = vld [vmem:[#allocation5 + $0xb8] sm:$0xff] }
 0x1de   :  { %v763_v21 = vld [vmem:[#allocation5 + $0x1670] sm:$0xff]  ;;  %1537 = vmatpush.msra.mxu2 %v695_v20  ;;  %v136_v20 = vld [vmem:[#allocation5 + $0x2d8] sm:$0xff] }
 0x1df   :  { %v563_v25 = vld [vmem:[#allocation5 + $0x1030] sm:$0xff]  ;;  %1556 = vmatpush.msra.mxu3 %v763_v21  ;;  %v196_v21 = vld [vmem:[#allocation5 + $0x4b8] sm:$0xff] }
 0x1e0   :  { %v631_v26 = vld [vmem:[#allocation5 + $0x1250] sm:$0xff]  ;;  %1498 = vmatpush.msra.mxu0 %v563_v25  ;;  %v264_v25 = vld [vmem:[#allocation5 + $0x6d8] sm:$0xff] }
 0x1e1   :  { %v691_v27 = vld [vmem:[#allocation5 + $0x1430] sm:$0xff]  ;;  %1517 = vmatpush.msra.mxu1 %v631_v26  ;;  %v64_v26 = vld [vmem:[#allocation5 + $0x98] sm:$0xff] }
 0x1e2   :  { %v759_v29 = vld [vmem:[#allocation5 + $0x1650] sm:$0xff]  ;;  %1538 = vmatpush.msra.mxu2 %v691_v27  ;;  %v132_v27 = vld [vmem:[#allocation5 + $0x2b8] sm:$0xff] }
 0x1e3   :  { %v559_v30 = vld [vmem:[#allocation5 + $0x1010] sm:$0xff]  ;;  %1557 = vmatpush.msra.mxu3 %v759_v29  ;;  %v192_v29 = vld [vmem:[#allocation5 + $0x498] sm:$0xff] }
 0x1e4   :  { %v627_v31 = vld [vmem:[#allocation5 + $0x1230] sm:$0xff]  ;;  %1499 = vmatpush.msra.mxu0 %v559_v30  ;;  %v260_v30 = vld [vmem:[#allocation5 + $0x6b8] sm:$0xff] }
 0x1e5   :  { %v687_v32 = vld [vmem:[#allocation5 + $0x1410] sm:$0xff]  ;;  %1518 = vmatpush.msra.mxu1 %v627_v31  ;;  %1500 = vmatmul.f32.vlgmr.msra.gmra.mxu0 %v2023_v38  ;;  %v60_v31 = vld [vmem:[#allocation5 + $0x78] sm:$0xff] }
 0x1e6   :  { %v755_v33 = vld [vmem:[#allocation5 + $0x1630] sm:$0xff]  ;;  %1539 = vmatpush.msra.mxu2 %v687_v32  ;;  %1564 = vmatpush.msrb.mxu0 %v108_v34  ;;  %v128_v32 = vld [vmem:[#allocation5 + $0x298] sm:$0xff] }
 0x1e7   :  { %1558 = vmatpush.msra.mxu3 %v755_v33  ;;  %v623_v36 = vld [vmem:[#allocation5 + $0x1210] sm:$0xff]  ;;  %v188_v33 = vld [vmem:[#allocation5 + $0x478] sm:$0xff] }
 0x1e8   :  { %v751_v37 = vld [vmem:[#allocation5 + $0x1610] sm:$0xff]  ;;  %1604 = vmatpush.msrb.mxu2 %v236_v35  ;;  %1519 = vmatpush.msra.mxu1 %v623_v36  ;;  %v256_v34 = vld [vmem:[#allocation5 + $0x698] sm:$0xff] }
 0x1e9   :  { %v2026_v39 = vld.sshfl [vmem:[#allocation1 + $0x10] sm:$0xff pattern:$0x73625140]  ;;  %1559 = vmatpush.msra.mxu3 %v751_v37  ;;  %1520 = vmatmul.f32.vlgmr.msra.gmra.mxu1 %v2029_v50  ;;  %v56_v35 = vld [vmem:[#allocation5 + $0x58] sm:$0xff] }
 0x1ea   :  { %1540 = vmatmul.f32.vlgmr.msra.gmra.mxu2 %v2026_v39  ;;  %1560 = vmatmul.f32.vlgmr.msra.gmra.mxu3 %v2032_v52  ;;  %v124_v36 = vld [vmem:[#allocation5 + $0x278] sm:$0xff] }
 0x1eb   :  { %1565 = vmatpush.msrb.mxu0 %v104_v40  ;;  %1584 = vmatpush.msrb.mxu1 %v172_v42  ;;  %v184_v37 = vld [vmem:[#allocation5 + $0x458] sm:$0xff] }
 0x1ec   :  { %1605 = vmatpush.msrb.mxu2 %v232_v47  ;;  %1624 = vmatpush.msrb.mxu3 %v300_v48  ;;  %v252_v40 = vld [vmem:[#allocation5 + $0x678] sm:$0xff] }
 0x1ed   :  { %1566 = vmatpush.msrb.mxu0 %v100_v53  ;;  %1585 = vmatpush.msrb.mxu1 %v168_v54  ;;  %v52_v42 = vld [vmem:[#allocation5 + $0x38] sm:$0xff] }
 0x1ee   :  { %1606 = vmatpush.msrb.mxu2 %v228_v55  ;;  %1625 = vmatpush.msrb.mxu3 %v296_v57  ;;  %v120_v47 = vld [vmem:[#allocation5 + $0x258] sm:$0xff] }
 0x1ef   :  { %1567 = vmatpush.msrb.mxu0 %v96_v58  ;;  %1586 = vmatpush.msrb.mxu1 %v164_v59  ;;  %v180_v48 = vld [vmem:[#allocation5 + $0x438] sm:$0xff] }
 0x1f0   :  { %1607 = vmatpush.msrb.mxu2 %v224_v60  ;;  %1626 = vmatpush.msrb.mxu3 %v292_v61  ;;  %v248_v53 = vld [vmem:[#allocation5 + $0x658] sm:$0xff] }
 0x1f1   :  { %1568 = vmatpush.msrb.mxu0 %v92_v62  ;;  %1587 = vmatpush.msrb.mxu1 %v160_v63  ;;  %v48_v54 = vld [vmem:[#allocation5 + $0x18] sm:$0xff] }
 0x1f2   :  { %1608 = vmatpush.msrb.mxu2 %v220_v0  ;;  %1627 = vmatpush.msrb.mxu3 %v288_v1  ;;  %v116_v55 = vld [vmem:[#allocation5 + $0x238] sm:$0xff] }
 0x1f3   :  { %1569 = vmatpush.msrb.mxu0 %v88_v2  ;;  %1588 = vmatpush.msrb.mxu1 %v156_v3  ;;  %v176_v57 = vld [vmem:[#allocation5 + $0x418] sm:$0xff] }
 0x1f4   :  { %1609 = vmatpush.msrb.mxu2 %v216_v4  ;;  %1628 = vmatpush.msrb.mxu3 %v284_v5  ;;  %v244_v58 = vld [vmem:[#allocation5 + $0x638] sm:$0xff] }
 0x1f5   :  { %1570 = vmatpush.msrb.mxu0 %v84_v6  ;;  %1589 = vmatpush.msrb.mxu1 %v152_v7  ;;  %v364_v59 = vld [vmem:[#allocation5 + $0x9f8] sm:$0xff] }
 0x1f6   :  { %1610 = vmatpush.msrb.mxu2 %v212_v8  ;;  %1629 = vmatpush.msrb.mxu3 %v280_v17  ;;  %v492_v60 = vld [vmem:[#allocation5 + $0xdf8] sm:$0xff] }
 0x1f7   :  { %1571 = vmatpush.msrb.mxu0 %v80_v9  ;;  %1590 = vmatpush.msrb.mxu1 %v148_v10  ;;  %v112_v61 = vld [vmem:[#allocation5 + $0x218] sm:$0xff] }
 0x1f8   :  { %1611 = vmatpush.msrb.mxu2 %v208_v11  ;;  %1630 = vmatpush.msrb.mxu3 %v276_v22  ;;  %v240_v62 = vld [vmem:[#allocation5 + $0x618] sm:$0xff] }
 0x1f9   :  { %1572 = vmatpush.msrb.mxu0 %v76_v23  ;;  %1591 = vmatpush.msrb.mxu1 %v144_v13  ;;  %v360_v63 = vld [vmem:[#allocation5 + $0x9d8] sm:$0xff] }
 0x1fa   :  { %1612 = vmatpush.msrb.mxu2 %v204_v14  ;;  %1631 = vmatpush.msrb.mxu3 %v272_v12  ;;  %v428_v0 = vld [vmem:[#allocation5 + $0xbf8] sm:$0xff] }
 0x1fb   :  { %1573 = vmatpush.msrb.mxu0 %v72_v15  ;;  %1592 = vmatpush.msrb.mxu1 %v140_v16  ;;  %v488_v1 = vld [vmem:[#allocation5 + $0xdd8] sm:$0xff] }
 0x1fc   :  { %1613 = vmatpush.msrb.mxu2 %v200_v18  ;;  %1632 = vmatpush.msrb.mxu3 %v268_v28  ;;  %v556_v2 = vld [vmem:[#allocation5 + $0xff8] sm:$0xff] }
 0x1fd   :  { %1574 = vmatpush.msrb.mxu0 %v68_v19  ;;  %1593 = vmatpush.msrb.mxu1 %v136_v20  ;;  %v356_v3 = vld [vmem:[#allocation5 + $0x9b8] sm:$0xff] }
 0x1fe   :  { %1614 = vmatpush.msrb.mxu2 %v196_v21  ;;  %1633 = vmatpush.msrb.mxu3 %v264_v25  ;;  %v424_v4 = vld [vmem:[#allocation5 + $0xbd8] sm:$0xff] }
 0x1ff   :  { %1575 = vmatpush.msrb.mxu0 %v64_v26  ;;  %1594 = vmatpush.msrb.mxu1 %v132_v27  ;;  %v484_v5 = vld [vmem:[#allocation5 + $0xdb8] sm:$0xff] }
 0x200   :  { %1615 = vmatpush.msrb.mxu2 %v192_v29  ;;  %1634 = vmatpush.msrb.mxu3 %v260_v30  ;;  %v552_v6 = vld [vmem:[#allocation5 + $0xfd8] sm:$0xff] }
 0x201   :  { %1576 = vmatpush.msrb.mxu0 %v60_v31  ;;  %1595 = vmatpush.msrb.mxu1 %v128_v32  ;;  %v352_v7 = vld [vmem:[#allocation5 + $0x998] sm:$0xff] }
 0x202   :  { %1616 = vmatpush.msrb.mxu2 %v188_v33  ;;  %1635 = vmatpush.msrb.mxu3 %v256_v34  ;;  %v420_v8 = vld [vmem:[#allocation5 + $0xbb8] sm:$0xff] }
 0x203   :  { %1577 = vmatpush.msrb.mxu0 %v56_v35  ;;  %1596 = vmatpush.msrb.mxu1 %v124_v36  ;;  %v480_v17 = vld [vmem:[#allocation5 + $0xd98] sm:$0xff] }
 0x204   :  { %1617 = vmatpush.msrb.mxu2 %v184_v37  ;;  %1636 = vmatpush.msrb.mxu3 %v252_v40  ;;  %v548_v9 = vld [vmem:[#allocation5 + $0xfb8] sm:$0xff] }
 0x205   :  { %1578 = vmatpush.msrb.mxu0 %v52_v42  ;;  %1597 = vmatpush.msrb.mxu1 %v120_v47  ;;  %v348_v10 = vld [vmem:[#allocation5 + $0x978] sm:$0xff] }
 0x206   :  { %1618 = vmatpush.msrb.mxu2 %v180_v48  ;;  %1637 = vmatpush.msrb.mxu3 %v248_v53  ;;  %v416_v11 = vld [vmem:[#allocation5 + $0xb98] sm:$0xff] }
 0x207   :  { %1579 = vmatpush.msrb.mxu0 %v48_v54  ;;  %1598 = vmatpush.msrb.mxu1 %v116_v55  ;;  %v476_v22 = vld [vmem:[#allocation5 + $0xd78] sm:$0xff] }
 0x208   :  { %1619 = vmatpush.msrb.mxu2 %v176_v57  ;;  %1638 = vmatpush.msrb.mxu3 %v244_v58  ;;  %v544_v23 = vld [vmem:[#allocation5 + $0xf98] sm:$0xff] }
 0x209   :  { %1644 = vmatpush.msra.mxu0 %v364_v59  ;;  %1599 = vmatpush.msrb.mxu1 %v112_v61  ;;  %v344_v13 = vld [vmem:[#allocation5 + $0x958] sm:$0xff] }
 0x20a   :  { %1684 = vmatpush.msra.mxu2 %v492_v60  ;;  %1639 = vmatpush.msrb.mxu3 %v240_v62  ;;  %v412_v14 = vld [vmem:[#allocation5 + $0xb78] sm:$0xff] }
 0x20b   :  { %1645 = vmatpush.msra.mxu0 %v360_v63  ;;  %1664 = vmatpush.msra.mxu1 %v428_v0  ;;  %v472_v12 = vld [vmem:[#allocation5 + $0xd58] sm:$0xff] }
 0x20c   :  { %1685 = vmatpush.msra.mxu2 %v488_v1  ;;  %1704 = vmatpush.msra.mxu3 %v556_v2  ;;  %v540_v15 = vld [vmem:[#allocation5 + $0xf78] sm:$0xff] }
 0x20d   :  { %1646 = vmatpush.msra.mxu0 %v356_v3  ;;  %1665 = vmatpush.msra.mxu1 %v424_v4  ;;  %v340_v16 = vld [vmem:[#allocation5 + $0x938] sm:$0xff] }
 0x20e   :  { %1686 = vmatpush.msra.mxu2 %v484_v5  ;;  %1705 = vmatpush.msra.mxu3 %v552_v6  ;;  %v408_v18 = vld [vmem:[#allocation5 + $0xb58] sm:$0xff] }
 0x20f   :  { %1647 = vmatpush.msra.mxu0 %v352_v7  ;;  %1666 = vmatpush.msra.mxu1 %v420_v8  ;;  %v468_v28 = vld [vmem:[#allocation5 + $0xd38] sm:$0xff] }
 0x210   :  { %1687 = vmatpush.msra.mxu2 %v480_v17  ;;  %1706 = vmatpush.msra.mxu3 %v548_v9  ;;  %v536_v19 = vld [vmem:[#allocation5 + $0xf58] sm:$0xff] }
 0x211   :  { %1648 = vmatpush.msra.mxu0 %v348_v10  ;;  %1667 = vmatpush.msra.mxu1 %v416_v11  ;;  %v336_v20 = vld [vmem:[#allocation5 + $0x918] sm:$0xff] }
 0x212   :  { %1688 = vmatpush.msra.mxu2 %v476_v22  ;;  %1707 = vmatpush.msra.mxu3 %v544_v23  ;;  %v404_v21 = vld [vmem:[#allocation5 + $0xb38] sm:$0xff] }
 0x213   :  { %1649 = vmatpush.msra.mxu0 %v344_v13  ;;  %1668 = vmatpush.msra.mxu1 %v412_v14  ;;  %v464_v25 = vld [vmem:[#allocation5 + $0xd18] sm:$0xff] }
 0x214   :  { %1689 = vmatpush.msra.mxu2 %v472_v12  ;;  %1708 = vmatpush.msra.mxu3 %v540_v15  ;;  %v532_v26 = vld [vmem:[#allocation5 + $0xf38] sm:$0xff] }
 0x215   :  { %1650 = vmatpush.msra.mxu0 %v340_v16  ;;  %1669 = vmatpush.msra.mxu1 %v408_v18  ;;  %v332_v27 = vld [vmem:[#allocation5 + $0x8f8] sm:$0xff] }
 0x216   :  { %1690 = vmatpush.msra.mxu2 %v468_v28  ;;  %1709 = vmatpush.msra.mxu3 %v536_v19  ;;  %v400_v29 = vld [vmem:[#allocation5 + $0xb18] sm:$0xff] }
 0x217   :  { %1651 = vmatpush.msra.mxu0 %v336_v20  ;;  %1670 = vmatpush.msra.mxu1 %v404_v21  ;;  %v460_v30 = vld [vmem:[#allocation5 + $0xcf8] sm:$0xff] }
 0x218   :  { %v528_v31 = vld [vmem:[#allocation5 + $0xf18] sm:$0xff]  ;;  %1691 = vmatpush.msra.mxu2 %v464_v25  ;;  %1710 = vmatpush.msra.mxu3 %v532_v26 }
 0x219   :  { %v328_v32 = vld [vmem:[#allocation5 + $0x8d8] sm:$0xff]  ;;  %1652 = vmatpush.msra.mxu0 %v332_v27  ;;  %1671 = vmatpush.msra.mxu1 %v400_v29 }
 0x21a   :  { %v396_v33 = vld [vmem:[#allocation5 + $0xaf8] sm:$0xff]  ;;  %1692 = vmatpush.msra.mxu2 %v460_v30  ;;  %1711 = vmatpush.msra.mxu3 %v528_v31 }
 0x21b   :  { %v456_v34 = vld [vmem:[#allocation5 + $0xcd8] sm:$0xff]  ;;  %1653 = vmatpush.msra.mxu0 %v328_v32  ;;  %1672 = vmatpush.msra.mxu1 %v396_v33 }
 0x21c   :  { %v524_v35 = vld [vmem:[#allocation5 + $0xef8] sm:$0xff]  ;;  %1693 = vmatpush.msra.mxu2 %v456_v34  ;;  %1580 = vmatmul.f32.vlgmr.msrb.gmra.mxu0 %v1956_v44 }
 0x21d   :  { %v324_v36 = vld [vmem:[#allocation5 + $0x8b8] sm:$0xff]  ;;  %1712 = vmatpush.msra.mxu3 %v524_v35  ;;  %1620 = vmatmul.f32.vlgmr.msrb.gmra.mxu2 %v1954_v43 }
 0x21e   :  { %v392_v37 = vld [vmem:[#allocation5 + $0xad8] sm:$0xff]  ;;  %1654 = vmatpush.msra.mxu0 %v324_v36  ;;  %1640 = vmatmul.f32.vlgmr.msrb.gmra.mxu3 %v1958_v45 }
 0x21f   :  { %v452_v40 = vld [vmem:[#allocation5 + $0xcb8] sm:$0xff]  ;;  %1673 = vmatpush.msra.mxu1 %v392_v37 }
 0x220   :  { %v520_v42 = vld [vmem:[#allocation5 + $0xed8] sm:$0xff]  ;;  %1694 = vmatpush.msra.mxu2 %v452_v40  ;;  %1600 = vmatmul.f32.vlgmr.msrb.gmra.mxu1 %v1960_v46 }
 0x221   :  { %v320_v47 = vld [vmem:[#allocation5 + $0x898] sm:$0xff]  ;;  %1713 = vmatpush.msra.mxu3 %v520_v42 }
 0x222   :  { %v388_v48 = vld [vmem:[#allocation5 + $0xab8] sm:$0xff]  ;;  %1655 = vmatpush.msra.mxu0 %v320_v47 }
 0x223   :  { %v448_v53 = vld [vmem:[#allocation5 + $0xc98] sm:$0xff]  ;;  %1674 = vmatpush.msra.mxu1 %v388_v48 }
 0x224   :  { %v516_v54 = vld [vmem:[#allocation5 + $0xeb8] sm:$0xff]  ;;  %1695 = vmatpush.msra.mxu2 %v448_v53 }
 0x225   :  { %v316_v55 = vld [vmem:[#allocation5 + $0x878] sm:$0xff]  ;;  %1714 = vmatpush.msra.mxu3 %v516_v54 }
 0x226   :  { %v384_v57 = vld [vmem:[#allocation5 + $0xa98] sm:$0xff]  ;;  %1656 = vmatpush.msra.mxu0 %v316_v55 }
 0x227   :  { %v444_v58 = vld [vmem:[#allocation5 + $0xc78] sm:$0xff]  ;;  %1675 = vmatpush.msra.mxu1 %v384_v57 }
 0x228   :  { %v512_v59 = vld [vmem:[#allocation5 + $0xe98] sm:$0xff]  ;;  %1696 = vmatpush.msra.mxu2 %v444_v58 }
 0x229   :  { %v312_v60 = vld [vmem:[#allocation5 + $0x858] sm:$0xff]  ;;  %1715 = vmatpush.msra.mxu3 %v512_v59 }
 0x22a   :  { %v380_v61 = vld [vmem:[#allocation5 + $0xa78] sm:$0xff]  ;;  %1657 = vmatpush.msra.mxu0 %v312_v60 }
 0x22b   :  { %v440_v62 = vld [vmem:[#allocation5 + $0xc58] sm:$0xff]  ;;  %1676 = vmatpush.msra.mxu1 %v380_v61 }
 0x22c   :  { %v508_v63 = vld [vmem:[#allocation5 + $0xe78] sm:$0xff]  ;;  %1697 = vmatpush.msra.mxu2 %v440_v62 }
 0x22d   :  { %v308_v0 = vld [vmem:[#allocation5 + $0x838] sm:$0xff]  ;;  %1716 = vmatpush.msra.mxu3 %v508_v63 }
 0x22e   :  { %v376_v1 = vld [vmem:[#allocation5 + $0xa58] sm:$0xff]  ;;  %1658 = vmatpush.msra.mxu0 %v308_v0 }
 0x22f   :  { %v436_v2 = vld [vmem:[#allocation5 + $0xc38] sm:$0xff]  ;;  %1677 = vmatpush.msra.mxu1 %v376_v1 }
 0x230   :  { %v504_v3 = vld [vmem:[#allocation5 + $0xe58] sm:$0xff]  ;;  %1698 = vmatpush.msra.mxu2 %v436_v2 }
 0x231   :  { %v304_v4 = vld [vmem:[#allocation5 + $0x818] sm:$0xff]  ;;  %1717 = vmatpush.msra.mxu3 %v504_v3 }
 0x232   :  { %v372_v5 = vld [vmem:[#allocation5 + $0xa38] sm:$0xff]  ;;  %1659 = vmatpush.msra.mxu0 %v304_v4 }
 0x233   :  { %v432_v6 = vld [vmem:[#allocation5 + $0xc18] sm:$0xff]  ;;  %1678 = vmatpush.msra.mxu1 %v372_v5  ;;  %1660 = vmatmul.f32.vlgmr.msra.gmra.mxu0 %v2014_v49 }
 0x234   :  { %v500_v7 = vld [vmem:[#allocation5 + $0xe38] sm:$0xff]  ;;  %1699 = vmatpush.msra.mxu2 %v432_v6 }
 0x235   :  { %v620_v8 = vld [vmem:[#allocation5 + $0x11f8] sm:$0xff]  ;;  %1718 = vmatpush.msra.mxu3 %v500_v7  ;;  %1700 = vmatmul.f32.vlgmr.msra.gmra.mxu2 %v2011_v41 }
 0x236   :  { %v748_v17 = vld [vmem:[#allocation5 + $0x15f8] sm:$0xff]  ;;  %1724 = vmatpush.msrb.mxu0 %v620_v8 }
 0x237   :  { %v368_v9 = vld [vmem:[#allocation5 + $0xa18] sm:$0xff]  ;;  %1764 = vmatpush.msrb.mxu2 %v748_v17 }
 0x238   :  { %v496_v10 = vld [vmem:[#allocation5 + $0xe18] sm:$0xff]  ;;  %1679 = vmatpush.msra.mxu1 %v368_v9 }
 0x239   :  { %v616_v11 = vld [vmem:[#allocation5 + $0x11d8] sm:$0xff]  ;;  %1719 = vmatpush.msra.mxu3 %v496_v10  ;;  %1680 = vmatmul.f32.vlgmr.msra.gmra.mxu1 %v2020_v56 }
 0x23a   :  { %v684_v22 = vld [vmem:[#allocation5 + $0x13f8] sm:$0xff]  ;;  %1725 = vmatpush.msrb.mxu0 %v616_v11  ;;  %1720 = vmatmul.f32.vlgmr.msra.gmra.mxu3 %v2017_v51 }
 0x23b   :  { %v744_v23 = vld [vmem:[#allocation5 + $0x15d8] sm:$0xff]  ;;  %1744 = vmatpush.msrb.mxu1 %v684_v22 }
 0x23c   :  { %v812_v13 = vld [vmem:[#allocation5 + $0x17f8] sm:$0xff]  ;;  %1765 = vmatpush.msrb.mxu2 %v744_v23 }
 0x23d   :  { %v612_v43 = vld [vmem:[#allocation5 + $0x11b8] sm:$0xff]  ;;  %1784 = vmatpush.msrb.mxu3 %v812_v13  ;;  %v1121_v13 = vpop.f32.mrf.mxu1 }
 0x23e   :  { %v680_v14 = vld [vmem:[#allocation5 + $0x13d8] sm:$0xff]  ;;  %1726 = vmatpush.msrb.mxu0 %v612_v43  ;;  %v1101_v43 = vpop.f32.mrf.mxu0 }
 0x23f   :  { %v740_v12 = vld [vmem:[#allocation5 + $0x15b8] sm:$0xff]  ;;  %1745 = vmatpush.msrb.mxu1 %v680_v14  ;;  %v1141_v14 = vpop.f32.mrf.mxu2 }
 0x240   :  { %v808_v15 = vld [vmem:[#allocation5 + $0x17d8] sm:$0xff]  ;;  %1766 = vmatpush.msrb.mxu2 %v740_v12  ;;  %v1161_v12 = vpop.f32.mrf.mxu3 }
 0x241   :  { %v608_v44 = vld [vmem:[#allocation5 + $0x1198] sm:$0xff]  ;;  %1785 = vmatpush.msrb.mxu3 %v808_v15 }
 0x242   :  { %v676_v45 = vld [vmem:[#allocation5 + $0x13b8] sm:$0xff]  ;;  %1727 = vmatpush.msrb.mxu0 %v608_v44 }
 0x243   :  { %v736_v16 = vld [vmem:[#allocation5 + $0x1598] sm:$0xff]  ;;  %1746 = vmatpush.msrb.mxu1 %v676_v45 }
 0x244   :  { %v804_v18 = vld [vmem:[#allocation5 + $0x17b8] sm:$0xff]  ;;  %1767 = vmatpush.msrb.mxu2 %v736_v16 }
 0x245   :  { %v604_v46 = vld [vmem:[#allocation5 + $0x1178] sm:$0xff]  ;;  %1786 = vmatpush.msrb.mxu3 %v804_v18  ;;  %v1201_v15 = vpop.f32.mrf.mxu1 }
 0x246   :  { %v672_v28 = vld [vmem:[#allocation5 + $0x1398] sm:$0xff]  ;;  %1728 = vmatpush.msrb.mxu0 %v604_v46  ;;  %v1181_v44 = vpop.f32.mrf.mxu0 }
 0x247   :  { %v732_v19 = vld [vmem:[#allocation5 + $0x1578] sm:$0xff]  ;;  %1747 = vmatpush.msrb.mxu1 %v672_v28  ;;  %v1221_v45 = vpop.f32.mrf.mxu2 }
 0x248   :  { %v800_v20 = vld [vmem:[#allocation5 + $0x1798] sm:$0xff]  ;;  %1768 = vmatpush.msrb.mxu2 %v732_v19  ;;  %v1241_v16 = vpop.f32.mrf.mxu3 }
 0x249   :  { %v600_v21 = vld [vmem:[#allocation5 + $0x1158] sm:$0xff]  ;;  %1787 = vmatpush.msrb.mxu3 %v800_v20 }
 0x24a   :  { %v668_v25 = vld [vmem:[#allocation5 + $0x1378] sm:$0xff]  ;;  %1729 = vmatpush.msrb.mxu0 %v600_v21 }
 0x24b   :  { %v728_v26 = vld [vmem:[#allocation5 + $0x1558] sm:$0xff]  ;;  %1748 = vmatpush.msrb.mxu1 %v668_v25 }
 0x24c   :  { %v796_v27 = vld [vmem:[#allocation5 + $0x1778] sm:$0xff]  ;;  %1769 = vmatpush.msrb.mxu2 %v728_v26 }
 0x24d   :  { %v596_v41 = vld [vmem:[#allocation5 + $0x1138] sm:$0xff]  ;;  %1788 = vmatpush.msrb.mxu3 %v796_v27  ;;  %v1281_v18 = vpop.f32.mrf.mxu1 }
 0x24e   :  { %v664_v29 = vld [vmem:[#allocation5 + $0x1358] sm:$0xff]  ;;  %1730 = vmatpush.msrb.mxu0 %v596_v41  ;;  %v1261_v46 = vpop.f32.mrf.mxu0 }
 0x24f   :  { %v724_v30 = vld [vmem:[#allocation5 + $0x1538] sm:$0xff]  ;;  %1749 = vmatpush.msrb.mxu1 %v664_v29  ;;  %v1301_v28 = vpop.f32.mrf.mxu2 }
 0x250   :  { %v792_v31 = vld [vmem:[#allocation5 + $0x1758] sm:$0xff]  ;;  %1770 = vmatpush.msrb.mxu2 %v724_v30  ;;  %v1122_v30 = vadd.f32 %v1121_v13, %v1101_v43 }
 0x251   :  { %v592_v49 = vld [vmem:[#allocation5 + $0x1118] sm:$0xff]  ;;  %1789 = vmatpush.msrb.mxu3 %v792_v31 }
 0x252   :  { %v660_v51 = vld [vmem:[#allocation5 + $0x1338] sm:$0xff]  ;;  %1731 = vmatpush.msrb.mxu0 %v592_v49 }
 0x253   :  { %v720_v32 = vld [vmem:[#allocation5 + $0x1518] sm:$0xff]  ;;  %1750 = vmatpush.msrb.mxu1 %v660_v51 }
 0x254   :  { %v788_v33 = vld [vmem:[#allocation5 + $0x1738] sm:$0xff]  ;;  %1771 = vmatpush.msrb.mxu2 %v720_v32  ;;  %v1142_v32 = vadd.f32 %v1141_v14, %v1122_v30 }
 0x255   :  { %v588_v34 = vld [vmem:[#allocation5 + $0x10f8] sm:$0xff]  ;;  %1790 = vmatpush.msrb.mxu3 %v788_v33  ;;  %v1361_v19 = vpop.f32.mrf.mxu1 }
 0x256   :  { %v656_v35 = vld [vmem:[#allocation5 + $0x1318] sm:$0xff]  ;;  %1732 = vmatpush.msrb.mxu0 %v588_v34 }
 0x257   :  { %v716_v56 = vld [vmem:[#allocation5 + $0x14f8] sm:$0xff]  ;;  %1751 = vmatpush.msrb.mxu1 %v656_v35  ;;  %v1381_v20 = vpop.f32.mrf.mxu2 }
 0x258   :  { %v784_v36 = vld [vmem:[#allocation5 + $0x1718] sm:$0xff]  ;;  %1772 = vmatpush.msrb.mxu2 %v716_v56 }
 0x259   :  { %v584_v37 = vld [vmem:[#allocation5 + $0x10d8] sm:$0xff]  ;;  %1791 = vmatpush.msrb.mxu3 %v784_v36  ;;  %v1162_v36 = vadd.f32 %v1161_v12, %v1142_v32 }
 0x25a   :  { %v652_v40 = vld [vmem:[#allocation5 + $0x12f8] sm:$0xff]  ;;  %1733 = vmatpush.msrb.mxu0 %v584_v37 }
 0x25b   :  { %v712_v42 = vld [vmem:[#allocation5 + $0x14d8] sm:$0xff]  ;;  %1752 = vmatpush.msrb.mxu1 %v652_v40 }
 0x25c   :  { %v780_v47 = vld [vmem:[#allocation5 + $0x16f8] sm:$0xff]  ;;  %1773 = vmatpush.msrb.mxu2 %v712_v42 }
 0x25d   :  { %v580_v48 = vld [vmem:[#allocation5 + $0x10b8] sm:$0xff]  ;;  %1792 = vmatpush.msrb.mxu3 %v780_v47  ;;  %v1441_v25 = vpop.f32.mrf.mxu1  ;;  %v1182_v47 = vadd.f32 %v1181_v44, %v1162_v36 }
 0x25e   :  { %v648_v53 = vld [vmem:[#allocation5 + $0x12d8] sm:$0xff]  ;;  %1734 = vmatpush.msrb.mxu0 %v580_v48 }
 0x25f   :  { %v708_v54 = vld [vmem:[#allocation5 + $0x14b8] sm:$0xff]  ;;  %1753 = vmatpush.msrb.mxu1 %v648_v53  ;;  %v1461_v26 = vpop.f32.mrf.mxu2 }
 0x260   :  { %v776_v55 = vld [vmem:[#allocation5 + $0x16d8] sm:$0xff]  ;;  %1774 = vmatpush.msrb.mxu2 %v708_v54 }
 0x261   :  { %v576_v57 = vld [vmem:[#allocation5 + $0x1098] sm:$0xff]  ;;  %1793 = vmatpush.msrb.mxu3 %v776_v55  ;;  %v1202_v55 = vadd.f32 %v1201_v15, %v1182_v47 }
 0x262   :  { %v644_v58 = vld [vmem:[#allocation5 + $0x12b8] sm:$0xff]  ;;  %1735 = vmatpush.msrb.mxu0 %v576_v57 }
 0x263   :  { %v704_v59 = vld [vmem:[#allocation5 + $0x1498] sm:$0xff]  ;;  %1754 = vmatpush.msrb.mxu1 %v644_v58 }
 0x264   :  { %v772_v60 = vld [vmem:[#allocation5 + $0x16b8] sm:$0xff]  ;;  %1775 = vmatpush.msrb.mxu2 %v704_v59 }
 0x265   :  { %v572_v61 = vld [vmem:[#allocation5 + $0x1078] sm:$0xff]  ;;  %1794 = vmatpush.msrb.mxu3 %v772_v60  ;;  %v1222_v60 = vadd.f32 %v1221_v45, %v1202_v55 }
 0x266   :  { %v640_v62 = vld [vmem:[#allocation5 + $0x1298] sm:$0xff]  ;;  %1736 = vmatpush.msrb.mxu0 %v572_v61  ;;  %v1521_v27 = vpop.f32.mrf.mxu1 }
 0x267   :  { %v700_v63 = vld [vmem:[#allocation5 + $0x1478] sm:$0xff]  ;;  %1755 = vmatpush.msrb.mxu1 %v640_v62 }
 0x268   :  { %v768_v0 = vld [vmem:[#allocation5 + $0x1698] sm:$0xff]  ;;  %1776 = vmatpush.msrb.mxu2 %v700_v63 }
 0x269   :  { %v568_v1 = vld [vmem:[#allocation5 + $0x1058] sm:$0xff]  ;;  %1795 = vmatpush.msrb.mxu3 %v768_v0  ;;  %v1242_v0 = vadd.f32 %v1241_v16, %v1222_v60 }
 0x26a   :  { %v636_v2 = vld [vmem:[#allocation5 + $0x1278] sm:$0xff]  ;;  %1737 = vmatpush.msrb.mxu0 %v568_v1 }
 0x26b   :  { %v696_v3 = vld [vmem:[#allocation5 + $0x1458] sm:$0xff]  ;;  %1756 = vmatpush.msrb.mxu1 %v636_v2  ;;  %v1262_v1 = vadd.f32 %v1261_v46, %v1242_v0 }
 0x26c   :  { %v764_v4 = vld [vmem:[#allocation5 + $0x1678] sm:$0xff]  ;;  %1777 = vmatpush.msrb.mxu2 %v696_v3 }
 0x26d   :  { %v564_v5 = vld [vmem:[#allocation5 + $0x1038] sm:$0xff]  ;;  %1796 = vmatpush.msrb.mxu3 %v764_v4  ;;  %v1541_v29 = vpop.f32.mrf.mxu2 }
 0x26e   :  { %v632_v6 = vld [vmem:[#allocation5 + $0x1258] sm:$0xff]  ;;  %1738 = vmatpush.msrb.mxu0 %v564_v5 }
 0x26f   :  { %v692_v7 = vld [vmem:[#allocation5 + $0x1438] sm:$0xff]  ;;  %1757 = vmatpush.msrb.mxu1 %v632_v6  ;;  %v1282_v6 = vadd.f32 %v1281_v18, %v1262_v1 }
 0x270   :  { %v760_v8 = vld [vmem:[#allocation5 + $0x1658] sm:$0xff]  ;;  %1778 = vmatpush.msrb.mxu2 %v692_v7 }
 0x271   :  { %v560_v17 = vld [vmem:[#allocation5 + $0x1018] sm:$0xff]  ;;  %1797 = vmatpush.msrb.mxu3 %v760_v8 }
 0x272   :  { %v628_v9 = vld [vmem:[#allocation5 + $0x1238] sm:$0xff]  ;;  %1739 = vmatpush.msrb.mxu0 %v560_v17  ;;  %v1302_v17 = vadd.f32 %v1301_v28, %v1282_v6 }
 0x273   :  { %v688_v10 = vld [vmem:[#allocation5 + $0x1418] sm:$0xff]  ;;  %1758 = vmatpush.msrb.mxu1 %v628_v9  ;;  %1740 = vmatmul.f32.vlgmr.msrb.gmra.mxu0 %v2023_v38  ;;  %v1321_v38 = vpop.f32.mrf.mxu3 }
 0x274   :  { %v756_v11 = vld [vmem:[#allocation5 + $0x1638] sm:$0xff]  ;;  %1779 = vmatpush.msrb.mxu2 %v688_v10 }
 0x275   :  { %v624_v22 = vld [vmem:[#allocation5 + $0x1218] sm:$0xff]  ;;  %1798 = vmatpush.msrb.mxu3 %v756_v11  ;;  %1780 = vmatmul.f32.vlgmr.msrb.gmra.mxu2 %v2026_v39  ;;  %v1341_v39 = vpop.f32.mrf.mxu0 }
 0x276   :  { %v752_v23 = vld [vmem:[#allocation5 + $0x1618] sm:$0xff]  ;;  %1759 = vmatpush.msrb.mxu1 %v624_v22  ;;  %v1362_v31 = vadd.f32 %v1361_v19, %v1341_v39 }
 0x277   :  { %1799 = vmatpush.msrb.mxu3 %v752_v23  ;;  %1760 = vmatmul.f32.vlgmr.msrb.gmra.mxu1 %v2029_v50  ;;  %v1322_v23 = vadd.f32 %v1321_v38, %v1302_v17 }
 0x278   :  { %1800 = vmatmul.f32.vlgmr.msrb.gmra.mxu3 %v2032_v52  ;;  %v1382_v34 = vadd.f32 %v1381_v20, %v1362_v31 }
 0x279   :  { %v1808_v44 = vrot.slane %v1322_v23, 6 }
 0x27b   :  { %v1401_v21 = vpop.f32.mrf.mxu3  ;;  %v1812_v46 = vsel %vm1811_vm0, %v2005_v24, %v1808_v44 }
 0x27c   :  { %v1402_v37 = vadd.f32 %v1401_v21, %v1382_v34 }
 0x27d   :  { %v1421_v50 = vpop.f32.mrf.mxu0 }
 0x27e   :  { %v1422_v48 = vadd.f32 %v1421_v50, %v1402_v37 }
 0x280   :  { %v1442_v57 = vadd.f32 %v1441_v25, %v1422_v48 }
 0x282   :  { %v1462_v61 = vadd.f32 %v1461_v26, %v1442_v57 }
 0x283   :  { %v1481_v52 = vpop.f32.mrf.mxu3 }
 0x284   :  { %v1482_v2 = vadd.f32 %v1481_v52, %v1462_v61 }
 0x285   :  { %v1501_v41 = vpop.f32.mrf.mxu0 }
 0x286   :  { %v1502_v5 = vadd.f32 %v1501_v41, %v1482_v2 }
 0x288   :  { %v1522_v9 = vadd.f32 %v1521_v27, %v1502_v5 }
 0x28a   :  { %v1542_v22 = vadd.f32 %v1541_v29, %v1522_v9 }
 0x28b   :  { %v1561_v49 = vpop.f32.mrf.mxu3 }
 0x28c   :  { %v1562_v14 = vadd.f32 %v1561_v49, %v1542_v22 }
 0x28e   :  { %v1809_v16 = vrot.slane %v1562_v14, 4 }
 0x299   :  { %v1581_v33 = vpop.f32.mrf.mxu0 }
 0x29d   :  { %v1601_v51 = vpop.f32.mrf.mxu1 }
 0x29e   :  { %v1602_v35 = vadd.f32 %v1601_v51, %v1581_v33 }
 0x2a0   :  { %v1621_v56 = vpop.f32.mrf.mxu2 }
 0x2a1   :  { %v1622_v40 = vadd.f32 %v1621_v56, %v1602_v35  ;;  %v1641_v42 = vpop.f32.mrf.mxu3 }
 0x2a3   :  { %v1642_v53 = vadd.f32 %v1641_v42, %v1622_v40 }
 0x2b0   :  { %v1661_v54 = vpop.f32.mrf.mxu0 }
 0x2b1   :  { %v1662_v58 = vadd.f32 %v1661_v54, %v1642_v53 }
 0x2b6   :  { %v1681_v59 = vpop.f32.mrf.mxu1 }
 0x2b7   :  { %v1682_v62 = vadd.f32 %v1681_v59, %v1662_v58 }
 0x2b8   :  { %v1701_v63 = vpop.f32.mrf.mxu2 }
 0x2b9   :  { %v1702_v3 = vadd.f32 %v1701_v63, %v1682_v62 }
 0x2bd   :  { %v1721_v4 = vpop.f32.mrf.mxu3 }
 0x2be   :  { %v1722_v7 = vadd.f32 %v1721_v4, %v1702_v3 }
 0x2f0   :  { %v1741_v8 = vpop.f32.mrf.mxu0 }
 0x2f1   :  { %v1742_v10 = vadd.f32 %v1741_v8, %v1722_v7 }
 0x2f4   :  { %v1761_v11 = vpop.f32.mrf.mxu1 }
 0x2f5   :  { %v1762_v13 = vadd.f32 %v1761_v11, %v1742_v10 }
 0x2f8   :  { %v1781_v43 = vpop.f32.mrf.mxu2 }
 0x2f9   :  { %v1782_v12 = vadd.f32 %v1781_v43, %v1762_v13 }
 0x2fb   :  { %v1801_v15 = vpop.f32.mrf.mxu3 }
 0x2fc   :  { %v1802_v45 = vadd.f32 %v1801_v15, %v1782_v12 }
 0x2fe   :  { %v1810_v18 = vrot.slane %v1802_v45, 2 }
 0x300   :  { %v1814_v28 = vsel %vm1813_vm1, %v1809_v16, %v1810_v18 }
 0x301   :  { %v1816_v38 = vsel %vm1815_vm2, %v1812_v46, %v1814_v28 }
 0x302   :  { %1818 = vst [vmem:[#allocation7] sm:$0xff] %v1816_v38 }
 0x303   :  { %1829 = dma.vmem_to_hbm [thread:$0]  %s1825_s1, 128, %s1827_s23, [#allocation4]  }
 0x304   :  { %1926 = dma.done.wait [#allocation4], 128  }
 0x305   :  { %1927 = vsyncadd [#allocation4], 4294967168 }
 0x306   :  { %1834 = vsyncpa [#allocation3], 1 }
 0x307   :  { %1835 = vsyncpa [#allocation6], 1 }
 0x308   :  { %1836 = vsyncpa [#allocation4], 1 }

// kernel: tpu_custom_call.1
= control target key start
LH: loop header
LB: loop body
LE: loop exit
PB: predicated region body
PF: predicated region fallthrough
CT: control target
= control target key end

     0   :  { %7 = vsyncpa [#allocation3], 0  ;;  %s2051_s0 = inlined_call_operand.hbm [shape: f32[2,1536], index: 0, kind: input, shape index: {}]   ;;  %s2052_s1 = inlined_call_operand.hbm [shape: f32[1536,512], index: 1, kind: input, shape index: {}]   ;;  %s2053_s2 = inlined_call_operand.hbm [shape: f32[2,512], index: 2, kind: output, shape index: {}]  }
   0x1   :  { %8 = vsyncpa [#allocation6], 0 }
   0x2   :  { %9 = vsyncpa [#allocation4], 0  ;;  %s15_s11 = sshll.u32 %s2051_s0, 4  ;;  %s1928_s12 = smov [#allocation2]   ;;  %s16_s11 = int_to_ptr.hbm [resolvable:$true] %s15_s11 }
   0x3   :  { %s17_s13 = sshll.u32 %s1928_s12, 4  ;;  %s25_s16 = sshll.u32 %s2052_s1, 4  ;;  %s18_s13 = int_to_ptr.vmem [resolvable:$true] %s17_s13  ;;  %s26_s16 = int_to_ptr.hbm [resolvable:$true] %s25_s16 }
   0x4   :  { %20 = dma.hbm_to_vmem [thread:$0]  %s16_s11, 384, %s18_s13, [#allocation3]  }
   0x5   :  { %s1929_s17 = smov [#allocation5]   ;;  %s1930_s19 = smov 512  }
   0x6   :  { %s27_s18 = sshll.u32 %s1929_s17, 4  ;;  %s1931_s20 = smov 32   ;;  %s28_s18 = int_to_ptr.vmem [resolvable:$true] %s27_s18 }
   0x7   :  { %33 = dma.hbm_to_vmem [thread:$0]  %s26_s16, 98304, %s28_s18, [#allocation6], %s1930_s19, %s1930_s19, %s1931_s20  }
   0x8   :  { %1922 = dma.done.wait [#allocation3], 384  }
   0x9   :  { %1923 = vsyncadd [#allocation3], 4294966912 }
   0xa   :  { %1924 = dma.done.wait [#allocation6], 98304  }
   0xb   :  { %1925 = vsyncadd [#allocation6], 4294868992  ;;  %v105_v0 = vld [vmem:[#allocation5 + $0x1e0] sm:$0xff]  ;;  %vm1811_vm0 = vcmask 1041408   ;;  %vm1813_vm1 = vcmask 1045508   ;;  %s1932_s0 = smov [#allocation7]  }
   0xc   :  { %v233_v1 = vld [vmem:[#allocation5 + $0x5e0] sm:$0xff]  ;;  %844 = vmatpush.msra.mxu0 %v105_v0  ;;  %s1824_s1 = sshll.u32 %s1932_s0, 4  ;;  %s1826_s23 = sshll.u32 %s2053_s2, 4  ;;  %vm1815_vm2 = vcmask 1043456   ;;  %s1825_s1 = int_to_ptr.vmem [resolvable:$true] %s1824_s1  ;;  %s1827_s23 = int_to_ptr.hbm [resolvable:$true] %s1826_s23 }
   0xd   :  { %v101_v2 = vld [vmem:[#allocation5 + $0x1c0] sm:$0xff]  ;;  %884 = vmatpush.msra.mxu2 %v233_v1 }
   0xe   :  { %v169_v3 = vld [vmem:[#allocation5 + $0x3e0] sm:$0xff]  ;;  %845 = vmatpush.msra.mxu0 %v101_v2 }
   0xf   :  { %v229_v4 = vld [vmem:[#allocation5 + $0x5c0] sm:$0xff]  ;;  %864 = vmatpush.msra.mxu1 %v169_v3 }
  0x10   :  { %v297_v5 = vld [vmem:[#allocation5 + $0x7e0] sm:$0xff]  ;;  %885 = vmatpush.msra.mxu2 %v229_v4 }
  0x11   :  { %904 = vmatpush.msra.mxu3 %v297_v5  ;;  %v97_v6 = vld [vmem:[#allocation5 + $0x1a0] sm:$0xff] }
  0x12   :  { %v165_v7 = vld [vmem:[#allocation5 + $0x3c0] sm:$0xff]  ;;  %846 = vmatpush.msra.mxu0 %v97_v6 }
  0x13   :  { %v225_v8 = vld [vmem:[#allocation5 + $0x5a0] sm:$0xff]  ;;  %865 = vmatpush.msra.mxu1 %v165_v7 }
  0x14   :  { %v293_v9 = vld [vmem:[#allocation5 + $0x7c0] sm:$0xff]  ;;  %886 = vmatpush.msra.mxu2 %v225_v8 }
  0x15   :  { %v161_v10 = vld [vmem:[#allocation5 + $0x3a0] sm:$0xff]  ;;  %905 = vmatpush.msra.mxu3 %v293_v9 }
  0x16   :  { %v93_v11 = vld [vmem:[#allocation5 + $0x180] sm:$0xff]  ;;  %866 = vmatpush.msra.mxu1 %v161_v10 }
  0x17   :  { %v221_v12 = vld [vmem:[#allocation5 + $0x580] sm:$0xff]  ;;  %847 = vmatpush.msra.mxu0 %v93_v11 }
  0x18   :  { %v289_v13 = vld [vmem:[#allocation5 + $0x7a0] sm:$0xff]  ;;  %887 = vmatpush.msra.mxu2 %v221_v12 }
  0x19   :  { %v157_v14 = vld [vmem:[#allocation5 + $0x380] sm:$0xff]  ;;  %906 = vmatpush.msra.mxu3 %v289_v13 }
  0x1a   :  { %v285_v15 = vld [vmem:[#allocation5 + $0x780] sm:$0xff]  ;;  %867 = vmatpush.msra.mxu1 %v157_v14 }
  0x1b   :  { %v89_v16 = vld [vmem:[#allocation5 + $0x160] sm:$0xff]  ;;  %907 = vmatpush.msra.mxu3 %v285_v15 }
  0x1c   :  { %v217_v17 = vld [vmem:[#allocation5 + $0x560] sm:$0xff]  ;;  %848 = vmatpush.msra.mxu0 %v89_v16 }
  0x1d   :  { %v153_v18 = vld [vmem:[#allocation5 + $0x360] sm:$0xff]  ;;  %888 = vmatpush.msra.mxu2 %v217_v17 }
  0x1e   :  { %v281_v19 = vld [vmem:[#allocation5 + $0x760] sm:$0xff]  ;;  %868 = vmatpush.msra.mxu1 %v153_v18 }
  0x1f   :  { %v85_v20 = vld [vmem:[#allocation5 + $0x140] sm:$0xff]  ;;  %908 = vmatpush.msra.mxu3 %v281_v19 }
  0x20   :  { %v213_v21 = vld [vmem:[#allocation5 + $0x540] sm:$0xff]  ;;  %849 = vmatpush.msra.mxu0 %v85_v20 }
  0x21   :  { %v149_v22 = vld [vmem:[#allocation5 + $0x340] sm:$0xff]  ;;  %889 = vmatpush.msra.mxu2 %v213_v21 }
  0x22   :  { %v277_v23 = vld [vmem:[#allocation5 + $0x740] sm:$0xff]  ;;  %869 = vmatpush.msra.mxu1 %v149_v22  ;;  %v42_v22 = vld [vmem:[#allocation2] sm:$0xff] }
  0x23   :  { %v81_v24 = vld [vmem:[#allocation5 + $0x120] sm:$0xff]  ;;  %909 = vmatpush.msra.mxu3 %v277_v23  ;;  %816 = vst [vmem:[#allocation1] ss:$4 sm:$0xff] %v42_v22 }
  0x24   :  { %v209_v25 = vld [vmem:[#allocation5 + $0x520] sm:$0xff]  ;;  %850 = vmatpush.msra.mxu0 %v81_v24 }
  0x25   :  { %v145_v26 = vld [vmem:[#allocation5 + $0x320] sm:$0xff]  ;;  %890 = vmatpush.msra.mxu2 %v209_v25 }
  0x26   :  { %v273_v27 = vld [vmem:[#allocation5 + $0x720] sm:$0xff]  ;;  %870 = vmatpush.msra.mxu1 %v145_v26 }
  0x27   :  { %v77_v28 = vld [vmem:[#allocation5 + $0x100] sm:$0xff]  ;;  %910 = vmatpush.msra.mxu3 %v273_v27 }
  0x28   :  { %v205_v29 = vld [vmem:[#allocation5 + $0x500] sm:$0xff]  ;;  %851 = vmatpush.msra.mxu0 %v77_v28 }
  0x29   :  { %v141_v30 = vld [vmem:[#allocation5 + $0x300] sm:$0xff]  ;;  %891 = vmatpush.msra.mxu2 %v205_v29 }
  0x2a   :  { %v269_v31 = vld [vmem:[#allocation5 + $0x700] sm:$0xff]  ;;  %871 = vmatpush.msra.mxu1 %v141_v30 }
  0x2b   :  { %v73_v32 = vld [vmem:[#allocation5 + $0xe0] sm:$0xff]  ;;  %911 = vmatpush.msra.mxu3 %v269_v31 }
  0x2c   :  { %v201_v33 = vld [vmem:[#allocation5 + $0x4e0] sm:$0xff]  ;;  %852 = vmatpush.msra.mxu0 %v73_v32 }
  0x2d   :  { %v137_v34 = vld [vmem:[#allocation5 + $0x2e0] sm:$0xff]  ;;  %892 = vmatpush.msra.mxu2 %v201_v33 }
  0x2e   :  { %v265_v35 = vld [vmem:[#allocation5 + $0x6e0] sm:$0xff]  ;;  %872 = vmatpush.msra.mxu1 %v137_v34 }
  0x2f   :  { %v69_v36 = vld [vmem:[#allocation5 + $0xc0] sm:$0xff]  ;;  %912 = vmatpush.msra.mxu3 %v265_v35 }
  0x30   :  { %v197_v37 = vld [vmem:[#allocation5 + $0x4c0] sm:$0xff]  ;;  %853 = vmatpush.msra.mxu0 %v69_v36 }
  0x31   :  { %v133_v38 = vld [vmem:[#allocation5 + $0x2c0] sm:$0xff]  ;;  %893 = vmatpush.msra.mxu2 %v197_v37 }
  0x32   :  { %v261_v39 = vld [vmem:[#allocation5 + $0x6c0] sm:$0xff]  ;;  %873 = vmatpush.msra.mxu1 %v133_v38 }
  0x33   :  { %v65_v40 = vld [vmem:[#allocation5 + $0xa0] sm:$0xff]  ;;  %913 = vmatpush.msra.mxu3 %v261_v39  ;;  %v43_v39 = vld [vmem:[#allocation2 + $0x8] sm:$0xff] }
  0x34   :  { %v193_v41 = vld [vmem:[#allocation5 + $0x4a0] sm:$0xff]  ;;  %854 = vmatpush.msra.mxu0 %v65_v40  ;;  %818 = vst [vmem:[#allocation1 + $0x20] ss:$4 sm:$0xff] %v43_v39 }
  0x35   :  { %v129_v42 = vld [vmem:[#allocation5 + $0x2a0] sm:$0xff]  ;;  %894 = vmatpush.msra.mxu2 %v193_v41 }
  0x36   :  { %v257_v43 = vld [vmem:[#allocation5 + $0x6a0] sm:$0xff]  ;;  %874 = vmatpush.msra.mxu1 %v129_v42  ;;  %v44_v42 = vld [vmem:[#allocation2 + $0x10] sm:$0xff] }
  0x37   :  { %v61_v44 = vld [vmem:[#allocation5 + $0x80] sm:$0xff]  ;;  %914 = vmatpush.msra.mxu3 %v257_v43  ;;  %v1954_v43 = vld.sshfl [vmem:[#allocation1 + $0x10] sm:$0xff pattern:$0x73625140] }
  0x38   :  { %v189_v45 = vld [vmem:[#allocation5 + $0x480] sm:$0xff]  ;;  %855 = vmatpush.msra.mxu0 %v61_v44 }
  0x39   :  { %v125_v46 = vld [vmem:[#allocation5 + $0x280] sm:$0xff]  ;;  %895 = vmatpush.msra.mxu2 %v189_v45  ;;  %v1958_v45 = vld.sshfl [vmem:[#allocation1 + $0x18] sm:$0xff pattern:$0x73625140] }
  0x3a   :  { %v253_v47 = vld [vmem:[#allocation5 + $0x680] sm:$0xff]  ;;  %875 = vmatpush.msra.mxu1 %v125_v46  ;;  %v1960_v46 = vld.sshfl [vmem:[#allocation1 + $0x8] sm:$0xff pattern:$0x73625140] }
  0x3b   :  { %v57_v48 = vld [vmem:[#allocation5 + $0x60] sm:$0xff]  ;;  %915 = vmatpush.msra.mxu3 %v253_v47 }
  0x3c   :  { %v185_v49 = vld [vmem:[#allocation5 + $0x460] sm:$0xff]  ;;  %856 = vmatpush.msra.mxu0 %v57_v48 }
  0x3d   :  { %v121_v50 = vld [vmem:[#allocation5 + $0x260] sm:$0xff]  ;;  %896 = vmatpush.msra.mxu2 %v185_v49 }
  0x3e   :  { %v249_v51 = vld [vmem:[#allocation5 + $0x660] sm:$0xff]  ;;  %876 = vmatpush.msra.mxu1 %v121_v50 }
  0x3f   :  { %v53_v52 = vld [vmem:[#allocation5 + $0x40] sm:$0xff]  ;;  %916 = vmatpush.msra.mxu3 %v249_v51 }
  0x40   :  { %v181_v53 = vld [vmem:[#allocation5 + $0x440] sm:$0xff]  ;;  %857 = vmatpush.msra.mxu0 %v53_v52 }
  0x41   :  { %v117_v54 = vld [vmem:[#allocation5 + $0x240] sm:$0xff]  ;;  %897 = vmatpush.msra.mxu2 %v181_v53 }
  0x42   :  { %v245_v55 = vld [vmem:[#allocation5 + $0x640] sm:$0xff]  ;;  %877 = vmatpush.msra.mxu1 %v117_v54 }
  0x43   :  { %v49_v56 = vld [vmem:[#allocation5 + $0x20] sm:$0xff]  ;;  %917 = vmatpush.msra.mxu3 %v245_v55 }
  0x44   :  { %v177_v57 = vld [vmem:[#allocation5 + $0x420] sm:$0xff]  ;;  %858 = vmatpush.msra.mxu0 %v49_v56 }
  0x45   :  { %v113_v58 = vld [vmem:[#allocation5 + $0x220] sm:$0xff]  ;;  %898 = vmatpush.msra.mxu2 %v177_v57 }
  0x46   :  { %v241_v59 = vld [vmem:[#allocation5 + $0x620] sm:$0xff]  ;;  %878 = vmatpush.msra.mxu1 %v113_v58 }
  0x47   :  { %v45_v60 = vld [vmem:[#allocation5] sm:$0xff]  ;;  %918 = vmatpush.msra.mxu3 %v241_v59 }
  0x48   :  { %v173_v61 = vld [vmem:[#allocation5 + $0x400] sm:$0xff]  ;;  %859 = vmatpush.msra.mxu0 %v45_v60 }
  0x49   :  { %v361_v62 = vld [vmem:[#allocation5 + $0x9e0] sm:$0xff]  ;;  %899 = vmatpush.msra.mxu2 %v173_v61 }
  0x4a   :  { %v489_v63 = vld [vmem:[#allocation5 + $0xde0] sm:$0xff]  ;;  %924 = vmatpush.msrb.mxu0 %v361_v62  ;;  %900 = vmatmul.f32.vlgmr.msra.gmra.mxu2 %v1954_v43 }
  0x4b   :  { %v109_v0 = vld [vmem:[#allocation5 + $0x200] sm:$0xff]  ;;  %964 = vmatpush.msrb.mxu2 %v489_v63 }
  0x4c   :  { %v237_v1 = vld [vmem:[#allocation5 + $0x600] sm:$0xff]  ;;  %879 = vmatpush.msra.mxu1 %v109_v0 }
  0x4d   :  { %v357_v2 = vld [vmem:[#allocation5 + $0x9c0] sm:$0xff]  ;;  %919 = vmatpush.msra.mxu3 %v237_v1  ;;  %880 = vmatmul.f32.vlgmr.msra.gmra.mxu1 %v1960_v46 }
  0x4e   :  { %v425_v3 = vld [vmem:[#allocation5 + $0xbe0] sm:$0xff]  ;;  %925 = vmatpush.msrb.mxu0 %v357_v2  ;;  %920 = vmatmul.f32.vlgmr.msra.gmra.mxu3 %v1958_v45 }
  0x4f   :  { %v485_v4 = vld [vmem:[#allocation5 + $0xdc0] sm:$0xff]  ;;  %944 = vmatpush.msrb.mxu1 %v425_v3 }
  0x50   :  { %v553_v5 = vld [vmem:[#allocation5 + $0xfe0] sm:$0xff]  ;;  %965 = vmatpush.msrb.mxu2 %v485_v4 }
  0x51   :  { %v353_v6 = vld [vmem:[#allocation5 + $0x9a0] sm:$0xff]  ;;  %984 = vmatpush.msrb.mxu3 %v553_v5 }
  0x52   :  { %v421_v7 = vld [vmem:[#allocation5 + $0xbc0] sm:$0xff]  ;;  %926 = vmatpush.msrb.mxu0 %v353_v6 }
  0x53   :  { %v481_v8 = vld [vmem:[#allocation5 + $0xda0] sm:$0xff]  ;;  %945 = vmatpush.msrb.mxu1 %v421_v7 }
  0x54   :  { %v549_v9 = vld [vmem:[#allocation5 + $0xfc0] sm:$0xff]  ;;  %966 = vmatpush.msrb.mxu2 %v481_v8 }
  0x55   :  { %v349_v10 = vld [vmem:[#allocation5 + $0x980] sm:$0xff]  ;;  %985 = vmatpush.msrb.mxu3 %v549_v9 }
  0x56   :  { %v417_v11 = vld [vmem:[#allocation5 + $0xba0] sm:$0xff]  ;;  %927 = vmatpush.msrb.mxu0 %v349_v10 }
  0x57   :  { %v477_v12 = vld [vmem:[#allocation5 + $0xd80] sm:$0xff]  ;;  %946 = vmatpush.msrb.mxu1 %v417_v11 }
  0x58   :  { %v545_v13 = vld [vmem:[#allocation5 + $0xfa0] sm:$0xff]  ;;  %967 = vmatpush.msrb.mxu2 %v477_v12 }
  0x59   :  { %v345_v14 = vld [vmem:[#allocation5 + $0x960] sm:$0xff]  ;;  %986 = vmatpush.msrb.mxu3 %v545_v13 }
  0x5a   :  { %v413_v15 = vld [vmem:[#allocation5 + $0xb80] sm:$0xff]  ;;  %928 = vmatpush.msrb.mxu0 %v345_v14 }
  0x5b   :  { %v473_v16 = vld [vmem:[#allocation5 + $0xd60] sm:$0xff]  ;;  %947 = vmatpush.msrb.mxu1 %v413_v15 }
  0x5c   :  { %v541_v17 = vld [vmem:[#allocation5 + $0xf80] sm:$0xff]  ;;  %968 = vmatpush.msrb.mxu2 %v473_v16 }
  0x5d   :  { %v341_v18 = vld [vmem:[#allocation5 + $0x940] sm:$0xff]  ;;  %987 = vmatpush.msrb.mxu3 %v541_v17  ;;  %v1966_v17 = vld.sshfl [vmem:[#allocation1 + $0x30] sm:$0xff pattern:$0x73625140] }
  0x5e   :  { %v409_v19 = vld [vmem:[#allocation5 + $0xb60] sm:$0xff]  ;;  %929 = vmatpush.msrb.mxu0 %v341_v18 }
  0x5f   :  { %v469_v20 = vld [vmem:[#allocation5 + $0xd40] sm:$0xff]  ;;  %948 = vmatpush.msrb.mxu1 %v409_v19 }
  0x60   :  { %v537_v21 = vld [vmem:[#allocation5 + $0xf60] sm:$0xff]  ;;  %969 = vmatpush.msrb.mxu2 %v469_v20 }
  0x61   :  { %v337_v23 = vld [vmem:[#allocation5 + $0x920] sm:$0xff]  ;;  %988 = vmatpush.msrb.mxu3 %v537_v21 }
  0x62   :  { %v405_v24 = vld [vmem:[#allocation5 + $0xb40] sm:$0xff]  ;;  %930 = vmatpush.msrb.mxu0 %v337_v23  ;;  %v1971_v23 = vld.sshfl [vmem:[#allocation1 + $0x38] sm:$0xff pattern:$0x73625140] }
  0x63   :  { %v465_v25 = vld [vmem:[#allocation5 + $0xd20] sm:$0xff]  ;;  %949 = vmatpush.msrb.mxu1 %v405_v24 }
  0x64   :  { %v533_v26 = vld [vmem:[#allocation5 + $0xf40] sm:$0xff]  ;;  %970 = vmatpush.msrb.mxu2 %v465_v25 }
  0x65   :  { %v333_v27 = vld [vmem:[#allocation5 + $0x900] sm:$0xff]  ;;  %989 = vmatpush.msrb.mxu3 %v533_v26 }
  0x66   :  { %v401_v28 = vld [vmem:[#allocation5 + $0xb20] sm:$0xff]  ;;  %931 = vmatpush.msrb.mxu0 %v333_v27 }
  0x67   :  { %v461_v29 = vld [vmem:[#allocation5 + $0xd00] sm:$0xff]  ;;  %950 = vmatpush.msrb.mxu1 %v401_v28  ;;  %v1974_v28 = vld.sshfl [vmem:[#allocation1 + $0x28] sm:$0xff pattern:$0x73625140] }
  0x68   :  { %v529_v30 = vld [vmem:[#allocation5 + $0xf20] sm:$0xff]  ;;  %971 = vmatpush.msrb.mxu2 %v461_v29 }
  0x69   :  { %v329_v31 = vld [vmem:[#allocation5 + $0x8e0] sm:$0xff]  ;;  %990 = vmatpush.msrb.mxu3 %v529_v30 }
  0x6a   :  { %v397_v32 = vld [vmem:[#allocation5 + $0xb00] sm:$0xff]  ;;  %932 = vmatpush.msrb.mxu0 %v329_v31 }
  0x6b   :  { %v457_v33 = vld [vmem:[#allocation5 + $0xce0] sm:$0xff]  ;;  %951 = vmatpush.msrb.mxu1 %v397_v32 }
  0x6c   :  { %v525_v34 = vld [vmem:[#allocation5 + $0xf00] sm:$0xff]  ;;  %972 = vmatpush.msrb.mxu2 %v457_v33 }
  0x6d   :  { %v325_v35 = vld [vmem:[#allocation5 + $0x8c0] sm:$0xff]  ;;  %991 = vmatpush.msrb.mxu3 %v525_v34 }
  0x6e   :  { %v393_v36 = vld [vmem:[#allocation5 + $0xae0] sm:$0xff]  ;;  %933 = vmatpush.msrb.mxu0 %v325_v35 }
  0x6f   :  { %v453_v37 = vld [vmem:[#allocation5 + $0xcc0] sm:$0xff]  ;;  %952 = vmatpush.msrb.mxu1 %v393_v36 }
  0x70   :  { %v521_v38 = vld [vmem:[#allocation5 + $0xee0] sm:$0xff]  ;;  %973 = vmatpush.msrb.mxu2 %v453_v37 }
  0x71   :  { %v321_v40 = vld [vmem:[#allocation5 + $0x8a0] sm:$0xff]  ;;  %992 = vmatpush.msrb.mxu3 %v521_v38 }
  0x72   :  { %v389_v41 = vld [vmem:[#allocation5 + $0xac0] sm:$0xff]  ;;  %934 = vmatpush.msrb.mxu0 %v321_v40 }
  0x73   :  { %v1956_v44 = vld.sshfl [vmem:[#allocation1] sm:$0xff pattern:$0x73625140]  ;;  %953 = vmatpush.msrb.mxu1 %v389_v41 }
  0x74   :  { %v449_v47 = vld [vmem:[#allocation5 + $0xca0] sm:$0xff]  ;;  %827 = vst [vmem:[#allocation1] ss:$4 sm:$0xff] %v44_v42  ;;  %860 = vmatmul.f32.vlgmr.msra.gmra.mxu0 %v1956_v44 }
  0x75   :  { %v517_v48 = vld [vmem:[#allocation5 + $0xec0] sm:$0xff]  ;;  %974 = vmatpush.msrb.mxu2 %v449_v47 }
  0x76   :  { %v317_v49 = vld [vmem:[#allocation5 + $0x880] sm:$0xff]  ;;  %993 = vmatpush.msrb.mxu3 %v517_v48 }
  0x77   :  { %v385_v50 = vld [vmem:[#allocation5 + $0xaa0] sm:$0xff]  ;;  %935 = vmatpush.msrb.mxu0 %v317_v49 }
  0x78   :  { %v445_v51 = vld [vmem:[#allocation5 + $0xc80] sm:$0xff]  ;;  %954 = vmatpush.msrb.mxu1 %v385_v50 }
  0x79   :  { %v513_v52 = vld [vmem:[#allocation5 + $0xea0] sm:$0xff]  ;;  %975 = vmatpush.msrb.mxu2 %v445_v51 }
  0x7a   :  { %v313_v53 = vld [vmem:[#allocation5 + $0x860] sm:$0xff]  ;;  %994 = vmatpush.msrb.mxu3 %v513_v52 }
  0x7b   :  { %v381_v54 = vld [vmem:[#allocation5 + $0xa80] sm:$0xff]  ;;  %936 = vmatpush.msrb.mxu0 %v313_v53 }
  0x7c   :  { %v441_v55 = vld [vmem:[#allocation5 + $0xc60] sm:$0xff]  ;;  %955 = vmatpush.msrb.mxu1 %v381_v54 }
  0x7d   :  { %v509_v56 = vld [vmem:[#allocation5 + $0xe80] sm:$0xff]  ;;  %976 = vmatpush.msrb.mxu2 %v441_v55 }
  0x7e   :  { %v309_v57 = vld [vmem:[#allocation5 + $0x840] sm:$0xff]  ;;  %995 = vmatpush.msrb.mxu3 %v509_v56 }
  0x7f   :  { %v377_v58 = vld [vmem:[#allocation5 + $0xa60] sm:$0xff]  ;;  %937 = vmatpush.msrb.mxu0 %v309_v57 }
  0x80   :  { %v437_v59 = vld [vmem:[#allocation5 + $0xc40] sm:$0xff]  ;;  %956 = vmatpush.msrb.mxu1 %v377_v58 }
  0x81   :  { %v505_v60 = vld [vmem:[#allocation5 + $0xe60] sm:$0xff]  ;;  %977 = vmatpush.msrb.mxu2 %v437_v59 }
  0x82   :  { %v305_v61 = vld [vmem:[#allocation5 + $0x820] sm:$0xff]  ;;  %996 = vmatpush.msrb.mxu3 %v505_v60 }
  0x83   :  { %v373_v62 = vld [vmem:[#allocation5 + $0xa40] sm:$0xff]  ;;  %938 = vmatpush.msrb.mxu0 %v305_v61 }
  0x84   :  { %v433_v63 = vld [vmem:[#allocation5 + $0xc20] sm:$0xff]  ;;  %957 = vmatpush.msrb.mxu1 %v373_v62 }
  0x85   :  { %v501_v0 = vld [vmem:[#allocation5 + $0xe40] sm:$0xff]  ;;  %978 = vmatpush.msrb.mxu2 %v433_v63 }
  0x86   :  { %v301_v1 = vld [vmem:[#allocation5 + $0x800] sm:$0xff]  ;;  %997 = vmatpush.msrb.mxu3 %v501_v0 }
  0x87   :  { %v369_v2 = vld [vmem:[#allocation5 + $0xa20] sm:$0xff]  ;;  %939 = vmatpush.msrb.mxu0 %v301_v1 }
  0x88   :  { %v429_v3 = vld [vmem:[#allocation5 + $0xc00] sm:$0xff]  ;;  %958 = vmatpush.msrb.mxu1 %v369_v2 }
  0x89   :  { %v497_v4 = vld [vmem:[#allocation5 + $0xe20] sm:$0xff]  ;;  %979 = vmatpush.msrb.mxu2 %v429_v3 }
  0x8a   :  { %v617_v5 = vld [vmem:[#allocation5 + $0x11e0] sm:$0xff]  ;;  %998 = vmatpush.msrb.mxu3 %v497_v4  ;;  %980 = vmatmul.f32.vlgmr.msrb.gmra.mxu2 %v1966_v17 }
  0x8b   :  { %v745_v6 = vld [vmem:[#allocation5 + $0x15e0] sm:$0xff]  ;;  %1004 = vmatpush.msra.mxu0 %v617_v5 }
  0x8c   :  { %v365_v7 = vld [vmem:[#allocation5 + $0xa00] sm:$0xff]  ;;  %1044 = vmatpush.msra.mxu2 %v745_v6 }
  0x8d   :  { %v493_v8 = vld [vmem:[#allocation5 + $0xe00] sm:$0xff]  ;;  %959 = vmatpush.msrb.mxu1 %v365_v7 }
  0x8e   :  { %v613_v9 = vld [vmem:[#allocation5 + $0x11c0] sm:$0xff]  ;;  %999 = vmatpush.msrb.mxu3 %v493_v8  ;;  %960 = vmatmul.f32.vlgmr.msrb.gmra.mxu1 %v1974_v28 }
  0x8f   :  { %v681_v10 = vld [vmem:[#allocation5 + $0x13e0] sm:$0xff]  ;;  %1005 = vmatpush.msra.mxu0 %v613_v9  ;;  %1000 = vmatmul.f32.vlgmr.msrb.gmra.mxu3 %v1971_v23 }
  0x90   :  { %v741_v11 = vld [vmem:[#allocation5 + $0x15c0] sm:$0xff]  ;;  %1024 = vmatpush.msra.mxu1 %v681_v10 }
  0x91   :  { %v809_v12 = vld [vmem:[#allocation5 + $0x17e0] sm:$0xff]  ;;  %1045 = vmatpush.msra.mxu2 %v741_v11 }
  0x92   :  { %v609_v13 = vld [vmem:[#allocation5 + $0x11a0] sm:$0xff]  ;;  %1064 = vmatpush.msra.mxu3 %v809_v12 }
  0x93   :  { %v677_v14 = vld [vmem:[#allocation5 + $0x13c0] sm:$0xff]  ;;  %1006 = vmatpush.msra.mxu0 %v609_v13 }
  0x94   :  { %v737_v15 = vld [vmem:[#allocation5 + $0x15a0] sm:$0xff]  ;;  %1025 = vmatpush.msra.mxu1 %v677_v14  ;;  %v1980_v14 = vld.sshfl [vmem:[#allocation1 + $0x10] sm:$0xff pattern:$0x73625140] }
  0x95   :  { %v805_v16 = vld [vmem:[#allocation5 + $0x17c0] sm:$0xff]  ;;  %1046 = vmatpush.msra.mxu2 %v737_v15  ;;  %v106_v15 = vld [vmem:[#allocation5 + $0x1e8] sm:$0xff] }
  0x96   :  { %v605_v18 = vld [vmem:[#allocation5 + $0x1180] sm:$0xff]  ;;  %1065 = vmatpush.msra.mxu3 %v805_v16  ;;  %v234_v16 = vld [vmem:[#allocation5 + $0x5e8] sm:$0xff] }
  0x97   :  { %v673_v19 = vld [vmem:[#allocation5 + $0x13a0] sm:$0xff]  ;;  %1007 = vmatpush.msra.mxu0 %v605_v18 }
  0x98   :  { %v733_v20 = vld [vmem:[#allocation5 + $0x1580] sm:$0xff]  ;;  %1026 = vmatpush.msra.mxu1 %v673_v19 }
  0x99   :  { %v801_v21 = vld [vmem:[#allocation5 + $0x17a0] sm:$0xff]  ;;  %1047 = vmatpush.msra.mxu2 %v733_v20  ;;  %v1984_v20 = vld.sshfl [vmem:[#allocation1 + $0x8] sm:$0xff pattern:$0x73625140] }
  0x9a   :  { %v1968_v22 = vld.sshfl [vmem:[#allocation1 + $0x20] sm:$0xff pattern:$0x73625140]  ;;  %1066 = vmatpush.msra.mxu3 %v801_v21  ;;  %v1986_v21 = vld.sshfl [vmem:[#allocation1 + $0x18] sm:$0xff pattern:$0x73625140] }
  0x9b   :  { %v601_v24 = vld [vmem:[#allocation5 + $0x1160] sm:$0xff]  ;;  %940 = vmatmul.f32.vlgmr.msrb.gmra.mxu0 %v1968_v22 }
  0x9c   :  { %v669_v25 = vld [vmem:[#allocation5 + $0x1380] sm:$0xff]  ;;  %1008 = vmatpush.msra.mxu0 %v601_v24  ;;  %v102_v24 = vld [vmem:[#allocation5 + $0x1c8] sm:$0xff] }
  0x9d   :  { %v729_v26 = vld [vmem:[#allocation5 + $0x1560] sm:$0xff]  ;;  %1027 = vmatpush.msra.mxu1 %v669_v25  ;;  %v170_v25 = vld [vmem:[#allocation5 + $0x3e8] sm:$0xff] }
  0x9e   :  { %v797_v27 = vld [vmem:[#allocation5 + $0x1780] sm:$0xff]  ;;  %1048 = vmatpush.msra.mxu2 %v729_v26  ;;  %v230_v26 = vld [vmem:[#allocation5 + $0x5c8] sm:$0xff] }
  0x9f   :  { %v597_v29 = vld [vmem:[#allocation5 + $0x1140] sm:$0xff]  ;;  %1067 = vmatpush.msra.mxu3 %v797_v27  ;;  %v298_v27 = vld [vmem:[#allocation5 + $0x7e8] sm:$0xff] }
  0xa0   :  { %v665_v30 = vld [vmem:[#allocation5 + $0x1360] sm:$0xff]  ;;  %1009 = vmatpush.msra.mxu0 %v597_v29  ;;  %v98_v29 = vld [vmem:[#allocation5 + $0x1a8] sm:$0xff] }
  0xa1   :  { %v725_v31 = vld [vmem:[#allocation5 + $0x1540] sm:$0xff]  ;;  %1028 = vmatpush.msra.mxu1 %v665_v30  ;;  %v166_v30 = vld [vmem:[#allocation5 + $0x3c8] sm:$0xff] }
  0xa2   :  { %v793_v32 = vld [vmem:[#allocation5 + $0x1760] sm:$0xff]  ;;  %1049 = vmatpush.msra.mxu2 %v725_v31  ;;  %v226_v31 = vld [vmem:[#allocation5 + $0x5a8] sm:$0xff] }
  0xa3   :  { %v593_v33 = vld [vmem:[#allocation5 + $0x1120] sm:$0xff]  ;;  %1068 = vmatpush.msra.mxu3 %v793_v32  ;;  %v294_v32 = vld [vmem:[#allocation5 + $0x7c8] sm:$0xff] }
  0xa4   :  { %v661_v34 = vld [vmem:[#allocation5 + $0x1340] sm:$0xff]  ;;  %1010 = vmatpush.msra.mxu0 %v593_v33  ;;  %v94_v33 = vld [vmem:[#allocation5 + $0x188] sm:$0xff] }
  0xa5   :  { %v721_v35 = vld [vmem:[#allocation5 + $0x1520] sm:$0xff]  ;;  %1029 = vmatpush.msra.mxu1 %v661_v34  ;;  %v162_v34 = vld [vmem:[#allocation5 + $0x3a8] sm:$0xff] }
  0xa6   :  { %v789_v36 = vld [vmem:[#allocation5 + $0x1740] sm:$0xff]  ;;  %1050 = vmatpush.msra.mxu2 %v721_v35  ;;  %v222_v35 = vld [vmem:[#allocation5 + $0x588] sm:$0xff] }
  0xa7   :  { %v589_v37 = vld [vmem:[#allocation5 + $0x1100] sm:$0xff]  ;;  %1069 = vmatpush.msra.mxu3 %v789_v36  ;;  %v290_v36 = vld [vmem:[#allocation5 + $0x7a8] sm:$0xff] }
  0xa8   :  { %v657_v38 = vld [vmem:[#allocation5 + $0x1320] sm:$0xff]  ;;  %1011 = vmatpush.msra.mxu0 %v589_v37  ;;  %v90_v37 = vld [vmem:[#allocation5 + $0x168] sm:$0xff] }
  0xa9   :  { %v717_v39 = vld [vmem:[#allocation5 + $0x1500] sm:$0xff]  ;;  %1030 = vmatpush.msra.mxu1 %v657_v38  ;;  %v158_v38 = vld [vmem:[#allocation5 + $0x388] sm:$0xff] }
  0xaa   :  { %v785_v40 = vld [vmem:[#allocation5 + $0x1720] sm:$0xff]  ;;  %1051 = vmatpush.msra.mxu2 %v717_v39  ;;  %v218_v39 = vld [vmem:[#allocation5 + $0x568] sm:$0xff] }
  0xab   :  { %v585_v41 = vld [vmem:[#allocation5 + $0x10e0] sm:$0xff]  ;;  %1070 = vmatpush.msra.mxu3 %v785_v40  ;;  %v286_v40 = vld [vmem:[#allocation5 + $0x788] sm:$0xff] }
  0xac   :  { %v653_v42 = vld [vmem:[#allocation5 + $0x1300] sm:$0xff]  ;;  %1012 = vmatpush.msra.mxu0 %v585_v41  ;;  %v86_v41 = vld [vmem:[#allocation5 + $0x148] sm:$0xff] }
  0xad   :  { %v713_v47 = vld [vmem:[#allocation5 + $0x14e0] sm:$0xff]  ;;  %1031 = vmatpush.msra.mxu1 %v653_v42  ;;  %v154_v42 = vld [vmem:[#allocation5 + $0x368] sm:$0xff] }
  0xae   :  { %v781_v48 = vld [vmem:[#allocation5 + $0x1700] sm:$0xff]  ;;  %1052 = vmatpush.msra.mxu2 %v713_v47  ;;  %v214_v47 = vld [vmem:[#allocation5 + $0x548] sm:$0xff] }
  0xaf   :  { %v581_v49 = vld [vmem:[#allocation5 + $0x10c0] sm:$0xff]  ;;  %1071 = vmatpush.msra.mxu3 %v781_v48  ;;  %v282_v48 = vld [vmem:[#allocation5 + $0x768] sm:$0xff] }
  0xb0   :  { %v649_v50 = vld [vmem:[#allocation5 + $0x12e0] sm:$0xff]  ;;  %1013 = vmatpush.msra.mxu0 %v581_v49  ;;  %v82_v49 = vld [vmem:[#allocation5 + $0x128] sm:$0xff] }
  0xb1   :  { %v709_v51 = vld [vmem:[#allocation5 + $0x14c0] sm:$0xff]  ;;  %1032 = vmatpush.msra.mxu1 %v649_v50  ;;  %v150_v50 = vld [vmem:[#allocation5 + $0x348] sm:$0xff] }
  0xb2   :  { %v777_v52 = vld [vmem:[#allocation5 + $0x16e0] sm:$0xff]  ;;  %1053 = vmatpush.msra.mxu2 %v709_v51  ;;  %v210_v51 = vld [vmem:[#allocation5 + $0x528] sm:$0xff] }
  0xb3   :  { %v577_v53 = vld [vmem:[#allocation5 + $0x10a0] sm:$0xff]  ;;  %1072 = vmatpush.msra.mxu3 %v777_v52  ;;  %v278_v52 = vld [vmem:[#allocation5 + $0x748] sm:$0xff] }
  0xb4   :  { %v645_v54 = vld [vmem:[#allocation5 + $0x12c0] sm:$0xff]  ;;  %1014 = vmatpush.msra.mxu0 %v577_v53  ;;  %v78_v53 = vld [vmem:[#allocation5 + $0x108] sm:$0xff] }
  0xb5   :  { %v705_v55 = vld [vmem:[#allocation5 + $0x14a0] sm:$0xff]  ;;  %1033 = vmatpush.msra.mxu1 %v645_v54  ;;  %v146_v54 = vld [vmem:[#allocation5 + $0x328] sm:$0xff] }
  0xb6   :  { %v773_v56 = vld [vmem:[#allocation5 + $0x16c0] sm:$0xff]  ;;  %1054 = vmatpush.msra.mxu2 %v705_v55  ;;  %v206_v55 = vld [vmem:[#allocation5 + $0x508] sm:$0xff] }
  0xb7   :  { %v573_v57 = vld [vmem:[#allocation5 + $0x1080] sm:$0xff]  ;;  %1073 = vmatpush.msra.mxu3 %v773_v56  ;;  %v274_v56 = vld [vmem:[#allocation5 + $0x728] sm:$0xff] }
  0xb8   :  { %v641_v58 = vld [vmem:[#allocation5 + $0x12a0] sm:$0xff]  ;;  %1015 = vmatpush.msra.mxu0 %v573_v57  ;;  %v74_v57 = vld [vmem:[#allocation5 + $0xe8] sm:$0xff] }
  0xb9   :  { %v701_v59 = vld [vmem:[#allocation5 + $0x1480] sm:$0xff]  ;;  %1034 = vmatpush.msra.mxu1 %v641_v58  ;;  %v142_v58 = vld [vmem:[#allocation5 + $0x308] sm:$0xff] }
  0xba   :  { %v769_v60 = vld [vmem:[#allocation5 + $0x16a0] sm:$0xff]  ;;  %1055 = vmatpush.msra.mxu2 %v701_v59  ;;  %v202_v59 = vld [vmem:[#allocation5 + $0x4e8] sm:$0xff] }
  0xbb   :  { %v569_v61 = vld [vmem:[#allocation5 + $0x1060] sm:$0xff]  ;;  %1074 = vmatpush.msra.mxu3 %v769_v60  ;;  %v270_v60 = vld [vmem:[#allocation5 + $0x708] sm:$0xff] }
  0xbc   :  { %v637_v62 = vld [vmem:[#allocation5 + $0x1280] sm:$0xff]  ;;  %1016 = vmatpush.msra.mxu0 %v569_v61  ;;  %v70_v61 = vld [vmem:[#allocation5 + $0xc8] sm:$0xff] }
  0xbd   :  { %v697_v63 = vld [vmem:[#allocation5 + $0x1460] sm:$0xff]  ;;  %1035 = vmatpush.msra.mxu1 %v637_v62  ;;  %v138_v62 = vld [vmem:[#allocation5 + $0x2e8] sm:$0xff] }
  0xbe   :  { %v765_v0 = vld [vmem:[#allocation5 + $0x1680] sm:$0xff]  ;;  %1056 = vmatpush.msra.mxu2 %v697_v63  ;;  %v198_v63 = vld [vmem:[#allocation5 + $0x4c8] sm:$0xff] }
  0xbf   :  { %v565_v1 = vld [vmem:[#allocation5 + $0x1040] sm:$0xff]  ;;  %1075 = vmatpush.msra.mxu3 %v765_v0  ;;  %v266_v0 = vld [vmem:[#allocation5 + $0x6e8] sm:$0xff] }
  0xc0   :  { %v633_v2 = vld [vmem:[#allocation5 + $0x1260] sm:$0xff]  ;;  %1017 = vmatpush.msra.mxu0 %v565_v1  ;;  %v66_v1 = vld [vmem:[#allocation5 + $0xa8] sm:$0xff] }
  0xc1   :  { %v693_v3 = vld [vmem:[#allocation5 + $0x1440] sm:$0xff]  ;;  %1036 = vmatpush.msra.mxu1 %v633_v2  ;;  %v134_v2 = vld [vmem:[#allocation5 + $0x2c8] sm:$0xff] }
  0xc2   :  { %v761_v4 = vld [vmem:[#allocation5 + $0x1660] sm:$0xff]  ;;  %1057 = vmatpush.msra.mxu2 %v693_v3  ;;  %v194_v3 = vld [vmem:[#allocation5 + $0x4a8] sm:$0xff] }
  0xc3   :  { %v561_v5 = vld [vmem:[#allocation5 + $0x1020] sm:$0xff]  ;;  %1076 = vmatpush.msra.mxu3 %v761_v4  ;;  %v262_v4 = vld [vmem:[#allocation5 + $0x6c8] sm:$0xff] }
  0xc4   :  { %v629_v6 = vld [vmem:[#allocation5 + $0x1240] sm:$0xff]  ;;  %1018 = vmatpush.msra.mxu0 %v561_v5  ;;  %v62_v5 = vld [vmem:[#allocation5 + $0x88] sm:$0xff] }
  0xc5   :  { %v689_v7 = vld [vmem:[#allocation5 + $0x1420] sm:$0xff]  ;;  %1037 = vmatpush.msra.mxu1 %v629_v6  ;;  %v130_v6 = vld [vmem:[#allocation5 + $0x2a8] sm:$0xff] }
  0xc6   :  { %v757_v8 = vld [vmem:[#allocation5 + $0x1640] sm:$0xff]  ;;  %1058 = vmatpush.msra.mxu2 %v689_v7  ;;  %v190_v7 = vld [vmem:[#allocation5 + $0x488] sm:$0xff] }
  0xc7   :  { %v557_v9 = vld [vmem:[#allocation5 + $0x1000] sm:$0xff]  ;;  %1077 = vmatpush.msra.mxu3 %v757_v8  ;;  %v258_v8 = vld [vmem:[#allocation5 + $0x6a8] sm:$0xff] }
  0xc8   :  { %v625_v10 = vld [vmem:[#allocation5 + $0x1220] sm:$0xff]  ;;  %1019 = vmatpush.msra.mxu0 %v557_v9  ;;  %v58_v9 = vld [vmem:[#allocation5 + $0x68] sm:$0xff] }
  0xc9   :  { %v685_v11 = vld [vmem:[#allocation5 + $0x1400] sm:$0xff]  ;;  %1038 = vmatpush.msra.mxu1 %v625_v10  ;;  %v126_v10 = vld [vmem:[#allocation5 + $0x288] sm:$0xff] }
  0xca   :  { %v753_v12 = vld [vmem:[#allocation5 + $0x1620] sm:$0xff]  ;;  %1059 = vmatpush.msra.mxu2 %v685_v11  ;;  %1084 = vmatpush.msrb.mxu0 %v106_v15  ;;  %v186_v11 = vld [vmem:[#allocation5 + $0x468] sm:$0xff] }
  0xcb   :  { %v1978_v13 = vld.sshfl [vmem:[#allocation1] sm:$0xff pattern:$0x73625140]  ;;  %1078 = vmatpush.msra.mxu3 %v753_v12  ;;  %1060 = vmatmul.f32.vlgmr.msra.gmra.mxu2 %v1980_v14  ;;  %v254_v12 = vld [vmem:[#allocation5 + $0x688] sm:$0xff] }
  0xcc   :  { %v621_v18 = vld [vmem:[#allocation5 + $0x1200] sm:$0xff]  ;;  %1020 = vmatmul.f32.vlgmr.msra.gmra.mxu0 %v1978_v13  ;;  %1124 = vmatpush.msrb.mxu2 %v234_v16  ;;  %v54_v15 = vld [vmem:[#allocation5 + $0x48] sm:$0xff] }
  0xcd   :  { %v749_v19 = vld [vmem:[#allocation5 + $0x1600] sm:$0xff]  ;;  %1039 = vmatpush.msra.mxu1 %v621_v18  ;;  %1085 = vmatpush.msrb.mxu0 %v102_v24  ;;  %v122_v16 = vld [vmem:[#allocation5 + $0x268] sm:$0xff] }
  0xce   :  { %1079 = vmatpush.msra.mxu3 %v749_v19  ;;  %1040 = vmatmul.f32.vlgmr.msra.gmra.mxu1 %v1984_v20  ;;  %v182_v18 = vld [vmem:[#allocation5 + $0x448] sm:$0xff] }
  0xcf   :  { %1080 = vmatmul.f32.vlgmr.msra.gmra.mxu3 %v1986_v21  ;;  %1104 = vmatpush.msrb.mxu1 %v170_v25  ;;  %v250_v19 = vld [vmem:[#allocation5 + $0x668] sm:$0xff] }
  0xd0   :  { %1125 = vmatpush.msrb.mxu2 %v230_v26  ;;  %1144 = vmatpush.msrb.mxu3 %v298_v27  ;;  %v50_v24 = vld [vmem:[#allocation5 + $0x28] sm:$0xff] }
  0xd1   :  { %1086 = vmatpush.msrb.mxu0 %v98_v29  ;;  %1105 = vmatpush.msrb.mxu1 %v166_v30  ;;  %v118_v25 = vld [vmem:[#allocation5 + $0x248] sm:$0xff] }
  0xd2   :  { %1126 = vmatpush.msrb.mxu2 %v226_v31  ;;  %1145 = vmatpush.msrb.mxu3 %v294_v32  ;;  %v178_v26 = vld [vmem:[#allocation5 + $0x428] sm:$0xff] }
  0xd3   :  { %1087 = vmatpush.msrb.mxu0 %v94_v33  ;;  %1106 = vmatpush.msrb.mxu1 %v162_v34  ;;  %v246_v27 = vld [vmem:[#allocation5 + $0x648] sm:$0xff] }
  0xd4   :  { %1127 = vmatpush.msrb.mxu2 %v222_v35  ;;  %1146 = vmatpush.msrb.mxu3 %v290_v36  ;;  %v46_v29 = vld [vmem:[#allocation5 + $0x8] sm:$0xff] }
  0xd5   :  { %1088 = vmatpush.msrb.mxu0 %v90_v37  ;;  %1107 = vmatpush.msrb.mxu1 %v158_v38  ;;  %v114_v30 = vld [vmem:[#allocation5 + $0x228] sm:$0xff] }
  0xd6   :  { %1128 = vmatpush.msrb.mxu2 %v218_v39  ;;  %1147 = vmatpush.msrb.mxu3 %v286_v40  ;;  %v174_v31 = vld [vmem:[#allocation5 + $0x408] sm:$0xff] }
  0xd7   :  { %1089 = vmatpush.msrb.mxu0 %v86_v41  ;;  %1108 = vmatpush.msrb.mxu1 %v154_v42  ;;  %v242_v32 = vld [vmem:[#allocation5 + $0x628] sm:$0xff] }
  0xd8   :  { %1129 = vmatpush.msrb.mxu2 %v214_v47  ;;  %1148 = vmatpush.msrb.mxu3 %v282_v48  ;;  %v362_v33 = vld [vmem:[#allocation5 + $0x9e8] sm:$0xff] }
  0xd9   :  { %1090 = vmatpush.msrb.mxu0 %v82_v49  ;;  %1109 = vmatpush.msrb.mxu1 %v150_v50  ;;  %v490_v34 = vld [vmem:[#allocation5 + $0xde8] sm:$0xff] }
  0xda   :  { %1130 = vmatpush.msrb.mxu2 %v210_v51  ;;  %1149 = vmatpush.msrb.mxu3 %v278_v52  ;;  %v110_v35 = vld [vmem:[#allocation5 + $0x208] sm:$0xff] }
  0xdb   :  { %1091 = vmatpush.msrb.mxu0 %v78_v53  ;;  %1110 = vmatpush.msrb.mxu1 %v146_v54  ;;  %v238_v36 = vld [vmem:[#allocation5 + $0x608] sm:$0xff] }
  0xdc   :  { %1131 = vmatpush.msrb.mxu2 %v206_v55  ;;  %1150 = vmatpush.msrb.mxu3 %v274_v56  ;;  %v358_v37 = vld [vmem:[#allocation5 + $0x9c8] sm:$0xff] }
  0xdd   :  { %1092 = vmatpush.msrb.mxu0 %v74_v57  ;;  %1111 = vmatpush.msrb.mxu1 %v142_v58  ;;  %v426_v38 = vld [vmem:[#allocation5 + $0xbe8] sm:$0xff] }
  0xde   :  { %1132 = vmatpush.msrb.mxu2 %v202_v59  ;;  %1151 = vmatpush.msrb.mxu3 %v270_v60  ;;  %v486_v39 = vld [vmem:[#allocation5 + $0xdc8] sm:$0xff] }
  0xdf   :  { %1093 = vmatpush.msrb.mxu0 %v70_v61  ;;  %1112 = vmatpush.msrb.mxu1 %v138_v62  ;;  %v554_v40 = vld [vmem:[#allocation5 + $0xfe8] sm:$0xff] }
  0xe0   :  { %1133 = vmatpush.msrb.mxu2 %v198_v63  ;;  %1152 = vmatpush.msrb.mxu3 %v266_v0  ;;  %v354_v41 = vld [vmem:[#allocation5 + $0x9a8] sm:$0xff] }
  0xe1   :  { %1094 = vmatpush.msrb.mxu0 %v66_v1  ;;  %1113 = vmatpush.msrb.mxu1 %v134_v2  ;;  %v422_v42 = vld [vmem:[#allocation5 + $0xbc8] sm:$0xff] }
  0xe2   :  { %1134 = vmatpush.msrb.mxu2 %v194_v3  ;;  %1153 = vmatpush.msrb.mxu3 %v262_v4  ;;  %v482_v47 = vld [vmem:[#allocation5 + $0xda8] sm:$0xff] }
  0xe3   :  { %1095 = vmatpush.msrb.mxu0 %v62_v5  ;;  %1114 = vmatpush.msrb.mxu1 %v130_v6  ;;  %v550_v48 = vld [vmem:[#allocation5 + $0xfc8] sm:$0xff] }
  0xe4   :  { %1135 = vmatpush.msrb.mxu2 %v190_v7  ;;  %1154 = vmatpush.msrb.mxu3 %v258_v8  ;;  %v350_v49 = vld [vmem:[#allocation5 + $0x988] sm:$0xff] }
  0xe5   :  { %1096 = vmatpush.msrb.mxu0 %v58_v9  ;;  %1115 = vmatpush.msrb.mxu1 %v126_v10  ;;  %v418_v50 = vld [vmem:[#allocation5 + $0xba8] sm:$0xff] }
  0xe6   :  { %1136 = vmatpush.msrb.mxu2 %v186_v11  ;;  %1155 = vmatpush.msrb.mxu3 %v254_v12  ;;  %v478_v51 = vld [vmem:[#allocation5 + $0xd88] sm:$0xff] }
  0xe7   :  { %1097 = vmatpush.msrb.mxu0 %v54_v15  ;;  %1116 = vmatpush.msrb.mxu1 %v122_v16  ;;  %v546_v52 = vld [vmem:[#allocation5 + $0xfa8] sm:$0xff] }
  0xe8   :  { %1137 = vmatpush.msrb.mxu2 %v182_v18  ;;  %1156 = vmatpush.msrb.mxu3 %v250_v19  ;;  %v346_v53 = vld [vmem:[#allocation5 + $0x968] sm:$0xff] }
  0xe9   :  { %1098 = vmatpush.msrb.mxu0 %v50_v24  ;;  %1117 = vmatpush.msrb.mxu1 %v118_v25  ;;  %v414_v54 = vld [vmem:[#allocation5 + $0xb88] sm:$0xff] }
  0xea   :  { %1138 = vmatpush.msrb.mxu2 %v178_v26  ;;  %1157 = vmatpush.msrb.mxu3 %v246_v27  ;;  %v474_v55 = vld [vmem:[#allocation5 + $0xd68] sm:$0xff] }
  0xeb   :  { %1099 = vmatpush.msrb.mxu0 %v46_v29  ;;  %1118 = vmatpush.msrb.mxu1 %v114_v30  ;;  %v542_v56 = vld [vmem:[#allocation5 + $0xf88] sm:$0xff] }
  0xec   :  { %1139 = vmatpush.msrb.mxu2 %v174_v31  ;;  %1158 = vmatpush.msrb.mxu3 %v242_v32  ;;  %v342_v57 = vld [vmem:[#allocation5 + $0x948] sm:$0xff] }
  0xed   :  { %1164 = vmatpush.msra.mxu0 %v362_v33  ;;  %1119 = vmatpush.msrb.mxu1 %v110_v35  ;;  %v410_v58 = vld [vmem:[#allocation5 + $0xb68] sm:$0xff] }
  0xee   :  { %1204 = vmatpush.msra.mxu2 %v490_v34  ;;  %1159 = vmatpush.msrb.mxu3 %v238_v36  ;;  %v470_v59 = vld [vmem:[#allocation5 + $0xd48] sm:$0xff] }
  0xef   :  { %1165 = vmatpush.msra.mxu0 %v358_v37  ;;  %1184 = vmatpush.msra.mxu1 %v426_v38  ;;  %v538_v60 = vld [vmem:[#allocation5 + $0xf68] sm:$0xff] }
  0xf0   :  { %1205 = vmatpush.msra.mxu2 %v486_v39  ;;  %1224 = vmatpush.msra.mxu3 %v554_v40  ;;  %v338_v61 = vld [vmem:[#allocation5 + $0x928] sm:$0xff] }
  0xf1   :  { %1166 = vmatpush.msra.mxu0 %v354_v41  ;;  %1185 = vmatpush.msra.mxu1 %v422_v42  ;;  %v406_v62 = vld [vmem:[#allocation5 + $0xb48] sm:$0xff] }
  0xf2   :  { %1206 = vmatpush.msra.mxu2 %v482_v47  ;;  %1225 = vmatpush.msra.mxu3 %v550_v48  ;;  %v466_v63 = vld [vmem:[#allocation5 + $0xd28] sm:$0xff] }
  0xf3   :  { %1167 = vmatpush.msra.mxu0 %v350_v49  ;;  %1186 = vmatpush.msra.mxu1 %v418_v50  ;;  %v534_v0 = vld [vmem:[#allocation5 + $0xf48] sm:$0xff] }
  0xf4   :  { %1207 = vmatpush.msra.mxu2 %v478_v51  ;;  %1226 = vmatpush.msra.mxu3 %v546_v52  ;;  %v334_v1 = vld [vmem:[#allocation5 + $0x908] sm:$0xff] }
  0xf5   :  { %1168 = vmatpush.msra.mxu0 %v346_v53  ;;  %1187 = vmatpush.msra.mxu1 %v414_v54  ;;  %v402_v2 = vld [vmem:[#allocation5 + $0xb28] sm:$0xff] }
  0xf6   :  { %1208 = vmatpush.msra.mxu2 %v474_v55  ;;  %1227 = vmatpush.msra.mxu3 %v542_v56  ;;  %v462_v3 = vld [vmem:[#allocation5 + $0xd08] sm:$0xff] }
  0xf7   :  { %1169 = vmatpush.msra.mxu0 %v342_v57  ;;  %1188 = vmatpush.msra.mxu1 %v410_v58  ;;  %v530_v4 = vld [vmem:[#allocation5 + $0xf28] sm:$0xff] }
  0xf8   :  { %1209 = vmatpush.msra.mxu2 %v470_v59  ;;  %1228 = vmatpush.msra.mxu3 %v538_v60  ;;  %v330_v5 = vld [vmem:[#allocation5 + $0x8e8] sm:$0xff] }
  0xf9   :  { %1170 = vmatpush.msra.mxu0 %v338_v61  ;;  %1189 = vmatpush.msra.mxu1 %v406_v62  ;;  %v398_v6 = vld [vmem:[#allocation5 + $0xb08] sm:$0xff] }
  0xfa   :  { %1210 = vmatpush.msra.mxu2 %v466_v63  ;;  %1229 = vmatpush.msra.mxu3 %v534_v0  ;;  %v458_v7 = vld [vmem:[#allocation5 + $0xce8] sm:$0xff] }
  0xfb   :  { %1171 = vmatpush.msra.mxu0 %v334_v1  ;;  %1190 = vmatpush.msra.mxu1 %v402_v2  ;;  %v526_v8 = vld [vmem:[#allocation5 + $0xf08] sm:$0xff] }
  0xfc   :  { %1211 = vmatpush.msra.mxu2 %v462_v3  ;;  %1230 = vmatpush.msra.mxu3 %v530_v4  ;;  %v326_v9 = vld [vmem:[#allocation5 + $0x8c8] sm:$0xff] }
  0xfd   :  { %v394_v10 = vld [vmem:[#allocation5 + $0xae8] sm:$0xff]  ;;  %1172 = vmatpush.msra.mxu0 %v330_v5  ;;  %1191 = vmatpush.msra.mxu1 %v398_v6 }
  0xfe   :  { %v454_v11 = vld [vmem:[#allocation5 + $0xcc8] sm:$0xff]  ;;  %1212 = vmatpush.msra.mxu2 %v458_v7  ;;  %1231 = vmatpush.msra.mxu3 %v526_v8 }
  0xff   :  { %v522_v12 = vld [vmem:[#allocation5 + $0xee8] sm:$0xff]  ;;  %1173 = vmatpush.msra.mxu0 %v326_v9  ;;  %1192 = vmatpush.msra.mxu1 %v394_v10 }
 0x100   :  { %v322_v15 = vld [vmem:[#allocation5 + $0x8a8] sm:$0xff]  ;;  %1213 = vmatpush.msra.mxu2 %v454_v11  ;;  %1232 = vmatpush.msra.mxu3 %v522_v12 }
 0x101   :  { %v390_v16 = vld [vmem:[#allocation5 + $0xac8] sm:$0xff]  ;;  %1174 = vmatpush.msra.mxu0 %v322_v15  ;;  %1140 = vmatmul.f32.vlgmr.msrb.gmra.mxu2 %v1954_v43 }
 0x102   :  { %v450_v18 = vld [vmem:[#allocation5 + $0xca8] sm:$0xff]  ;;  %1193 = vmatpush.msra.mxu1 %v390_v16  ;;  %1100 = vmatmul.f32.vlgmr.msrb.gmra.mxu0 %v1956_v44 }
 0x103   :  { %v518_v19 = vld [vmem:[#allocation5 + $0xec8] sm:$0xff]  ;;  %1214 = vmatpush.msra.mxu2 %v450_v18  ;;  %1160 = vmatmul.f32.vlgmr.msrb.gmra.mxu3 %v1958_v45 }
 0x104   :  { %v318_v24 = vld [vmem:[#allocation5 + $0x888] sm:$0xff]  ;;  %1233 = vmatpush.msra.mxu3 %v518_v19  ;;  %1120 = vmatmul.f32.vlgmr.msrb.gmra.mxu1 %v1960_v46 }
 0x105   :  { %v386_v25 = vld [vmem:[#allocation5 + $0xaa8] sm:$0xff]  ;;  %1175 = vmatpush.msra.mxu0 %v318_v24 }
 0x106   :  { %v446_v26 = vld [vmem:[#allocation5 + $0xc88] sm:$0xff]  ;;  %1194 = vmatpush.msra.mxu1 %v386_v25 }
 0x107   :  { %v514_v27 = vld [vmem:[#allocation5 + $0xea8] sm:$0xff]  ;;  %1215 = vmatpush.msra.mxu2 %v446_v26 }
 0x108   :  { %v314_v29 = vld [vmem:[#allocation5 + $0x868] sm:$0xff]  ;;  %1234 = vmatpush.msra.mxu3 %v514_v27 }
 0x109   :  { %v382_v30 = vld [vmem:[#allocation5 + $0xa88] sm:$0xff]  ;;  %1176 = vmatpush.msra.mxu0 %v314_v29 }
 0x10a   :  { %v442_v31 = vld [vmem:[#allocation5 + $0xc68] sm:$0xff]  ;;  %1195 = vmatpush.msra.mxu1 %v382_v30 }
 0x10b   :  { %v510_v32 = vld [vmem:[#allocation5 + $0xe88] sm:$0xff]  ;;  %1216 = vmatpush.msra.mxu2 %v442_v31 }
 0x10c   :  { %v310_v33 = vld [vmem:[#allocation5 + $0x848] sm:$0xff]  ;;  %1235 = vmatpush.msra.mxu3 %v510_v32 }
 0x10d   :  { %v378_v34 = vld [vmem:[#allocation5 + $0xa68] sm:$0xff]  ;;  %1177 = vmatpush.msra.mxu0 %v310_v33 }
 0x10e   :  { %v438_v35 = vld [vmem:[#allocation5 + $0xc48] sm:$0xff]  ;;  %1196 = vmatpush.msra.mxu1 %v378_v34 }
 0x10f   :  { %v506_v36 = vld [vmem:[#allocation5 + $0xe68] sm:$0xff]  ;;  %1217 = vmatpush.msra.mxu2 %v438_v35  ;;  %v861_v35 = vpop.f32.mrf.mxu0 }
 0x110   :  { %v306_v37 = vld [vmem:[#allocation5 + $0x828] sm:$0xff]  ;;  %1236 = vmatpush.msra.mxu3 %v506_v36 }
 0x111   :  { %v374_v38 = vld [vmem:[#allocation5 + $0xa48] sm:$0xff]  ;;  %1178 = vmatpush.msra.mxu0 %v306_v37 }
 0x112   :  { %v434_v39 = vld [vmem:[#allocation5 + $0xc28] sm:$0xff]  ;;  %1197 = vmatpush.msra.mxu1 %v374_v38 }
 0x113   :  { %v502_v40 = vld [vmem:[#allocation5 + $0xe48] sm:$0xff]  ;;  %1218 = vmatpush.msra.mxu2 %v434_v39 }
 0x114   :  { %v302_v41 = vld [vmem:[#allocation5 + $0x808] sm:$0xff]  ;;  %1237 = vmatpush.msra.mxu3 %v502_v40 }
 0x115   :  { %v370_v42 = vld [vmem:[#allocation5 + $0xa28] sm:$0xff]  ;;  %1179 = vmatpush.msra.mxu0 %v302_v41 }
 0x116   :  { %v430_v47 = vld [vmem:[#allocation5 + $0xc08] sm:$0xff]  ;;  %1198 = vmatpush.msra.mxu1 %v370_v42  ;;  %1180 = vmatmul.f32.vlgmr.msra.gmra.mxu0 %v1968_v22  ;;  %v881_v42 = vpop.f32.mrf.mxu1 }
 0x117   :  { %v498_v48 = vld [vmem:[#allocation5 + $0xe28] sm:$0xff]  ;;  %1219 = vmatpush.msra.mxu2 %v430_v47 }
 0x118   :  { %v618_v49 = vld [vmem:[#allocation5 + $0x11e8] sm:$0xff]  ;;  %1238 = vmatpush.msra.mxu3 %v498_v48  ;;  %1220 = vmatmul.f32.vlgmr.msra.gmra.mxu2 %v1966_v17 }
 0x119   :  { %v746_v50 = vld [vmem:[#allocation5 + $0x15e8] sm:$0xff]  ;;  %1244 = vmatpush.msrb.mxu0 %v618_v49  ;;  %v882_v49 = vadd.f32 %v881_v42, %v861_v35  ;;  %v279_v35 = vld [vmem:[#allocation5 + $0x750] sm:$0xff] }
 0x11a   :  { %v366_v51 = vld [vmem:[#allocation5 + $0xa08] sm:$0xff]  ;;  %1284 = vmatpush.msrb.mxu2 %v746_v50  ;;  %v901_v50 = vpop.f32.mrf.mxu2  ;;  %v203_v42 = vld [vmem:[#allocation5 + $0x4f0] sm:$0xff] }
 0x11b   :  { %v494_v52 = vld [vmem:[#allocation5 + $0xe08] sm:$0xff]  ;;  %1199 = vmatpush.msra.mxu1 %v366_v51 }
 0x11c   :  { %v614_v53 = vld [vmem:[#allocation5 + $0x11c8] sm:$0xff]  ;;  %1239 = vmatpush.msra.mxu3 %v494_v52  ;;  %1200 = vmatmul.f32.vlgmr.msra.gmra.mxu1 %v1974_v28 }
 0x11d   :  { %v682_v54 = vld [vmem:[#allocation5 + $0x13e8] sm:$0xff]  ;;  %1245 = vmatpush.msrb.mxu0 %v614_v53  ;;  %1240 = vmatmul.f32.vlgmr.msra.gmra.mxu3 %v1971_v23 }
 0x11e   :  { %v742_v55 = vld [vmem:[#allocation5 + $0x15c8] sm:$0xff]  ;;  %1264 = vmatpush.msrb.mxu1 %v682_v54 }
 0x11f   :  { %v810_v56 = vld [vmem:[#allocation5 + $0x17e8] sm:$0xff]  ;;  %1285 = vmatpush.msrb.mxu2 %v742_v55  ;;  %v902_v55 = vadd.f32 %v901_v50, %v882_v49  ;;  %v139_v49 = vld [vmem:[#allocation5 + $0x2f0] sm:$0xff] }
 0x120   :  { %v610_v57 = vld [vmem:[#allocation5 + $0x11a8] sm:$0xff]  ;;  %1304 = vmatpush.msrb.mxu3 %v810_v56  ;;  %v199_v50 = vld [vmem:[#allocation5 + $0x4d0] sm:$0xff] }
 0x121   :  { %v678_v58 = vld [vmem:[#allocation5 + $0x13c8] sm:$0xff]  ;;  %1246 = vmatpush.msrb.mxu0 %v610_v57 }
 0x122   :  { %v738_v59 = vld [vmem:[#allocation5 + $0x15a8] sm:$0xff]  ;;  %1265 = vmatpush.msrb.mxu1 %v678_v58  ;;  %v921_v58 = vpop.f32.mrf.mxu3 }
 0x123   :  { %v806_v60 = vld [vmem:[#allocation5 + $0x17c8] sm:$0xff]  ;;  %1286 = vmatpush.msrb.mxu2 %v738_v59 }
 0x124   :  { %v606_v61 = vld [vmem:[#allocation5 + $0x1188] sm:$0xff]  ;;  %1305 = vmatpush.msrb.mxu3 %v806_v60 }
 0x125   :  { %v674_v62 = vld [vmem:[#allocation5 + $0x13a8] sm:$0xff]  ;;  %1247 = vmatpush.msrb.mxu0 %v606_v61  ;;  %v922_v61 = vadd.f32 %v921_v58, %v902_v55  ;;  %v263_v55 = vld [vmem:[#allocation5 + $0x6d0] sm:$0xff] }
 0x126   :  { %v734_v63 = vld [vmem:[#allocation5 + $0x1588] sm:$0xff]  ;;  %1266 = vmatpush.msrb.mxu1 %v674_v62  ;;  %v191_v58 = vld [vmem:[#allocation5 + $0x490] sm:$0xff] }
 0x127   :  { %v802_v0 = vld [vmem:[#allocation5 + $0x17a8] sm:$0xff]  ;;  %1287 = vmatpush.msrb.mxu2 %v734_v63 }
 0x128   :  { %v602_v1 = vld [vmem:[#allocation5 + $0x1168] sm:$0xff]  ;;  %1306 = vmatpush.msrb.mxu3 %v802_v0  ;;  %v941_v0 = vpop.f32.mrf.mxu0 }
 0x129   :  { %v670_v2 = vld [vmem:[#allocation5 + $0x1388] sm:$0xff]  ;;  %1248 = vmatpush.msrb.mxu0 %v602_v1  ;;  %v107_v1 = vld [vmem:[#allocation5 + $0x1f0] sm:$0xff] }
 0x12a   :  { %v730_v3 = vld [vmem:[#allocation5 + $0x1568] sm:$0xff]  ;;  %1267 = vmatpush.msrb.mxu1 %v670_v2  ;;  %v235_v2 = vld [vmem:[#allocation5 + $0x5f0] sm:$0xff] }
 0x12b   :  { %v798_v4 = vld [vmem:[#allocation5 + $0x1788] sm:$0xff]  ;;  %1288 = vmatpush.msrb.mxu2 %v730_v3  ;;  %v942_v3 = vadd.f32 %v941_v0, %v922_v61  ;;  %v127_v61 = vld [vmem:[#allocation5 + $0x290] sm:$0xff] }
 0x12c   :  { %v598_v5 = vld [vmem:[#allocation5 + $0x1148] sm:$0xff]  ;;  %1307 = vmatpush.msrb.mxu3 %v798_v4  ;;  %v255_v0 = vld [vmem:[#allocation5 + $0x690] sm:$0xff] }
 0x12d   :  { %v666_v6 = vld [vmem:[#allocation5 + $0x1368] sm:$0xff]  ;;  %1249 = vmatpush.msrb.mxu0 %v598_v5 }
 0x12e   :  { %v726_v7 = vld [vmem:[#allocation5 + $0x1548] sm:$0xff]  ;;  %1268 = vmatpush.msrb.mxu1 %v666_v6  ;;  %v961_v6 = vpop.f32.mrf.mxu1 }
 0x12f   :  { %v794_v8 = vld [vmem:[#allocation5 + $0x1768] sm:$0xff]  ;;  %1289 = vmatpush.msrb.mxu2 %v726_v7  ;;  %v103_v7 = vld [vmem:[#allocation5 + $0x1d0] sm:$0xff] }
 0x130   :  { %v594_v17 = vld [vmem:[#allocation5 + $0x1128] sm:$0xff]  ;;  %1308 = vmatpush.msrb.mxu3 %v794_v8  ;;  %v171_v8 = vld [vmem:[#allocation5 + $0x3f0] sm:$0xff] }
 0x131   :  { %v662_v9 = vld [vmem:[#allocation5 + $0x1348] sm:$0xff]  ;;  %1250 = vmatpush.msrb.mxu0 %v594_v17  ;;  %v962_v17 = vadd.f32 %v961_v6, %v942_v3  ;;  %v123_v3 = vld [vmem:[#allocation5 + $0x270] sm:$0xff] }
 0x132   :  { %v722_v10 = vld [vmem:[#allocation5 + $0x1528] sm:$0xff]  ;;  %1269 = vmatpush.msrb.mxu1 %v662_v9  ;;  %v981_v9 = vpop.f32.mrf.mxu2 }
 0x133   :  { %v790_v11 = vld [vmem:[#allocation5 + $0x1748] sm:$0xff]  ;;  %1290 = vmatpush.msrb.mxu2 %v722_v10  ;;  %v231_v10 = vld [vmem:[#allocation5 + $0x5d0] sm:$0xff] }
 0x134   :  { %v590_v22 = vld [vmem:[#allocation5 + $0x1108] sm:$0xff]  ;;  %1309 = vmatpush.msrb.mxu3 %v790_v11  ;;  %v299_v11 = vld [vmem:[#allocation5 + $0x7f0] sm:$0xff] }
 0x135   :  { %v658_v23 = vld [vmem:[#allocation5 + $0x1328] sm:$0xff]  ;;  %1251 = vmatpush.msrb.mxu0 %v590_v22  ;;  %v99_v22 = vld [vmem:[#allocation5 + $0x1b0] sm:$0xff] }
 0x136   :  { %v718_v12 = vld [vmem:[#allocation5 + $0x1508] sm:$0xff]  ;;  %1270 = vmatpush.msrb.mxu1 %v658_v23  ;;  %v167_v23 = vld [vmem:[#allocation5 + $0x3d0] sm:$0xff] }
 0x137   :  { %v786_v15 = vld [vmem:[#allocation5 + $0x1728] sm:$0xff]  ;;  %1291 = vmatpush.msrb.mxu2 %v718_v12  ;;  %v295_v12 = vld [vmem:[#allocation5 + $0x7d0] sm:$0xff] }
 0x138   :  { %v586_v16 = vld [vmem:[#allocation5 + $0x10e8] sm:$0xff]  ;;  %1310 = vmatpush.msrb.mxu3 %v786_v15  ;;  %v1001_v15 = vpop.f32.mrf.mxu3 }
 0x139   :  { %v654_v18 = vld [vmem:[#allocation5 + $0x1308] sm:$0xff]  ;;  %1252 = vmatpush.msrb.mxu0 %v586_v16  ;;  %v95_v16 = vld [vmem:[#allocation5 + $0x190] sm:$0xff] }
 0x13a   :  { %v714_v28 = vld [vmem:[#allocation5 + $0x14e8] sm:$0xff]  ;;  %1271 = vmatpush.msrb.mxu1 %v654_v18  ;;  %v163_v18 = vld [vmem:[#allocation5 + $0x3b0] sm:$0xff] }
 0x13b   :  { %v782_v19 = vld [vmem:[#allocation5 + $0x1708] sm:$0xff]  ;;  %1292 = vmatpush.msrb.mxu2 %v714_v28 }
 0x13c   :  { %v582_v24 = vld [vmem:[#allocation5 + $0x10c8] sm:$0xff]  ;;  %1311 = vmatpush.msrb.mxu3 %v782_v19  ;;  %v223_v19 = vld [vmem:[#allocation5 + $0x590] sm:$0xff] }
 0x13d   :  { %v650_v25 = vld [vmem:[#allocation5 + $0x12e8] sm:$0xff]  ;;  %1253 = vmatpush.msrb.mxu0 %v582_v24  ;;  %v159_v24 = vld [vmem:[#allocation5 + $0x390] sm:$0xff] }
 0x13e   :  { %v710_v26 = vld [vmem:[#allocation5 + $0x14c8] sm:$0xff]  ;;  %1272 = vmatpush.msrb.mxu1 %v650_v25  ;;  %v219_v25 = vld [vmem:[#allocation5 + $0x570] sm:$0xff] }
 0x13f   :  { %v778_v27 = vld [vmem:[#allocation5 + $0x16e8] sm:$0xff]  ;;  %1293 = vmatpush.msrb.mxu2 %v710_v26  ;;  %v287_v26 = vld [vmem:[#allocation5 + $0x790] sm:$0xff] }
 0x140   :  { %v578_v29 = vld [vmem:[#allocation5 + $0x10a8] sm:$0xff]  ;;  %1312 = vmatpush.msrb.mxu3 %v778_v27  ;;  %v87_v27 = vld [vmem:[#allocation5 + $0x150] sm:$0xff] }
 0x141   :  { %v646_v30 = vld [vmem:[#allocation5 + $0x12c8] sm:$0xff]  ;;  %1254 = vmatpush.msrb.mxu0 %v578_v29  ;;  %v155_v29 = vld [vmem:[#allocation5 + $0x370] sm:$0xff] }
 0x142   :  { %v706_v31 = vld [vmem:[#allocation5 + $0x14a8] sm:$0xff]  ;;  %1273 = vmatpush.msrb.mxu1 %v646_v30  ;;  %v215_v30 = vld [vmem:[#allocation5 + $0x550] sm:$0xff] }
 0x143   :  { %v774_v32 = vld [vmem:[#allocation5 + $0x16c8] sm:$0xff]  ;;  %1294 = vmatpush.msrb.mxu2 %v706_v31  ;;  %v283_v31 = vld [vmem:[#allocation5 + $0x770] sm:$0xff] }
 0x144   :  { %v574_v33 = vld [vmem:[#allocation5 + $0x1088] sm:$0xff]  ;;  %1313 = vmatpush.msrb.mxu3 %v774_v32  ;;  %v83_v32 = vld [vmem:[#allocation5 + $0x130] sm:$0xff] }
 0x145   :  { %v642_v34 = vld [vmem:[#allocation5 + $0x12a8] sm:$0xff]  ;;  %1255 = vmatpush.msrb.mxu0 %v574_v33  ;;  %v151_v33 = vld [vmem:[#allocation5 + $0x350] sm:$0xff] }
 0x146   :  { %v702_v36 = vld [vmem:[#allocation5 + $0x1488] sm:$0xff]  ;;  %1274 = vmatpush.msrb.mxu1 %v642_v34  ;;  %v211_v34 = vld [vmem:[#allocation5 + $0x530] sm:$0xff] }
 0x147   :  { %v770_v37 = vld [vmem:[#allocation5 + $0x16a8] sm:$0xff]  ;;  %1295 = vmatpush.msrb.mxu2 %v702_v36  ;;  %v79_v36 = vld [vmem:[#allocation5 + $0x110] sm:$0xff] }
 0x148   :  { %v570_v38 = vld [vmem:[#allocation5 + $0x1068] sm:$0xff]  ;;  %1314 = vmatpush.msrb.mxu3 %v770_v37  ;;  %v147_v37 = vld [vmem:[#allocation5 + $0x330] sm:$0xff] }
 0x149   :  { %v638_v39 = vld [vmem:[#allocation5 + $0x1288] sm:$0xff]  ;;  %1256 = vmatpush.msrb.mxu0 %v570_v38  ;;  %v207_v38 = vld [vmem:[#allocation5 + $0x510] sm:$0xff] }
 0x14a   :  { %v698_v40 = vld [vmem:[#allocation5 + $0x1468] sm:$0xff]  ;;  %1275 = vmatpush.msrb.mxu1 %v638_v39  ;;  %v275_v39 = vld [vmem:[#allocation5 + $0x730] sm:$0xff] }
 0x14b   :  { %v766_v41 = vld [vmem:[#allocation5 + $0x1688] sm:$0xff]  ;;  %1296 = vmatpush.msrb.mxu2 %v698_v40  ;;  %v75_v40 = vld [vmem:[#allocation5 + $0xf0] sm:$0xff]  ;;  %v1041_v6 = vpop.f32.mrf.mxu1 }
 0x14c   :  { %v566_v47 = vld [vmem:[#allocation5 + $0x1048] sm:$0xff]  ;;  %1315 = vmatpush.msrb.mxu3 %v766_v41  ;;  %v143_v41 = vld [vmem:[#allocation5 + $0x310] sm:$0xff] }
 0x14d   :  { %v634_v48 = vld [vmem:[#allocation5 + $0x1268] sm:$0xff]  ;;  %1257 = vmatpush.msrb.mxu0 %v566_v47  ;;  %v271_v47 = vld [vmem:[#allocation5 + $0x710] sm:$0xff] }
 0x14e   :  { %v694_v51 = vld [vmem:[#allocation5 + $0x1448] sm:$0xff]  ;;  %1276 = vmatpush.msrb.mxu1 %v634_v48  ;;  %v71_v48 = vld [vmem:[#allocation5 + $0xd0] sm:$0xff] }
 0x14f   :  { %v762_v52 = vld [vmem:[#allocation5 + $0x1668] sm:$0xff]  ;;  %1297 = vmatpush.msrb.mxu2 %v694_v51  ;;  %v267_v51 = vld [vmem:[#allocation5 + $0x6f0] sm:$0xff] }
 0x150   :  { %v562_v53 = vld [vmem:[#allocation5 + $0x1028] sm:$0xff]  ;;  %1316 = vmatpush.msrb.mxu3 %v762_v52  ;;  %v67_v52 = vld [vmem:[#allocation5 + $0xb0] sm:$0xff] }
 0x151   :  { %v630_v54 = vld [vmem:[#allocation5 + $0x1248] sm:$0xff]  ;;  %1258 = vmatpush.msrb.mxu0 %v562_v53  ;;  %v135_v53 = vld [vmem:[#allocation5 + $0x2d0] sm:$0xff] }
 0x152   :  { %v690_v56 = vld [vmem:[#allocation5 + $0x1428] sm:$0xff]  ;;  %1277 = vmatpush.msrb.mxu1 %v630_v54  ;;  %v195_v54 = vld [vmem:[#allocation5 + $0x4b0] sm:$0xff] }
 0x153   :  { %v758_v57 = vld [vmem:[#allocation5 + $0x1648] sm:$0xff]  ;;  %1298 = vmatpush.msrb.mxu2 %v690_v56  ;;  %v63_v56 = vld [vmem:[#allocation5 + $0x90] sm:$0xff] }
 0x154   :  { %v558_v59 = vld [vmem:[#allocation5 + $0x1008] sm:$0xff]  ;;  %1317 = vmatpush.msrb.mxu3 %v758_v57  ;;  %v131_v57 = vld [vmem:[#allocation5 + $0x2b0] sm:$0xff] }
 0x155   :  { %v626_v60 = vld [vmem:[#allocation5 + $0x1228] sm:$0xff]  ;;  %1259 = vmatpush.msrb.mxu0 %v558_v59  ;;  %v259_v59 = vld [vmem:[#allocation5 + $0x6b0] sm:$0xff] }
 0x156   :  { %v686_v62 = vld [vmem:[#allocation5 + $0x1408] sm:$0xff]  ;;  %1278 = vmatpush.msrb.mxu1 %v626_v60  ;;  %1260 = vmatmul.f32.vlgmr.msrb.gmra.mxu0 %v1978_v13  ;;  %v982_v13 = vadd.f32 %v981_v9, %v962_v17  ;;  %v59_v60 = vld [vmem:[#allocation5 + $0x70] sm:$0xff] }
 0x157   :  { %v754_v63 = vld [vmem:[#allocation5 + $0x1628] sm:$0xff]  ;;  %1299 = vmatpush.msrb.mxu2 %v686_v62  ;;  %1324 = vmatpush.msra.mxu0 %v107_v1  ;;  %v1021_v62 = vpop.f32.mrf.mxu0  ;;  %v179_v17 = vld [vmem:[#allocation5 + $0x430] sm:$0xff] }
 0x158   :  { %1318 = vmatpush.msrb.mxu3 %v754_v63  ;;  %v622_v4 = vld [vmem:[#allocation5 + $0x1208] sm:$0xff]  ;;  %1300 = vmatmul.f32.vlgmr.msrb.gmra.mxu2 %v1980_v14  ;;  %v227_v14 = vld [vmem:[#allocation5 + $0x5b0] sm:$0xff]  ;;  %v2002_v28 = vadd.f32 %v1001_v15, %v982_v13 }
 0x159   :  { %v750_v5 = vld [vmem:[#allocation5 + $0x1608] sm:$0xff]  ;;  %1364 = vmatpush.msra.mxu2 %v235_v2  ;;  %1279 = vmatpush.msrb.mxu1 %v622_v4  ;;  %v187_v63 = vld [vmem:[#allocation5 + $0x470] sm:$0xff] }
 0x15a   :  { %1319 = vmatpush.msrb.mxu3 %v750_v5  ;;  %1280 = vmatmul.f32.vlgmr.msrb.gmra.mxu1 %v1984_v20  ;;  %v291_v20 = vld [vmem:[#allocation5 + $0x7b0] sm:$0xff]  ;;  %v1022_v1 = vadd.f32 %v1021_v62, %v2002_v28 }
 0x15b   :  { %1320 = vmatmul.f32.vlgmr.msrb.gmra.mxu3 %v1986_v21  ;;  %1325 = vmatpush.msra.mxu0 %v103_v7  ;;  %v91_v21 = vld [vmem:[#allocation5 + $0x170] sm:$0xff] }
 0x15c   :  { %1344 = vmatpush.msra.mxu1 %v171_v8  ;;  %1365 = vmatpush.msra.mxu2 %v231_v10  ;;  %v55_v2 = vld [vmem:[#allocation5 + $0x50] sm:$0xff]  ;;  %v1042_v10 = vadd.f32 %v1041_v6, %v1022_v1 }
 0x15d   :  { %1384 = vmatpush.msra.mxu3 %v299_v11  ;;  %1326 = vmatpush.msra.mxu0 %v99_v22  ;;  %v183_v4 = vld [vmem:[#allocation5 + $0x450] sm:$0xff] }
 0x15e   :  { %1345 = vmatpush.msra.mxu1 %v167_v23  ;;  %1366 = vmatpush.msra.mxu2 %v227_v14  ;;  %v251_v5 = vld [vmem:[#allocation5 + $0x670] sm:$0xff]  ;;  %v1061_v23 = vpop.f32.mrf.mxu2 }
 0x15f   :  { %1385 = vmatpush.msra.mxu3 %v295_v12  ;;  %1327 = vmatpush.msra.mxu0 %v95_v16  ;;  %v51_v7 = vld [vmem:[#allocation5 + $0x30] sm:$0xff]  ;;  %v1062_v12 = vadd.f32 %v1061_v23, %v1042_v10 }
 0x160   :  { %1346 = vmatpush.msra.mxu1 %v163_v18  ;;  %1367 = vmatpush.msra.mxu2 %v223_v19  ;;  %v119_v8 = vld [vmem:[#allocation5 + $0x250] sm:$0xff]  ;;  %v1081_v19 = vpop.f32.mrf.mxu3 }
 0x161   :  { %1386 = vmatpush.msra.mxu3 %v291_v20  ;;  %1328 = vmatpush.msra.mxu0 %v91_v21  ;;  %v247_v9 = vld [vmem:[#allocation5 + $0x650] sm:$0xff] }
 0x162   :  { %1347 = vmatpush.msra.mxu1 %v159_v24  ;;  %1368 = vmatpush.msra.mxu2 %v219_v25  ;;  %v47_v11 = vld [vmem:[#allocation5 + $0x10] sm:$0xff]  ;;  %v2005_v24 = vadd.f32 %v1081_v19, %v1062_v12 }
 0x163   :  { %1387 = vmatpush.msra.mxu3 %v287_v26  ;;  %1329 = vmatpush.msra.mxu0 %v87_v27  ;;  %v115_v22 = vld [vmem:[#allocation5 + $0x230] sm:$0xff] }
 0x164   :  { %1348 = vmatpush.msra.mxu1 %v155_v29  ;;  %1369 = vmatpush.msra.mxu2 %v215_v30  ;;  %v175_v13 = vld [vmem:[#allocation5 + $0x410] sm:$0xff] }
 0x165   :  { %1388 = vmatpush.msra.mxu3 %v283_v31  ;;  %1330 = vmatpush.msra.mxu0 %v83_v32  ;;  %v243_v14 = vld [vmem:[#allocation5 + $0x630] sm:$0xff] }
 0x166   :  { %1349 = vmatpush.msra.mxu1 %v151_v33  ;;  %1370 = vmatpush.msra.mxu2 %v211_v34  ;;  %v363_v15 = vld [vmem:[#allocation5 + $0x9f0] sm:$0xff] }
 0x167   :  { %1389 = vmatpush.msra.mxu3 %v279_v35  ;;  %1331 = vmatpush.msra.mxu0 %v79_v36  ;;  %v491_v16 = vld [vmem:[#allocation5 + $0xdf0] sm:$0xff] }
 0x168   :  { %1350 = vmatpush.msra.mxu1 %v147_v37  ;;  %1371 = vmatpush.msra.mxu2 %v207_v38  ;;  %v111_v18 = vld [vmem:[#allocation5 + $0x210] sm:$0xff] }
 0x169   :  { %1390 = vmatpush.msra.mxu3 %v275_v39  ;;  %1332 = vmatpush.msra.mxu0 %v75_v40  ;;  %v239_v28 = vld [vmem:[#allocation5 + $0x610] sm:$0xff] }
 0x16a   :  { %1351 = vmatpush.msra.mxu1 %v143_v41  ;;  %1372 = vmatpush.msra.mxu2 %v203_v42  ;;  %v359_v20 = vld [vmem:[#allocation5 + $0x9d0] sm:$0xff] }
 0x16b   :  { %1391 = vmatpush.msra.mxu3 %v271_v47  ;;  %1333 = vmatpush.msra.mxu0 %v71_v48  ;;  %v427_v21 = vld [vmem:[#allocation5 + $0xbf0] sm:$0xff] }
 0x16c   :  { %1352 = vmatpush.msra.mxu1 %v139_v49  ;;  %1373 = vmatpush.msra.mxu2 %v199_v50  ;;  %v487_v25 = vld [vmem:[#allocation5 + $0xdd0] sm:$0xff] }
 0x16d   :  { %1392 = vmatpush.msra.mxu3 %v267_v51  ;;  %1334 = vmatpush.msra.mxu0 %v67_v52  ;;  %v555_v26 = vld [vmem:[#allocation5 + $0xff0] sm:$0xff] }
 0x16e   :  { %1353 = vmatpush.msra.mxu1 %v135_v53  ;;  %1374 = vmatpush.msra.mxu2 %v195_v54  ;;  %v355_v27 = vld [vmem:[#allocation5 + $0x9b0] sm:$0xff] }
 0x16f   :  { %1393 = vmatpush.msra.mxu3 %v263_v55  ;;  %1335 = vmatpush.msra.mxu0 %v63_v56  ;;  %v423_v29 = vld [vmem:[#allocation5 + $0xbd0] sm:$0xff] }
 0x170   :  { %1354 = vmatpush.msra.mxu1 %v131_v57  ;;  %1375 = vmatpush.msra.mxu2 %v191_v58  ;;  %v483_v30 = vld [vmem:[#allocation5 + $0xdb0] sm:$0xff] }
 0x171   :  { %1394 = vmatpush.msra.mxu3 %v259_v59  ;;  %1336 = vmatpush.msra.mxu0 %v59_v60  ;;  %v551_v31 = vld [vmem:[#allocation5 + $0xfd0] sm:$0xff] }
 0x172   :  { %1355 = vmatpush.msra.mxu1 %v127_v61  ;;  %1376 = vmatpush.msra.mxu2 %v187_v63  ;;  %v351_v32 = vld [vmem:[#allocation5 + $0x990] sm:$0xff] }
 0x173   :  { %1395 = vmatpush.msra.mxu3 %v255_v0  ;;  %1337 = vmatpush.msra.mxu0 %v55_v2  ;;  %v419_v33 = vld [vmem:[#allocation5 + $0xbb0] sm:$0xff] }
 0x174   :  { %1356 = vmatpush.msra.mxu1 %v123_v3  ;;  %1377 = vmatpush.msra.mxu2 %v183_v4  ;;  %v479_v34 = vld [vmem:[#allocation5 + $0xd90] sm:$0xff] }
 0x175   :  { %1396 = vmatpush.msra.mxu3 %v251_v5  ;;  %1338 = vmatpush.msra.mxu0 %v51_v7  ;;  %v547_v35 = vld [vmem:[#allocation5 + $0xfb0] sm:$0xff] }
 0x176   :  { %1357 = vmatpush.msra.mxu1 %v119_v8  ;;  %1378 = vmatpush.msra.mxu2 %v179_v17  ;;  %v347_v36 = vld [vmem:[#allocation5 + $0x970] sm:$0xff] }
 0x177   :  { %1397 = vmatpush.msra.mxu3 %v247_v9  ;;  %1339 = vmatpush.msra.mxu0 %v47_v11  ;;  %v415_v37 = vld [vmem:[#allocation5 + $0xb90] sm:$0xff] }
 0x178   :  { %1358 = vmatpush.msra.mxu1 %v115_v22  ;;  %1379 = vmatpush.msra.mxu2 %v175_v13  ;;  %v475_v38 = vld [vmem:[#allocation5 + $0xd70] sm:$0xff] }
 0x179   :  { %1398 = vmatpush.msra.mxu3 %v243_v14  ;;  %1404 = vmatpush.msrb.mxu0 %v363_v15  ;;  %v543_v39 = vld [vmem:[#allocation5 + $0xf90] sm:$0xff] }
 0x17a   :  { %1444 = vmatpush.msrb.mxu2 %v491_v16  ;;  %1359 = vmatpush.msra.mxu1 %v111_v18  ;;  %v343_v40 = vld [vmem:[#allocation5 + $0x950] sm:$0xff] }
 0x17b   :  { %1399 = vmatpush.msra.mxu3 %v239_v28  ;;  %1405 = vmatpush.msrb.mxu0 %v359_v20  ;;  %v411_v41 = vld [vmem:[#allocation5 + $0xb70] sm:$0xff] }
 0x17c   :  { %1424 = vmatpush.msrb.mxu1 %v427_v21  ;;  %1445 = vmatpush.msrb.mxu2 %v487_v25  ;;  %v471_v42 = vld [vmem:[#allocation5 + $0xd50] sm:$0xff] }
 0x17d   :  { %1464 = vmatpush.msrb.mxu3 %v555_v26  ;;  %1406 = vmatpush.msrb.mxu0 %v355_v27  ;;  %v539_v47 = vld [vmem:[#allocation5 + $0xf70] sm:$0xff] }
 0x17e   :  { %1425 = vmatpush.msrb.mxu1 %v423_v29  ;;  %1446 = vmatpush.msrb.mxu2 %v483_v30  ;;  %v339_v48 = vld [vmem:[#allocation5 + $0x930] sm:$0xff] }
 0x17f   :  { %1465 = vmatpush.msrb.mxu3 %v551_v31  ;;  %1407 = vmatpush.msrb.mxu0 %v351_v32  ;;  %v407_v49 = vld [vmem:[#allocation5 + $0xb50] sm:$0xff] }
 0x180   :  { %1426 = vmatpush.msrb.mxu1 %v419_v33  ;;  %1447 = vmatpush.msrb.mxu2 %v479_v34  ;;  %v467_v50 = vld [vmem:[#allocation5 + $0xd30] sm:$0xff] }
 0x181   :  { %1466 = vmatpush.msrb.mxu3 %v547_v35  ;;  %1408 = vmatpush.msrb.mxu0 %v347_v36  ;;  %v535_v51 = vld [vmem:[#allocation5 + $0xf50] sm:$0xff] }
 0x182   :  { %1427 = vmatpush.msrb.mxu1 %v415_v37  ;;  %1448 = vmatpush.msrb.mxu2 %v475_v38  ;;  %v335_v52 = vld [vmem:[#allocation5 + $0x910] sm:$0xff] }
 0x183   :  { %1467 = vmatpush.msrb.mxu3 %v543_v39  ;;  %1409 = vmatpush.msrb.mxu0 %v343_v40  ;;  %v403_v53 = vld [vmem:[#allocation5 + $0xb30] sm:$0xff] }
 0x184   :  { %1428 = vmatpush.msrb.mxu1 %v411_v41  ;;  %1449 = vmatpush.msrb.mxu2 %v471_v42  ;;  %v463_v54 = vld [vmem:[#allocation5 + $0xd10] sm:$0xff] }
 0x185   :  { %1468 = vmatpush.msrb.mxu3 %v539_v47  ;;  %1410 = vmatpush.msrb.mxu0 %v339_v48  ;;  %v531_v55 = vld [vmem:[#allocation5 + $0xf30] sm:$0xff] }
 0x186   :  { %1429 = vmatpush.msrb.mxu1 %v407_v49  ;;  %1450 = vmatpush.msrb.mxu2 %v467_v50  ;;  %v331_v56 = vld [vmem:[#allocation5 + $0x8f0] sm:$0xff]  ;;  %v2014_v49 = vld.sshfl [vmem:[#allocation1 + $0x20] sm:$0xff pattern:$0x73625140] }
 0x187   :  { %1469 = vmatpush.msrb.mxu3 %v535_v51  ;;  %v399_v57 = vld [vmem:[#allocation5 + $0xb10] sm:$0xff]  ;;  %1411 = vmatpush.msrb.mxu0 %v335_v52  ;;  %v2017_v51 = vld.sshfl [vmem:[#allocation1 + $0x38] sm:$0xff pattern:$0x73625140] }
 0x188   :  { %1430 = vmatpush.msrb.mxu1 %v403_v53  ;;  %v459_v58 = vld [vmem:[#allocation5 + $0xcf0] sm:$0xff]  ;;  %1451 = vmatpush.msrb.mxu2 %v463_v54 }
 0x189   :  { %v527_v59 = vld [vmem:[#allocation5 + $0xf10] sm:$0xff]  ;;  %1470 = vmatpush.msrb.mxu3 %v531_v55  ;;  %1412 = vmatpush.msrb.mxu0 %v331_v56  ;;  %v2020_v56 = vld.sshfl [vmem:[#allocation1 + $0x28] sm:$0xff pattern:$0x73625140] }
 0x18a   :  { %v327_v60 = vld [vmem:[#allocation5 + $0x8d0] sm:$0xff]  ;;  %1431 = vmatpush.msrb.mxu1 %v399_v57  ;;  %1452 = vmatpush.msrb.mxu2 %v459_v58 }
 0x18b   :  { %v395_v61 = vld [vmem:[#allocation5 + $0xaf0] sm:$0xff]  ;;  %1471 = vmatpush.msrb.mxu3 %v527_v59  ;;  %1413 = vmatpush.msrb.mxu0 %v327_v60 }
 0x18c   :  { %v455_v62 = vld [vmem:[#allocation5 + $0xcd0] sm:$0xff]  ;;  %1432 = vmatpush.msrb.mxu1 %v395_v61  ;;  %1380 = vmatmul.f32.vlgmr.msra.gmra.mxu2 %v1954_v43 }
 0x18d   :  { %v523_v63 = vld [vmem:[#allocation5 + $0xef0] sm:$0xff]  ;;  %1453 = vmatpush.msrb.mxu2 %v455_v62  ;;  %1340 = vmatmul.f32.vlgmr.msra.gmra.mxu0 %v1956_v44 }
 0x18e   :  { %v323_v0 = vld [vmem:[#allocation5 + $0x8b0] sm:$0xff]  ;;  %1472 = vmatpush.msrb.mxu3 %v523_v63  ;;  %1360 = vmatmul.f32.vlgmr.msra.gmra.mxu1 %v1960_v46 }
 0x18f   :  { %v391_v1 = vld [vmem:[#allocation5 + $0xad0] sm:$0xff]  ;;  %1414 = vmatpush.msrb.mxu0 %v323_v0  ;;  %1400 = vmatmul.f32.vlgmr.msra.gmra.mxu3 %v1958_v45 }
 0x190   :  { %v451_v2 = vld [vmem:[#allocation5 + $0xcb0] sm:$0xff]  ;;  %1433 = vmatpush.msrb.mxu1 %v391_v1 }
 0x191   :  { %v519_v3 = vld [vmem:[#allocation5 + $0xed0] sm:$0xff]  ;;  %1454 = vmatpush.msrb.mxu2 %v451_v2 }
 0x192   :  { %v319_v4 = vld [vmem:[#allocation5 + $0x890] sm:$0xff]  ;;  %1473 = vmatpush.msrb.mxu3 %v519_v3 }
 0x193   :  { %v387_v5 = vld [vmem:[#allocation5 + $0xab0] sm:$0xff]  ;;  %1415 = vmatpush.msrb.mxu0 %v319_v4 }
 0x194   :  { %v447_v6 = vld [vmem:[#allocation5 + $0xc90] sm:$0xff]  ;;  %1434 = vmatpush.msrb.mxu1 %v387_v5 }
 0x195   :  { %v515_v7 = vld [vmem:[#allocation5 + $0xeb0] sm:$0xff]  ;;  %1455 = vmatpush.msrb.mxu2 %v447_v6 }
 0x196   :  { %v315_v8 = vld [vmem:[#allocation5 + $0x870] sm:$0xff]  ;;  %1474 = vmatpush.msrb.mxu3 %v515_v7 }
 0x197   :  { %v383_v17 = vld [vmem:[#allocation5 + $0xa90] sm:$0xff]  ;;  %1416 = vmatpush.msrb.mxu0 %v315_v8 }
 0x198   :  { %v443_v9 = vld [vmem:[#allocation5 + $0xc70] sm:$0xff]  ;;  %1435 = vmatpush.msrb.mxu1 %v383_v17 }
 0x199   :  { %v511_v10 = vld [vmem:[#allocation5 + $0xe90] sm:$0xff]  ;;  %1456 = vmatpush.msrb.mxu2 %v443_v9 }
 0x19a   :  { %v311_v11 = vld [vmem:[#allocation5 + $0x850] sm:$0xff]  ;;  %1475 = vmatpush.msrb.mxu3 %v511_v10 }
 0x19b   :  { %v379_v22 = vld [vmem:[#allocation5 + $0xa70] sm:$0xff]  ;;  %1417 = vmatpush.msrb.mxu0 %v311_v11 }
 0x19c   :  { %v439_v23 = vld [vmem:[#allocation5 + $0xc50] sm:$0xff]  ;;  %1436 = vmatpush.msrb.mxu1 %v379_v22 }
 0x19d   :  { %v507_v13 = vld [vmem:[#allocation5 + $0xe70] sm:$0xff]  ;;  %1457 = vmatpush.msrb.mxu2 %v439_v23 }
 0x19e   :  { %v307_v14 = vld [vmem:[#allocation5 + $0x830] sm:$0xff]  ;;  %1476 = vmatpush.msrb.mxu3 %v507_v13 }
 0x19f   :  { %v375_v12 = vld [vmem:[#allocation5 + $0xa50] sm:$0xff]  ;;  %1418 = vmatpush.msrb.mxu0 %v307_v14 }
 0x1a0   :  { %v435_v15 = vld [vmem:[#allocation5 + $0xc30] sm:$0xff]  ;;  %1437 = vmatpush.msrb.mxu1 %v375_v12 }
 0x1a1   :  { %v503_v16 = vld [vmem:[#allocation5 + $0xe50] sm:$0xff]  ;;  %1458 = vmatpush.msrb.mxu2 %v435_v15 }
 0x1a2   :  { %v303_v18 = vld [vmem:[#allocation5 + $0x810] sm:$0xff]  ;;  %1477 = vmatpush.msrb.mxu3 %v503_v16 }
 0x1a3   :  { %v371_v28 = vld [vmem:[#allocation5 + $0xa30] sm:$0xff]  ;;  %1419 = vmatpush.msrb.mxu0 %v303_v18 }
 0x1a4   :  { %v431_v19 = vld [vmem:[#allocation5 + $0xc10] sm:$0xff]  ;;  %1438 = vmatpush.msrb.mxu1 %v371_v28  ;;  %1420 = vmatmul.f32.vlgmr.msrb.gmra.mxu0 %v2014_v49 }
 0x1a5   :  { %v499_v20 = vld [vmem:[#allocation5 + $0xe30] sm:$0xff]  ;;  %1459 = vmatpush.msrb.mxu2 %v431_v19 }
 0x1a6   :  { %v619_v21 = vld [vmem:[#allocation5 + $0x11f0] sm:$0xff]  ;;  %1478 = vmatpush.msrb.mxu3 %v499_v20 }
 0x1a7   :  { %v747_v25 = vld [vmem:[#allocation5 + $0x15f0] sm:$0xff]  ;;  %1484 = vmatpush.msra.mxu0 %v619_v21 }
 0x1a8   :  { %v367_v26 = vld [vmem:[#allocation5 + $0xa10] sm:$0xff]  ;;  %1524 = vmatpush.msra.mxu2 %v747_v25 }
 0x1a9   :  { %v495_v27 = vld [vmem:[#allocation5 + $0xe10] sm:$0xff]  ;;  %1439 = vmatpush.msrb.mxu1 %v367_v26 }
 0x1aa   :  { %v615_v29 = vld [vmem:[#allocation5 + $0x11d0] sm:$0xff]  ;;  %1479 = vmatpush.msrb.mxu3 %v495_v27  ;;  %1440 = vmatmul.f32.vlgmr.msrb.gmra.mxu1 %v2020_v56 }
 0x1ab   :  { %v683_v30 = vld [vmem:[#allocation5 + $0x13f0] sm:$0xff]  ;;  %1485 = vmatpush.msra.mxu0 %v615_v29  ;;  %1480 = vmatmul.f32.vlgmr.msrb.gmra.mxu3 %v2017_v51 }
 0x1ac   :  { %v743_v31 = vld [vmem:[#allocation5 + $0x15d0] sm:$0xff]  ;;  %1504 = vmatpush.msra.mxu1 %v683_v30 }
 0x1ad   :  { %v811_v32 = vld [vmem:[#allocation5 + $0x17f0] sm:$0xff]  ;;  %1525 = vmatpush.msra.mxu2 %v743_v31 }
 0x1ae   :  { %v611_v33 = vld [vmem:[#allocation5 + $0x11b0] sm:$0xff]  ;;  %1544 = vmatpush.msra.mxu3 %v811_v32 }
 0x1af   :  { %v679_v34 = vld [vmem:[#allocation5 + $0x13d0] sm:$0xff]  ;;  %1486 = vmatpush.msra.mxu0 %v611_v33 }
 0x1b0   :  { %v739_v35 = vld [vmem:[#allocation5 + $0x15b0] sm:$0xff]  ;;  %1505 = vmatpush.msra.mxu1 %v679_v34  ;;  %v108_v34 = vld [vmem:[#allocation5 + $0x1f8] sm:$0xff] }
 0x1b1   :  { %v807_v36 = vld [vmem:[#allocation5 + $0x17d0] sm:$0xff]  ;;  %1526 = vmatpush.msra.mxu2 %v739_v35  ;;  %v236_v35 = vld [vmem:[#allocation5 + $0x5f8] sm:$0xff] }
 0x1b2   :  { %v607_v37 = vld [vmem:[#allocation5 + $0x1190] sm:$0xff]  ;;  %1545 = vmatpush.msra.mxu3 %v807_v36 }
 0x1b3   :  { %v675_v38 = vld [vmem:[#allocation5 + $0x13b0] sm:$0xff]  ;;  %1487 = vmatpush.msra.mxu0 %v607_v37 }
 0x1b4   :  { %v735_v39 = vld [vmem:[#allocation5 + $0x1590] sm:$0xff]  ;;  %1506 = vmatpush.msra.mxu1 %v675_v38  ;;  %v2023_v38 = vld.sshfl [vmem:[#allocation1] sm:$0xff pattern:$0x73625140] }
 0x1b5   :  { %v803_v40 = vld [vmem:[#allocation5 + $0x17b0] sm:$0xff]  ;;  %1527 = vmatpush.msra.mxu2 %v735_v39 }
 0x1b6   :  { %v2011_v41 = vld.sshfl [vmem:[#allocation1 + $0x30] sm:$0xff pattern:$0x73625140]  ;;  %1546 = vmatpush.msra.mxu3 %v803_v40  ;;  %v104_v40 = vld [vmem:[#allocation5 + $0x1d8] sm:$0xff] }
 0x1b7   :  { %1460 = vmatmul.f32.vlgmr.msrb.gmra.mxu2 %v2011_v41  ;;  %v603_v42 = vld [vmem:[#allocation5 + $0x1170] sm:$0xff] }
 0x1b8   :  { %v671_v47 = vld [vmem:[#allocation5 + $0x1390] sm:$0xff]  ;;  %1488 = vmatpush.msra.mxu0 %v603_v42  ;;  %v172_v42 = vld [vmem:[#allocation5 + $0x3f8] sm:$0xff] }
 0x1b9   :  { %v731_v48 = vld [vmem:[#allocation5 + $0x1570] sm:$0xff]  ;;  %1507 = vmatpush.msra.mxu1 %v671_v47  ;;  %v232_v47 = vld [vmem:[#allocation5 + $0x5d8] sm:$0xff] }
 0x1ba   :  { %v799_v50 = vld [vmem:[#allocation5 + $0x1790] sm:$0xff]  ;;  %1528 = vmatpush.msra.mxu2 %v731_v48  ;;  %v300_v48 = vld [vmem:[#allocation5 + $0x7f8] sm:$0xff] }
 0x1bb   :  { %v599_v52 = vld [vmem:[#allocation5 + $0x1150] sm:$0xff]  ;;  %1547 = vmatpush.msra.mxu3 %v799_v50  ;;  %v2029_v50 = vld.sshfl [vmem:[#allocation1 + $0x8] sm:$0xff pattern:$0x73625140] }
 0x1bc   :  { %v667_v53 = vld [vmem:[#allocation5 + $0x1370] sm:$0xff]  ;;  %1489 = vmatpush.msra.mxu0 %v599_v52  ;;  %v2032_v52 = vld.sshfl [vmem:[#allocation1 + $0x18] sm:$0xff pattern:$0x73625140] }
 0x1bd   :  { %v727_v54 = vld [vmem:[#allocation5 + $0x1550] sm:$0xff]  ;;  %1508 = vmatpush.msra.mxu1 %v667_v53  ;;  %v100_v53 = vld [vmem:[#allocation5 + $0x1b8] sm:$0xff] }
 0x1be   :  { %v795_v55 = vld [vmem:[#allocation5 + $0x1770] sm:$0xff]  ;;  %1529 = vmatpush.msra.mxu2 %v727_v54  ;;  %v168_v54 = vld [vmem:[#allocation5 + $0x3d8] sm:$0xff] }
 0x1bf   :  { %v595_v57 = vld [vmem:[#allocation5 + $0x1130] sm:$0xff]  ;;  %1548 = vmatpush.msra.mxu3 %v795_v55  ;;  %v228_v55 = vld [vmem:[#allocation5 + $0x5b8] sm:$0xff] }
 0x1c0   :  { %v663_v58 = vld [vmem:[#allocation5 + $0x1350] sm:$0xff]  ;;  %1490 = vmatpush.msra.mxu0 %v595_v57  ;;  %v296_v57 = vld [vmem:[#allocation5 + $0x7d8] sm:$0xff] }
 0x1c1   :  { %v723_v59 = vld [vmem:[#allocation5 + $0x1530] sm:$0xff]  ;;  %1509 = vmatpush.msra.mxu1 %v663_v58  ;;  %v96_v58 = vld [vmem:[#allocation5 + $0x198] sm:$0xff] }
 0x1c2   :  { %v791_v60 = vld [vmem:[#allocation5 + $0x1750] sm:$0xff]  ;;  %1530 = vmatpush.msra.mxu2 %v723_v59  ;;  %v164_v59 = vld [vmem:[#allocation5 + $0x3b8] sm:$0xff] }
 0x1c3   :  { %v591_v61 = vld [vmem:[#allocation5 + $0x1110] sm:$0xff]  ;;  %1549 = vmatpush.msra.mxu3 %v791_v60  ;;  %v224_v60 = vld [vmem:[#allocation5 + $0x598] sm:$0xff] }
 0x1c4   :  { %v659_v62 = vld [vmem:[#allocation5 + $0x1330] sm:$0xff]  ;;  %1491 = vmatpush.msra.mxu0 %v591_v61  ;;  %v292_v61 = vld [vmem:[#allocation5 + $0x7b8] sm:$0xff] }
 0x1c5   :  { %v719_v63 = vld [vmem:[#allocation5 + $0x1510] sm:$0xff]  ;;  %1510 = vmatpush.msra.mxu1 %v659_v62  ;;  %v92_v62 = vld [vmem:[#allocation5 + $0x178] sm:$0xff] }
 0x1c6   :  { %v787_v0 = vld [vmem:[#allocation5 + $0x1730] sm:$0xff]  ;;  %1531 = vmatpush.msra.mxu2 %v719_v63  ;;  %v160_v63 = vld [vmem:[#allocation5 + $0x398] sm:$0xff] }
 0x1c7   :  { %v587_v1 = vld [vmem:[#allocation5 + $0x10f0] sm:$0xff]  ;;  %1550 = vmatpush.msra.mxu3 %v787_v0  ;;  %v220_v0 = vld [vmem:[#allocation5 + $0x578] sm:$0xff] }
 0x1c8   :  { %v655_v2 = vld [vmem:[#allocation5 + $0x1310] sm:$0xff]  ;;  %1492 = vmatpush.msra.mxu0 %v587_v1  ;;  %v288_v1 = vld [vmem:[#allocation5 + $0x798] sm:$0xff] }
 0x1c9   :  { %v715_v3 = vld [vmem:[#allocation5 + $0x14f0] sm:$0xff]  ;;  %1511 = vmatpush.msra.mxu1 %v655_v2  ;;  %v88_v2 = vld [vmem:[#allocation5 + $0x158] sm:$0xff] }
 0x1ca   :  { %v783_v4 = vld [vmem:[#allocation5 + $0x1710] sm:$0xff]  ;;  %1532 = vmatpush.msra.mxu2 %v715_v3  ;;  %v156_v3 = vld [vmem:[#allocation5 + $0x378] sm:$0xff] }
 0x1cb   :  { %v583_v5 = vld [vmem:[#allocation5 + $0x10d0] sm:$0xff]  ;;  %1551 = vmatpush.msra.mxu3 %v783_v4  ;;  %v216_v4 = vld [vmem:[#allocation5 + $0x558] sm:$0xff] }
 0x1cc   :  { %v651_v6 = vld [vmem:[#allocation5 + $0x12f0] sm:$0xff]  ;;  %1493 = vmatpush.msra.mxu0 %v583_v5  ;;  %v284_v5 = vld [vmem:[#allocation5 + $0x778] sm:$0xff] }
 0x1cd   :  { %v711_v7 = vld [vmem:[#allocation5 + $0x14d0] sm:$0xff]  ;;  %1512 = vmatpush.msra.mxu1 %v651_v6  ;;  %v84_v6 = vld [vmem:[#allocation5 + $0x138] sm:$0xff] }
 0x1ce   :  { %v779_v8 = vld [vmem:[#allocation5 + $0x16f0] sm:$0xff]  ;;  %1533 = vmatpush.msra.mxu2 %v711_v7  ;;  %v152_v7 = vld [vmem:[#allocation5 + $0x358] sm:$0xff] }
 0x1cf   :  { %v579_v17 = vld [vmem:[#allocation5 + $0x10b0] sm:$0xff]  ;;  %1552 = vmatpush.msra.mxu3 %v779_v8  ;;  %v212_v8 = vld [vmem:[#allocation5 + $0x538] sm:$0xff] }
 0x1d0   :  { %v647_v9 = vld [vmem:[#allocation5 + $0x12d0] sm:$0xff]  ;;  %1494 = vmatpush.msra.mxu0 %v579_v17  ;;  %v280_v17 = vld [vmem:[#allocation5 + $0x758] sm:$0xff] }
 0x1d1   :  { %v707_v10 = vld [vmem:[#allocation5 + $0x14b0] sm:$0xff]  ;;  %1513 = vmatpush.msra.mxu1 %v647_v9  ;;  %v80_v9 = vld [vmem:[#allocation5 + $0x118] sm:$0xff] }
 0x1d2   :  { %v775_v11 = vld [vmem:[#allocation5 + $0x16d0] sm:$0xff]  ;;  %1534 = vmatpush.msra.mxu2 %v707_v10  ;;  %v148_v10 = vld [vmem:[#allocation5 + $0x338] sm:$0xff] }
 0x1d3   :  { %v575_v22 = vld [vmem:[#allocation5 + $0x1090] sm:$0xff]  ;;  %1553 = vmatpush.msra.mxu3 %v775_v11  ;;  %v208_v11 = vld [vmem:[#allocation5 + $0x518] sm:$0xff] }
 0x1d4   :  { %v643_v23 = vld [vmem:[#allocation5 + $0x12b0] sm:$0xff]  ;;  %1495 = vmatpush.msra.mxu0 %v575_v22  ;;  %v276_v22 = vld [vmem:[#allocation5 + $0x738] sm:$0xff] }
 0x1d5   :  { %v703_v13 = vld [vmem:[#allocation5 + $0x1490] sm:$0xff]  ;;  %1514 = vmatpush.msra.mxu1 %v643_v23  ;;  %v76_v23 = vld [vmem:[#allocation5 + $0xf8] sm:$0xff] }
 0x1d6   :  { %v771_v14 = vld [vmem:[#allocation5 + $0x16b0] sm:$0xff]  ;;  %1535 = vmatpush.msra.mxu2 %v703_v13  ;;  %v144_v13 = vld [vmem:[#allocation5 + $0x318] sm:$0xff] }
 0x1d7   :  { %v571_v12 = vld [vmem:[#allocation5 + $0x1070] sm:$0xff]  ;;  %1554 = vmatpush.msra.mxu3 %v771_v14  ;;  %v204_v14 = vld [vmem:[#allocation5 + $0x4f8] sm:$0xff] }
 0x1d8   :  { %v639_v15 = vld [vmem:[#allocation5 + $0x1290] sm:$0xff]  ;;  %1496 = vmatpush.msra.mxu0 %v571_v12  ;;  %v272_v12 = vld [vmem:[#allocation5 + $0x718] sm:$0xff] }
 0x1d9   :  { %v699_v16 = vld [vmem:[#allocation5 + $0x1470] sm:$0xff]  ;;  %1515 = vmatpush.msra.mxu1 %v639_v15  ;;  %v72_v15 = vld [vmem:[#allocation5 + $0xd8] sm:$0xff] }
 0x1da   :  { %v767_v18 = vld [vmem:[#allocation5 + $0x1690] sm:$0xff]  ;;  %1536 = vmatpush.msra.mxu2 %v699_v16  ;;  %v140_v16 = vld [vmem:[#allocation5 + $0x2f8] sm:$0xff] }
 0x1db   :  { %v567_v28 = vld [vmem:[#allocation5 + $0x1050] sm:$0xff]  ;;  %1555 = vmatpush.msra.mxu3 %v767_v18  ;;  %v200_v18 = vld [vmem:[#allocation5 + $0x4d8] sm:$0xff] }
 0x1dc   :  { %v635_v19 = vld [vmem:[#allocation5 + $0x1270] sm:$0xff]  ;;  %1497 = vmatpush.msra.mxu0 %v567_v28  ;;  %v268_v28 = vld [vmem:[#allocation5 + $0x6f8] sm:$0xff] }
 0x1dd   :  { %v695_v20 = vld [vmem:[#allocation5 + $0x1450] sm:$0xff]  ;;  %1516 = vmatpush.msra.mxu1 %v635_v19  ;;  %v68_v19 = vld [vmem:[#allocation5 + $0xb8] sm:$0xff] }
 0x1de   :  { %v763_v21 = vld [vmem:[#allocation5 + $0x1670] sm:$0xff]  ;;  %1537 = vmatpush.msra.mxu2 %v695_v20  ;;  %v136_v20 = vld [vmem:[#allocation5 + $0x2d8] sm:$0xff] }
 0x1df   :  { %v563_v25 = vld [vmem:[#allocation5 + $0x1030] sm:$0xff]  ;;  %1556 = vmatpush.msra.mxu3 %v763_v21  ;;  %v196_v21 = vld [vmem:[#allocation5 + $0x4b8] sm:$0xff] }
 0x1e0   :  { %v631_v26 = vld [vmem:[#allocation5 + $0x1250] sm:$0xff]  ;;  %1498 = vmatpush.msra.mxu0 %v563_v25  ;;  %v264_v25 = vld [vmem:[#allocation5 + $0x6d8] sm:$0xff] }
 0x1e1   :  { %v691_v27 = vld [vmem:[#allocation5 + $0x1430] sm:$0xff]  ;;  %1517 = vmatpush.msra.mxu1 %v631_v26  ;;  %v64_v26 = vld [vmem:[#allocation5 + $0x98] sm:$0xff] }
 0x1e2   :  { %v759_v29 = vld [vmem:[#allocation5 + $0x1650] sm:$0xff]  ;;  %1538 = vmatpush.msra.mxu2 %v691_v27  ;;  %v132_v27 = vld [vmem:[#allocation5 + $0x2b8] sm:$0xff] }
 0x1e3   :  { %v559_v30 = vld [vmem:[#allocation5 + $0x1010] sm:$0xff]  ;;  %1557 = vmatpush.msra.mxu3 %v759_v29  ;;  %v192_v29 = vld [vmem:[#allocation5 + $0x498] sm:$0xff] }
 0x1e4   :  { %v627_v31 = vld [vmem:[#allocation5 + $0x1230] sm:$0xff]  ;;  %1499 = vmatpush.msra.mxu0 %v559_v30  ;;  %v260_v30 = vld [vmem:[#allocation5 + $0x6b8] sm:$0xff] }
 0x1e5   :  { %v687_v32 = vld [vmem:[#allocation5 + $0x1410] sm:$0xff]  ;;  %1518 = vmatpush.msra.mxu1 %v627_v31  ;;  %1500 = vmatmul.f32.vlgmr.msra.gmra.mxu0 %v2023_v38  ;;  %v60_v31 = vld [vmem:[#allocation5 + $0x78] sm:$0xff] }
 0x1e6   :  { %v755_v33 = vld [vmem:[#allocation5 + $0x1630] sm:$0xff]  ;;  %1539 = vmatpush.msra.mxu2 %v687_v32  ;;  %1564 = vmatpush.msrb.mxu0 %v108_v34  ;;  %v128_v32 = vld [vmem:[#allocation5 + $0x298] sm:$0xff] }
 0x1e7   :  { %1558 = vmatpush.msra.mxu3 %v755_v33  ;;  %v623_v36 = vld [vmem:[#allocation5 + $0x1210] sm:$0xff]  ;;  %v188_v33 = vld [vmem:[#allocation5 + $0x478] sm:$0xff] }
 0x1e8   :  { %v751_v37 = vld [vmem:[#allocation5 + $0x1610] sm:$0xff]  ;;  %1604 = vmatpush.msrb.mxu2 %v236_v35  ;;  %1519 = vmatpush.msra.mxu1 %v623_v36  ;;  %v256_v34 = vld [vmem:[#allocation5 + $0x698] sm:$0xff] }
 0x1e9   :  { %v2026_v39 = vld.sshfl [vmem:[#allocation1 + $0x10] sm:$0xff pattern:$0x73625140]  ;;  %1559 = vmatpush.msra.mxu3 %v751_v37  ;;  %1520 = vmatmul.f32.vlgmr.msra.gmra.mxu1 %v2029_v50  ;;  %v56_v35 = vld [vmem:[#allocation5 + $0x58] sm:$0xff] }
 0x1ea   :  { %1540 = vmatmul.f32.vlgmr.msra.gmra.mxu2 %v2026_v39  ;;  %1560 = vmatmul.f32.vlgmr.msra.gmra.mxu3 %v2032_v52  ;;  %v124_v36 = vld [vmem:[#allocation5 + $0x278] sm:$0xff] }
 0x1eb   :  { %1565 = vmatpush.msrb.mxu0 %v104_v40  ;;  %1584 = vmatpush.msrb.mxu1 %v172_v42  ;;  %v184_v37 = vld [vmem:[#allocation5 + $0x458] sm:$0xff] }
 0x1ec   :  { %1605 = vmatpush.msrb.mxu2 %v232_v47  ;;  %1624 = vmatpush.msrb.mxu3 %v300_v48  ;;  %v252_v40 = vld [vmem:[#allocation5 + $0x678] sm:$0xff] }
 0x1ed   :  { %1566 = vmatpush.msrb.mxu0 %v100_v53  ;;  %1585 = vmatpush.msrb.mxu1 %v168_v54  ;;  %v52_v42 = vld [vmem:[#allocation5 + $0x38] sm:$0xff] }
 0x1ee   :  { %1606 = vmatpush.msrb.mxu2 %v228_v55  ;;  %1625 = vmatpush.msrb.mxu3 %v296_v57  ;;  %v120_v47 = vld [vmem:[#allocation5 + $0x258] sm:$0xff] }
 0x1ef   :  { %1567 = vmatpush.msrb.mxu0 %v96_v58  ;;  %1586 = vmatpush.msrb.mxu1 %v164_v59  ;;  %v180_v48 = vld [vmem:[#allocation5 + $0x438] sm:$0xff] }
 0x1f0   :  { %1607 = vmatpush.msrb.mxu2 %v224_v60  ;;  %1626 = vmatpush.msrb.mxu3 %v292_v61  ;;  %v248_v53 = vld [vmem:[#allocation5 + $0x658] sm:$0xff] }
 0x1f1   :  { %1568 = vmatpush.msrb.mxu0 %v92_v62  ;;  %1587 = vmatpush.msrb.mxu1 %v160_v63  ;;  %v48_v54 = vld [vmem:[#allocation5 + $0x18] sm:$0xff] }
 0x1f2   :  { %1608 = vmatpush.msrb.mxu2 %v220_v0  ;;  %1627 = vmatpush.msrb.mxu3 %v288_v1  ;;  %v116_v55 = vld [vmem:[#allocation5 + $0x238] sm:$0xff] }
 0x1f3   :  { %1569 = vmatpush.msrb.mxu0 %v88_v2  ;;  %1588 = vmatpush.msrb.mxu1 %v156_v3  ;;  %v176_v57 = vld [vmem:[#allocation5 + $0x418] sm:$0xff] }
 0x1f4   :  { %1609 = vmatpush.msrb.mxu2 %v216_v4  ;;  %1628 = vmatpush.msrb.mxu3 %v284_v5  ;;  %v244_v58 = vld [vmem:[#allocation5 + $0x638] sm:$0xff] }
 0x1f5   :  { %1570 = vmatpush.msrb.mxu0 %v84_v6  ;;  %1589 = vmatpush.msrb.mxu1 %v152_v7  ;;  %v364_v59 = vld [vmem:[#allocation5 + $0x9f8] sm:$0xff] }
 0x1f6   :  { %1610 = vmatpush.msrb.mxu2 %v212_v8  ;;  %1629 = vmatpush.msrb.mxu3 %v280_v17  ;;  %v492_v60 = vld [vmem:[#allocation5 + $0xdf8] sm:$0xff] }
 0x1f7   :  { %1571 = vmatpush.msrb.mxu0 %v80_v9  ;;  %1590 = vmatpush.msrb.mxu1 %v148_v10  ;;  %v112_v61 = vld [vmem:[#allocation5 + $0x218] sm:$0xff] }
 0x1f8   :  { %1611 = vmatpush.msrb.mxu2 %v208_v11  ;;  %1630 = vmatpush.msrb.mxu3 %v276_v22  ;;  %v240_v62 = vld [vmem:[#allocation5 + $0x618] sm:$0xff] }
 0x1f9   :  { %1572 = vmatpush.msrb.mxu0 %v76_v23  ;;  %1591 = vmatpush.msrb.mxu1 %v144_v13  ;;  %v360_v63 = vld [vmem:[#allocation5 + $0x9d8] sm:$0xff] }
 0x1fa   :  { %1612 = vmatpush.msrb.mxu2 %v204_v14  ;;  %1631 = vmatpush.msrb.mxu3 %v272_v12  ;;  %v428_v0 = vld [vmem:[#allocation5 + $0xbf8] sm:$0xff] }
 0x1fb   :  { %1573 = vmatpush.msrb.mxu0 %v72_v15  ;;  %1592 = vmatpush.msrb.mxu1 %v140_v16  ;;  %v488_v1 = vld [vmem:[#allocation5 + $0xdd8] sm:$0xff] }
 0x1fc   :  { %1613 = vmatpush.msrb.mxu2 %v200_v18  ;;  %1632 = vmatpush.msrb.mxu3 %v268_v28  ;;  %v556_v2 = vld [vmem:[#allocation5 + $0xff8] sm:$0xff] }
 0x1fd   :  { %1574 = vmatpush.msrb.mxu0 %v68_v19  ;;  %1593 = vmatpush.msrb.mxu1 %v136_v20  ;;  %v356_v3 = vld [vmem:[#allocation5 + $0x9b8] sm:$0xff] }
 0x1fe   :  { %1614 = vmatpush.msrb.mxu2 %v196_v21  ;;  %1633 = vmatpush.msrb.mxu3 %v264_v25  ;;  %v424_v4 = vld [vmem:[#allocation5 + $0xbd8] sm:$0xff] }
 0x1ff   :  { %1575 = vmatpush.msrb.mxu0 %v64_v26  ;;  %1594 = vmatpush.msrb.mxu1 %v132_v27  ;;  %v484_v5 = vld [vmem:[#allocation5 + $0xdb8] sm:$0xff] }
 0x200   :  { %1615 = vmatpush.msrb.mxu2 %v192_v29  ;;  %1634 = vmatpush.msrb.mxu3 %v260_v30  ;;  %v552_v6 = vld [vmem:[#allocation5 + $0xfd8] sm:$0xff] }
 0x201   :  { %1576 = vmatpush.msrb.mxu0 %v60_v31  ;;  %1595 = vmatpush.msrb.mxu1 %v128_v32  ;;  %v352_v7 = vld [vmem:[#allocation5 + $0x998] sm:$0xff] }
 0x202   :  { %1616 = vmatpush.msrb.mxu2 %v188_v33  ;;  %1635 = vmatpush.msrb.mxu3 %v256_v34  ;;  %v420_v8 = vld [vmem:[#allocation5 + $0xbb8] sm:$0xff] }
 0x203   :  { %1577 = vmatpush.msrb.mxu0 %v56_v35  ;;  %1596 = vmatpush.msrb.mxu1 %v124_v36  ;;  %v480_v17 = vld [vmem:[#allocation5 + $0xd98] sm:$0xff] }
 0x204   :  { %1617 = vmatpush.msrb.mxu2 %v184_v37  ;;  %1636 = vmatpush.msrb.mxu3 %v252_v40  ;;  %v548_v9 = vld [vmem:[#allocation5 + $0xfb8] sm:$0xff] }
 0x205   :  { %1578 = vmatpush.msrb.mxu0 %v52_v42  ;;  %1597 = vmatpush.msrb.mxu1 %v120_v47  ;;  %v348_v10 = vld [vmem:[#allocation5 + $0x978] sm:$0xff] }
 0x206   :  { %1618 = vmatpush.msrb.mxu2 %v180_v48  ;;  %1637 = vmatpush.msrb.mxu3 %v248_v53  ;;  %v416_v11 = vld [vmem:[#allocation5 + $0xb98] sm:$0xff] }
 0x207   :  { %1579 = vmatpush.msrb.mxu0 %v48_v54  ;;  %1598 = vmatpush.msrb.mxu1 %v116_v55  ;;  %v476_v22 = vld [vmem:[#allocation5 + $0xd78] sm:$0xff] }
 0x208   :  { %1619 = vmatpush.msrb.mxu2 %v176_v57  ;;  %1638 = vmatpush.msrb.mxu3 %v244_v58  ;;  %v544_v23 = vld [vmem:[#allocation5 + $0xf98] sm:$0xff] }
 0x209   :  { %1644 = vmatpush.msra.mxu0 %v364_v59  ;;  %1599 = vmatpush.msrb.mxu1 %v112_v61  ;;  %v344_v13 = vld [vmem:[#allocation5 + $0x958] sm:$0xff] }
 0x20a   :  { %1684 = vmatpush.msra.mxu2 %v492_v60  ;;  %1639 = vmatpush.msrb.mxu3 %v240_v62  ;;  %v412_v14 = vld [vmem:[#allocation5 + $0xb78] sm:$0xff] }
 0x20b   :  { %1645 = vmatpush.msra.mxu0 %v360_v63  ;;  %1664 = vmatpush.msra.mxu1 %v428_v0  ;;  %v472_v12 = vld [vmem:[#allocation5 + $0xd58] sm:$0xff] }
 0x20c   :  { %1685 = vmatpush.msra.mxu2 %v488_v1  ;;  %1704 = vmatpush.msra.mxu3 %v556_v2  ;;  %v540_v15 = vld [vmem:[#allocation5 + $0xf78] sm:$0xff] }
 0x20d   :  { %1646 = vmatpush.msra.mxu0 %v356_v3  ;;  %1665 = vmatpush.msra.mxu1 %v424_v4  ;;  %v340_v16 = vld [vmem:[#allocation5 + $0x938] sm:$0xff] }
 0x20e   :  { %1686 = vmatpush.msra.mxu2 %v484_v5  ;;  %1705 = vmatpush.msra.mxu3 %v552_v6  ;;  %v408_v18 = vld [vmem:[#allocation5 + $0xb58] sm:$0xff] }
 0x20f   :  { %1647 = vmatpush.msra.mxu0 %v352_v7  ;;  %1666 = vmatpush.msra.mxu1 %v420_v8  ;;  %v468_v28 = vld [vmem:[#allocation5 + $0xd38] sm:$0xff] }
 0x210   :  { %1687 = vmatpush.msra.mxu2 %v480_v17  ;;  %1706 = vmatpush.msra.mxu3 %v548_v9  ;;  %v536_v19 = vld [vmem:[#allocation5 + $0xf58] sm:$0xff] }
 0x211   :  { %1648 = vmatpush.msra.mxu0 %v348_v10  ;;  %1667 = vmatpush.msra.mxu1 %v416_v11  ;;  %v336_v20 = vld [vmem:[#allocation5 + $0x918] sm:$0xff] }
 0x212   :  { %1688 = vmatpush.msra.mxu2 %v476_v22  ;;  %1707 = vmatpush.msra.mxu3 %v544_v23  ;;  %v404_v21 = vld [vmem:[#allocation5 + $0xb38] sm:$0xff] }
 0x213   :  { %1649 = vmatpush.msra.mxu0 %v344_v13  ;;  %1668 = vmatpush.msra.mxu1 %v412_v14  ;;  %v464_v25 = vld [vmem:[#allocation5 + $0xd18] sm:$0xff] }
 0x214   :  { %1689 = vmatpush.msra.mxu2 %v472_v12  ;;  %1708 = vmatpush.msra.mxu3 %v540_v15  ;;  %v532_v26 = vld [vmem:[#allocation5 + $0xf38] sm:$0xff] }
 0x215   :  { %1650 = vmatpush.msra.mxu0 %v340_v16  ;;  %1669 = vmatpush.msra.mxu1 %v408_v18  ;;  %v332_v27 = vld [vmem:[#allocation5 + $0x8f8] sm:$0xff] }
 0x216   :  { %1690 = vmatpush.msra.mxu2 %v468_v28  ;;  %1709 = vmatpush.msra.mxu3 %v536_v19  ;;  %v400_v29 = vld [vmem:[#allocation5 + $0xb18] sm:$0xff] }
 0x217   :  { %1651 = vmatpush.msra.mxu0 %v336_v20  ;;  %1670 = vmatpush.msra.mxu1 %v404_v21  ;;  %v460_v30 = vld [vmem:[#allocation5 + $0xcf8] sm:$0xff] }
 0x218   :  { %v528_v31 = vld [vmem:[#allocation5 + $0xf18] sm:$0xff]  ;;  %1691 = vmatpush.msra.mxu2 %v464_v25  ;;  %1710 = vmatpush.msra.mxu3 %v532_v26 }
 0x219   :  { %v328_v32 = vld [vmem:[#allocation5 + $0x8d8] sm:$0xff]  ;;  %1652 = vmatpush.msra.mxu0 %v332_v27  ;;  %1671 = vmatpush.msra.mxu1 %v400_v29 }
 0x21a   :  { %v396_v33 = vld [vmem:[#allocation5 + $0xaf8] sm:$0xff]  ;;  %1692 = vmatpush.msra.mxu2 %v460_v30  ;;  %1711 = vmatpush.msra.mxu3 %v528_v31 }
 0x21b   :  { %v456_v34 = vld [vmem:[#allocation5 + $0xcd8] sm:$0xff]  ;;  %1653 = vmatpush.msra.mxu0 %v328_v32  ;;  %1672 = vmatpush.msra.mxu1 %v396_v33 }
 0x21c   :  { %v524_v35 = vld [vmem:[#allocation5 + $0xef8] sm:$0xff]  ;;  %1693 = vmatpush.msra.mxu2 %v456_v34  ;;  %1580 = vmatmul.f32.vlgmr.msrb.gmra.mxu0 %v1956_v44 }
 0x21d   :  { %v324_v36 = vld [vmem:[#allocation5 + $0x8b8] sm:$0xff]  ;;  %1712 = vmatpush.msra.mxu3 %v524_v35  ;;  %1620 = vmatmul.f32.vlgmr.msrb.gmra.mxu2 %v1954_v43 }
 0x21e   :  { %v392_v37 = vld [vmem:[#allocation5 + $0xad8] sm:$0xff]  ;;  %1654 = vmatpush.msra.mxu0 %v324_v36  ;;  %1640 = vmatmul.f32.vlgmr.msrb.gmra.mxu3 %v1958_v45 }
 0x21f   :  { %v452_v40 = vld [vmem:[#allocation5 + $0xcb8] sm:$0xff]  ;;  %1673 = vmatpush.msra.mxu1 %v392_v37 }
 0x220   :  { %v520_v42 = vld [vmem:[#allocation5 + $0xed8] sm:$0xff]  ;;  %1694 = vmatpush.msra.mxu2 %v452_v40  ;;  %1600 = vmatmul.f32.vlgmr.msrb.gmra.mxu1 %v1960_v46 }
 0x221   :  { %v320_v47 = vld [vmem:[#allocation5 + $0x898] sm:$0xff]  ;;  %1713 = vmatpush.msra.mxu3 %v520_v42 }
 0x222   :  { %v388_v48 = vld [vmem:[#allocation5 + $0xab8] sm:$0xff]  ;;  %1655 = vmatpush.msra.mxu0 %v320_v47 }
 0x223   :  { %v448_v53 = vld [vmem:[#allocation5 + $0xc98] sm:$0xff]  ;;  %1674 = vmatpush.msra.mxu1 %v388_v48 }
 0x224   :  { %v516_v54 = vld [vmem:[#allocation5 + $0xeb8] sm:$0xff]  ;;  %1695 = vmatpush.msra.mxu2 %v448_v53 }
 0x225   :  { %v316_v55 = vld [vmem:[#allocation5 + $0x878] sm:$0xff]  ;;  %1714 = vmatpush.msra.mxu3 %v516_v54 }
 0x226   :  { %v384_v57 = vld [vmem:[#allocation5 + $0xa98] sm:$0xff]  ;;  %1656 = vmatpush.msra.mxu0 %v316_v55 }
 0x227   :  { %v444_v58 = vld [vmem:[#allocation5 + $0xc78] sm:$0xff]  ;;  %1675 = vmatpush.msra.mxu1 %v384_v57 }
 0x228   :  { %v512_v59 = vld [vmem:[#allocation5 + $0xe98] sm:$0xff]  ;;  %1696 = vmatpush.msra.mxu2 %v444_v58 }
 0x229   :  { %v312_v60 = vld [vmem:[#allocation5 + $0x858] sm:$0xff]  ;;  %1715 = vmatpush.msra.mxu3 %v512_v59 }
 0x22a   :  { %v380_v61 = vld [vmem:[#allocation5 + $0xa78] sm:$0xff]  ;;  %1657 = vmatpush.msra.mxu0 %v312_v60 }
 0x22b   :  { %v440_v62 = vld [vmem:[#allocation5 + $0xc58] sm:$0xff]  ;;  %1676 = vmatpush.msra.mxu1 %v380_v61 }
 0x22c   :  { %v508_v63 = vld [vmem:[#allocation5 + $0xe78] sm:$0xff]  ;;  %1697 = vmatpush.msra.mxu2 %v440_v62 }
 0x22d   :  { %v308_v0 = vld [vmem:[#allocation5 + $0x838] sm:$0xff]  ;;  %1716 = vmatpush.msra.mxu3 %v508_v63 }
 0x22e   :  { %v376_v1 = vld [vmem:[#allocation5 + $0xa58] sm:$0xff]  ;;  %1658 = vmatpush.msra.mxu0 %v308_v0 }
 0x22f   :  { %v436_v2 = vld [vmem:[#allocation5 + $0xc38] sm:$0xff]  ;;  %1677 = vmatpush.msra.mxu1 %v376_v1 }
 0x230   :  { %v504_v3 = vld [vmem:[#allocation5 + $0xe58] sm:$0xff]  ;;  %1698 = vmatpush.msra.mxu2 %v436_v2 }
 0x231   :  { %v304_v4 = vld [vmem:[#allocation5 + $0x818] sm:$0xff]  ;;  %1717 = vmatpush.msra.mxu3 %v504_v3 }
 0x232   :  { %v372_v5 = vld [vmem:[#allocation5 + $0xa38] sm:$0xff]  ;;  %1659 = vmatpush.msra.mxu0 %v304_v4 }
 0x233   :  { %v432_v6 = vld [vmem:[#allocation5 + $0xc18] sm:$0xff]  ;;  %1678 = vmatpush.msra.mxu1 %v372_v5  ;;  %1660 = vmatmul.f32.vlgmr.msra.gmra.mxu0 %v2014_v49 }
 0x234   :  { %v500_v7 = vld [vmem:[#allocation5 + $0xe38] sm:$0xff]  ;;  %1699 = vmatpush.msra.mxu2 %v432_v6 }
 0x235   :  { %v620_v8 = vld [vmem:[#allocation5 + $0x11f8] sm:$0xff]  ;;  %1718 = vmatpush.msra.mxu3 %v500_v7  ;;  %1700 = vmatmul.f32.vlgmr.msra.gmra.mxu2 %v2011_v41 }
 0x236   :  { %v748_v17 = vld [vmem:[#allocation5 + $0x15f8] sm:$0xff]  ;;  %1724 = vmatpush.msrb.mxu0 %v620_v8 }
 0x237   :  { %v368_v9 = vld [vmem:[#allocation5 + $0xa18] sm:$0xff]  ;;  %1764 = vmatpush.msrb.mxu2 %v748_v17 }
 0x238   :  { %v496_v10 = vld [vmem:[#allocation5 + $0xe18] sm:$0xff]  ;;  %1679 = vmatpush.msra.mxu1 %v368_v9 }
 0x239   :  { %v616_v11 = vld [vmem:[#allocation5 + $0x11d8] sm:$0xff]  ;;  %1719 = vmatpush.msra.mxu3 %v496_v10  ;;  %1680 = vmatmul.f32.vlgmr.msra.gmra.mxu1 %v2020_v56 }
 0x23a   :  { %v684_v22 = vld [vmem:[#allocation5 + $0x13f8] sm:$0xff]  ;;  %1725 = vmatpush.msrb.mxu0 %v616_v11  ;;  %1720 = vmatmul.f32.vlgmr.msra.gmra.mxu3 %v2017_v51 }
 0x23b   :  { %v744_v23 = vld [vmem:[#allocation5 + $0x15d8] sm:$0xff]  ;;  %1744 = vmatpush.msrb.mxu1 %v684_v22 }
 0x23c   :  { %v812_v13 = vld [vmem:[#allocation5 + $0x17f8] sm:$0xff]  ;;  %1765 = vmatpush.msrb.mxu2 %v744_v23 }
 0x23d   :  { %v612_v43 = vld [vmem:[#allocation5 + $0x11b8] sm:$0xff]  ;;  %1784 = vmatpush.msrb.mxu3 %v812_v13  ;;  %v1121_v13 = vpop.f32.mrf.mxu1 }
 0x23e   :  { %v680_v14 = vld [vmem:[#allocation5 + $0x13d8] sm:$0xff]  ;;  %1726 = vmatpush.msrb.mxu0 %v612_v43  ;;  %v1101_v43 = vpop.f32.mrf.mxu0 }
 0x23f   :  { %v740_v12 = vld [vmem:[#allocation5 + $0x15b8] sm:$0xff]  ;;  %1745 = vmatpush.msrb.mxu1 %v680_v14  ;;  %v1141_v14 = vpop.f32.mrf.mxu2 }
 0x240   :  { %v808_v15 = vld [vmem:[#allocation5 + $0x17d8] sm:$0xff]  ;;  %1766 = vmatpush.msrb.mxu2 %v740_v12  ;;  %v1161_v12 = vpop.f32.mrf.mxu3 }
 0x241   :  { %v608_v44 = vld [vmem:[#allocation5 + $0x1198] sm:$0xff]  ;;  %1785 = vmatpush.msrb.mxu3 %v808_v15 }
 0x242   :  { %v676_v45 = vld [vmem:[#allocation5 + $0x13b8] sm:$0xff]  ;;  %1727 = vmatpush.msrb.mxu0 %v608_v44 }
 0x243   :  { %v736_v16 = vld [vmem:[#allocation5 + $0x1598] sm:$0xff]  ;;  %1746 = vmatpush.msrb.mxu1 %v676_v45 }
 0x244   :  { %v804_v18 = vld [vmem:[#allocation5 + $0x17b8] sm:$0xff]  ;;  %1767 = vmatpush.msrb.mxu2 %v736_v16 }
 0x245   :  { %v604_v46 = vld [vmem:[#allocation5 + $0x1178] sm:$0xff]  ;;  %1786 = vmatpush.msrb.mxu3 %v804_v18  ;;  %v1201_v15 = vpop.f32.mrf.mxu1 }
 0x246   :  { %v672_v28 = vld [vmem:[#allocation5 + $0x1398] sm:$0xff]  ;;  %1728 = vmatpush.msrb.mxu0 %v604_v46  ;;  %v1181_v44 = vpop.f32.mrf.mxu0 }
 0x247   :  { %v732_v19 = vld [vmem:[#allocation5 + $0x1578] sm:$0xff]  ;;  %1747 = vmatpush.msrb.mxu1 %v672_v28  ;;  %v1221_v45 = vpop.f32.mrf.mxu2 }
 0x248   :  { %v800_v20 = vld [vmem:[#allocation5 + $0x1798] sm:$0xff]  ;;  %1768 = vmatpush.msrb.mxu2 %v732_v19  ;;  %v1241_v16 = vpop.f32.mrf.mxu3 }
 0x249   :  { %v600_v21 = vld [vmem:[#allocation5 + $0x1158] sm:$0xff]  ;;  %1787 = vmatpush.msrb.mxu3 %v800_v20 }
 0x24a   :  { %v668_v25 = vld [vmem:[#allocation5 + $0x1378] sm:$0xff]  ;;  %1729 = vmatpush.msrb.mxu0 %v600_v21 }
 0x24b   :  { %v728_v26 = vld [vmem:[#allocation5 + $0x1558] sm:$0xff]  ;;  %1748 = vmatpush.msrb.mxu1 %v668_v25 }
 0x24c   :  { %v796_v27 = vld [vmem:[#allocation5 + $0x1778] sm:$0xff]  ;;  %1769 = vmatpush.msrb.mxu2 %v728_v26 }
 0x24d   :  { %v596_v41 = vld [vmem:[#allocation5 + $0x1138] sm:$0xff]  ;;  %1788 = vmatpush.msrb.mxu3 %v796_v27  ;;  %v1281_v18 = vpop.f32.mrf.mxu1 }
 0x24e   :  { %v664_v29 = vld [vmem:[#allocation5 + $0x1358] sm:$0xff]  ;;  %1730 = vmatpush.msrb.mxu0 %v596_v41  ;;  %v1261_v46 = vpop.f32.mrf.mxu0 }
 0x24f   :  { %v724_v30 = vld [vmem:[#allocation5 + $0x1538] sm:$0xff]  ;;  %1749 = vmatpush.msrb.mxu1 %v664_v29  ;;  %v1301_v28 = vpop.f32.mrf.mxu2 }
 0x250   :  { %v792_v31 = vld [vmem:[#allocation5 + $0x1758] sm:$0xff]  ;;  %1770 = vmatpush.msrb.mxu2 %v724_v30  ;;  %v1122_v30 = vadd.f32 %v1121_v13, %v1101_v43 }
 0x251   :  { %v592_v49 = vld [vmem:[#allocation5 + $0x1118] sm:$0xff]  ;;  %1789 = vmatpush.msrb.mxu3 %v792_v31 }
 0x252   :  { %v660_v51 = vld [vmem:[#allocation5 + $0x1338] sm:$0xff]  ;;  %1731 = vmatpush.msrb.mxu0 %v592_v49 }
 0x253   :  { %v720_v32 = vld [vmem:[#allocation5 + $0x1518] sm:$0xff]  ;;  %1750 = vmatpush.msrb.mxu1 %v660_v51 }
 0x254   :  { %v788_v33 = vld [vmem:[#allocation5 + $0x1738] sm:$0xff]  ;;  %1771 = vmatpush.msrb.mxu2 %v720_v32  ;;  %v1142_v32 = vadd.f32 %v1141_v14, %v1122_v30 }
 0x255   :  { %v588_v34 = vld [vmem:[#allocation5 + $0x10f8] sm:$0xff]  ;;  %1790 = vmatpush.msrb.mxu3 %v788_v33  ;;  %v1361_v19 = vpop.f32.mrf.mxu1 }
 0x256   :  { %v656_v35 = vld [vmem:[#allocation5 + $0x1318] sm:$0xff]  ;;  %1732 = vmatpush.msrb.mxu0 %v588_v34 }
 0x257   :  { %v716_v56 = vld [vmem:[#allocation5 + $0x14f8] sm:$0xff]  ;;  %1751 = vmatpush.msrb.mxu1 %v656_v35  ;;  %v1381_v20 = vpop.f32.mrf.mxu2 }
 0x258   :  { %v784_v36 = vld [vmem:[#allocation5 + $0x1718] sm:$0xff]  ;;  %1772 = vmatpush.msrb.mxu2 %v716_v56 }
 0x259   :  { %v584_v37 = vld [vmem:[#allocation5 + $0x10d8] sm:$0xff]  ;;  %1791 = vmatpush.msrb.mxu3 %v784_v36  ;;  %v1162_v36 = vadd.f32 %v1161_v12, %v1142_v32 }
 0x25a   :  { %v652_v40 = vld [vmem:[#allocation5 + $0x12f8] sm:$0xff]  ;;  %1733 = vmatpush.msrb.mxu0 %v584_v37 }
 0x25b   :  { %v712_v42 = vld [vmem:[#allocation5 + $0x14d8] sm:$0xff]  ;;  %1752 = vmatpush.msrb.mxu1 %v652_v40 }
 0x25c   :  { %v780_v47 = vld [vmem:[#allocation5 + $0x16f8] sm:$0xff]  ;;  %1773 = vmatpush.msrb.mxu2 %v712_v42 }
 0x25d   :  { %v580_v48 = vld [vmem:[#allocation5 + $0x10b8] sm:$0xff]  ;;  %1792 = vmatpush.msrb.mxu3 %v780_v47  ;;  %v1441_v25 = vpop.f32.mrf.mxu1  ;;  %v1182_v47 = vadd.f32 %v1181_v44, %v1162_v36 }
 0x25e   :  { %v648_v53 = vld [vmem:[#allocation5 + $0x12d8] sm:$0xff]  ;;  %1734 = vmatpush.msrb.mxu0 %v580_v48 }
 0x25f   :  { %v708_v54 = vld [vmem:[#allocation5 + $0x14b8] sm:$0xff]  ;;  %1753 = vmatpush.msrb.mxu1 %v648_v53  ;;  %v1461_v26 = vpop.f32.mrf.mxu2 }
 0x260   :  { %v776_v55 = vld [vmem:[#allocation5 + $0x16d8] sm:$0xff]  ;;  %1774 = vmatpush.msrb.mxu2 %v708_v54 }
 0x261   :  { %v576_v57 = vld [vmem:[#allocation5 + $0x1098] sm:$0xff]  ;;  %1793 = vmatpush.msrb.mxu3 %v776_v55  ;;  %v1202_v55 = vadd.f32 %v1201_v15, %v1182_v47 }
 0x262   :  { %v644_v58 = vld [vmem:[#allocation5 + $0x12b8] sm:$0xff]  ;;  %1735 = vmatpush.msrb.mxu0 %v576_v57 }
 0x263   :  { %v704_v59 = vld [vmem:[#allocation5 + $0x1498] sm:$0xff]  ;;  %1754 = vmatpush.msrb.mxu1 %v644_v58 }
 0x264   :  { %v772_v60 = vld [vmem:[#allocation5 + $0x16b8] sm:$0xff]  ;;  %1775 = vmatpush.msrb.mxu2 %v704_v59 }
 0x265   :  { %v572_v61 = vld [vmem:[#allocation5 + $0x1078] sm:$0xff]  ;;  %1794 = vmatpush.msrb.mxu3 %v772_v60  ;;  %v1222_v60 = vadd.f32 %v1221_v45, %v1202_v55 }
 0x266   :  { %v640_v62 = vld [vmem:[#allocation5 + $0x1298] sm:$0xff]  ;;  %1736 = vmatpush.msrb.mxu0 %v572_v61  ;;  %v1521_v27 = vpop.f32.mrf.mxu1 }
 0x267   :  { %v700_v63 = vld [vmem:[#allocation5 + $0x1478] sm:$0xff]  ;;  %1755 = vmatpush.msrb.mxu1 %v640_v62 }
 0x268   :  { %v768_v0 = vld [vmem:[#allocation5 + $0x1698] sm:$0xff]  ;;  %1776 = vmatpush.msrb.mxu2 %v700_v63 }
 0x269   :  { %v568_v1 = vld [vmem:[#allocation5 + $0x1058] sm:$0xff]  ;;  %1795 = vmatpush.msrb.mxu3 %v768_v0  ;;  %v1242_v0 = vadd.f32 %v1241_v16, %v1222_v60 }
 0x26a   :  { %v636_v2 = vld [vmem:[#allocation5 + $0x1278] sm:$0xff]  ;;  %1737 = vmatpush.msrb.mxu0 %v568_v1 }
 0x26b   :  { %v696_v3 = vld [vmem:[#allocation5 + $0x1458] sm:$0xff]  ;;  %1756 = vmatpush.msrb.mxu1 %v636_v2  ;;  %v1262_v1 = vadd.f32 %v1261_v46, %v1242_v0 }
 0x26c   :  { %v764_v4 = vld [vmem:[#allocation5 + $0x1678] sm:$0xff]  ;;  %1777 = vmatpush.msrb.mxu2 %v696_v3 }
 0x26d   :  { %v564_v5 = vld [vmem:[#allocation5 + $0x1038] sm:$0xff]  ;;  %1796 = vmatpush.msrb.mxu3 %v764_v4  ;;  %v1541_v29 = vpop.f32.mrf.mxu2 }
 0x26e   :  { %v632_v6 = vld [vmem:[#allocation5 + $0x1258] sm:$0xff]  ;;  %1738 = vmatpush.msrb.mxu0 %v564_v5 }
 0x26f   :  { %v692_v7 = vld [vmem:[#allocation5 + $0x1438] sm:$0xff]  ;;  %1757 = vmatpush.msrb.mxu1 %v632_v6  ;;  %v1282_v6 = vadd.f32 %v1281_v18, %v1262_v1 }
 0x270   :  { %v760_v8 = vld [vmem:[#allocation5 + $0x1658] sm:$0xff]  ;;  %1778 = vmatpush.msrb.mxu2 %v692_v7 }
 0x271   :  { %v560_v17 = vld [vmem:[#allocation5 + $0x1018] sm:$0xff]  ;;  %1797 = vmatpush.msrb.mxu3 %v760_v8 }
 0x272   :  { %v628_v9 = vld [vmem:[#allocation5 + $0x1238] sm:$0xff]  ;;  %1739 = vmatpush.msrb.mxu0 %v560_v17  ;;  %v1302_v17 = vadd.f32 %v1301_v28, %v1282_v6 }
 0x273   :  { %v688_v10 = vld [vmem:[#allocation5 + $0x1418] sm:$0xff]  ;;  %1758 = vmatpush.msrb.mxu1 %v628_v9  ;;  %1740 = vmatmul.f32.vlgmr.msrb.gmra.mxu0 %v2023_v38  ;;  %v1321_v38 = vpop.f32.mrf.mxu3 }
 0x274   :  { %v756_v11 = vld [vmem:[#allocation5 + $0x1638] sm:$0xff]  ;;  %1779 = vmatpush.msrb.mxu2 %v688_v10 }
 0x275   :  { %v624_v22 = vld [vmem:[#allocation5 + $0x1218] sm:$0xff]  ;;  %1798 = vmatpush.msrb.mxu3 %v756_v11  ;;  %1780 = vmatmul.f32.vlgmr.msrb.gmra.mxu2 %v2026_v39  ;;  %v1341_v39 = vpop.f32.mrf.mxu0 }
 0x276   :  { %v752_v23 = vld [vmem:[#allocation5 + $0x1618] sm:$0xff]  ;;  %1759 = vmatpush.msrb.mxu1 %v624_v22  ;;  %v1362_v31 = vadd.f32 %v1361_v19, %v1341_v39 }
 0x277   :  { %1799 = vmatpush.msrb.mxu3 %v752_v23  ;;  %1760 = vmatmul.f32.vlgmr.msrb.gmra.mxu1 %v2029_v50  ;;  %v1322_v23 = vadd.f32 %v1321_v38, %v1302_v17 }
 0x278   :  { %1800 = vmatmul.f32.vlgmr.msrb.gmra.mxu3 %v2032_v52  ;;  %v1382_v34 = vadd.f32 %v1381_v20, %v1362_v31 }
 0x279   :  { %v1808_v44 = vrot.slane %v1322_v23, 6 }
 0x27b   :  { %v1401_v21 = vpop.f32.mrf.mxu3  ;;  %v1812_v46 = vsel %vm1811_vm0, %v2005_v24, %v1808_v44 }
 0x27c   :  { %v1402_v37 = vadd.f32 %v1401_v21, %v1382_v34 }
 0x27d   :  { %v1421_v50 = vpop.f32.mrf.mxu0 }
 0x27e   :  { %v1422_v48 = vadd.f32 %v1421_v50, %v1402_v37 }
 0x280   :  { %v1442_v57 = vadd.f32 %v1441_v25, %v1422_v48 }
 0x282   :  { %v1462_v61 = vadd.f32 %v1461_v26, %v1442_v57 }
 0x283   :  { %v1481_v52 = vpop.f32.mrf.mxu3 }
 0x284   :  { %v1482_v2 = vadd.f32 %v1481_v52, %v1462_v61 }
 0x285   :  { %v1501_v41 = vpop.f32.mrf.mxu0 }
 0x286   :  { %v1502_v5 = vadd.f32 %v1501_v41, %v1482_v2 }
 0x288   :  { %v1522_v9 = vadd.f32 %v1521_v27, %v1502_v5 }
 0x28a   :  { %v1542_v22 = vadd.f32 %v1541_v29, %v1522_v9 }
 0x28b   :  { %v1561_v49 = vpop.f32.mrf.mxu3 }
 0x28c   :  { %v1562_v14 = vadd.f32 %v1561_v49, %v1542_v22 }
 0x28e   :  { %v1809_v16 = vrot.slane %v1562_v14, 4 }
 0x299   :  { %v1581_v33 = vpop.f32.mrf.mxu0 }
 0x29d   :  { %v1601_v51 = vpop.f32.mrf.mxu1 }
 0x29e   :  { %v1602_v35 = vadd.f32 %v1601_v51, %v1581_v33 }
 0x2a0   :  { %v1621_v56 = vpop.f32.mrf.mxu2 }
 0x2a1   :  { %v1622_v40 = vadd.f32 %v1621_v56, %v1602_v35  ;;  %v1641_v42 = vpop.f32.mrf.mxu3 }
 0x2a3   :  { %v1642_v53 = vadd.f32 %v1641_v42, %v1622_v40 }
 0x2b0   :  { %v1661_v54 = vpop.f32.mrf.mxu0 }
 0x2b1   :  { %v1662_v58 = vadd.f32 %v1661_v54, %v1642_v53 }
 0x2b6   :  { %v1681_v59 = vpop.f32.mrf.mxu1 }
 0x2b7   :  { %v1682_v62 = vadd.f32 %v1681_v59, %v1662_v58 }
 0x2b8   :  { %v1701_v63 = vpop.f32.mrf.mxu2 }
 0x2b9   :  { %v1702_v3 = vadd.f32 %v1701_v63, %v1682_v62 }
 0x2bd   :  { %v1721_v4 = vpop.f32.mrf.mxu3 }
 0x2be   :  { %v1722_v7 = vadd.f32 %v1721_v4, %v1702_v3 }
 0x2f0   :  { %v1741_v8 = vpop.f32.mrf.mxu0 }
 0x2f1   :  { %v1742_v10 = vadd.f32 %v1741_v8, %v1722_v7 }
 0x2f4   :  { %v1761_v11 = vpop.f32.mrf.mxu1 }
 0x2f5   :  { %v1762_v13 = vadd.f32 %v1761_v11, %v1742_v10 }
 0x2f8   :  { %v1781_v43 = vpop.f32.mrf.mxu2 }
 0x2f9   :  { %v1782_v12 = vadd.f32 %v1781_v43, %v1762_v13 }
 0x2fb   :  { %v1801_v15 = vpop.f32.mrf.mxu3 }
 0x2fc   :  { %v1802_v45 = vadd.f32 %v1801_v15, %v1782_v12 }
 0x2fe   :  { %v1810_v18 = vrot.slane %v1802_v45, 2 }
 0x300   :  { %v1814_v28 = vsel %vm1813_vm1, %v1809_v16, %v1810_v18 }
 0x301   :  { %v1816_v38 = vsel %vm1815_vm2, %v1812_v46, %v1814_v28 }
 0x302   :  { %1818 = vst [vmem:[#allocation7] sm:$0xff] %v1816_v38 }
 0x303   :  { %1829 = dma.vmem_to_hbm [thread:$0]  %s1825_s1, 128, %s1827_s23, [#allocation4]  }
 0x304   :  { %1926 = dma.done.wait [#allocation4], 128  }
 0x305   :  { %1927 = vsyncadd [#allocation4], 4294967168 }
 0x306   :  { %1834 = vsyncpa [#allocation3], 1 }
 0x307   :  { %1835 = vsyncpa [#allocation6], 1 }
 0x308   :  { %1836 = vsyncpa [#allocation4], 1 }

</bundles_post_ra>
